<compile_context>
chip_gen: v7x
topology: tpu7x:2x2x1
jax: 0.10.0
libtpu: 0.0.40
codegen_flags: <defaults>
</compile_context>

<pallas_src>
import functools

import numpy as np
import jax
import jax.numpy as jnp
from jax.experimental import pallas as pl
from jax.experimental.pallas import tpu as pltpu


TEMPERATURE = 0.07
BASE_TEMPERATURE = 0.07
MAX_SAMPLES = 64        # small, test-friendly ctor args of the module
MAX_VIEWS = 16
IGNORE_LABEL = 255

_ROW_BLOCK = 128        # rows of the (N, N) logits matrix handled per grid step


# --------------------------------------------------------------------------
# Pallas kernel: one row-block of the supervised contrastive loss.
#   nvalid_ref : (1,)  i32  SMEM scalar-prefetch: number of real rows/cols
#   lab_row    : (TR, 1)  i32  labels of block rows   (-1 on padded rows)
#   lab_col    : (1, NP)  i32  labels of all columns  (-2 on padded cols)
#   frow_ref   : (TR, D)  f32  anchor rows of this block (zero-padded rows)
#   fcolT_ref  : (D, NP) bf16  full contrast matrix, pre-transposed (0-padded)
#   out_ref    : (TR, 1)  f32  per-row loss (0 on padded rows)
# --------------------------------------------------------------------------
def _contrastive_kernel(nvalid_ref, lab_row_ref, lab_col_ref, frow_ref, fcolT_ref,
                        out_ref, *, inv_t, temp_over_base):
    n_valid = nvalid_ref[0]                      # scalar int32 (SMEM prefetch)
    tr = frow_ref.shape[0]
    np_cols = fcolT_ref.shape[1]
    row0 = pl.program_id(0) * tr

    # Anchors: fold the full 1/T here; contrast side arrives pre-cast bf16 and
    # already in (K, N) MXU order.  f32 accumulation on the MXU; all
    # post-matmul elementwise math stays in f32.
    a = (frow_ref[...] * inv_t).astype(jnp.bfloat16)                 # (TR, D)
    dot = jax.lax.dot_general(a, fcolT_ref[...], (((1,), (0,)), ((), ())),
                              preferred_element_type=jnp.float32)    # (TR, NP)

    # Row max over ALL columns: zero-padded columns give exactly 0, while the
    # diagonal (a valid column) is a sum of same-sign bf16 products >= 0, so
    # the max over all columns equals the max over valid columns.
    logits = dot - jnp.max(dot, axis=1, keepdims=True)
    exp_logits = jnp.exp(logits)

    # Masks from small iotas only (no full (TR,NP) int32 materialization).
    eq = lab_row_ref[...] == lab_col_ref[...]                        # (TR, NP) bool
    col_ids = jax.lax.broadcasted_iota(jnp.int32, (1, np_cols), 1)   # (1, NP)
    row_ids = row0 + jax.lax.broadcasted_iota(jnp.int32, (tr, 1), 0) # (TR, 1)

    # neg_mask = (1 - mask) restricted to real columns; boolean select feeding
    # the reduction directly (no float mask multiply).
    neg_mask = jnp.logical_and(jnp.logical_not(eq), col_ids < n_valid)
    neg_logits = jnp.sum(jnp.where(neg_mask, exp_logits, 0.0),
                         axis=1, keepdims=True)                      # (TR, 1)
    log_prob = logits - jnp.log(exp_logits + neg_logits)

    # positives: same label, self (diagonal) removed.  Pad labels (-1 rows,
    # -2 cols) make eq False for any padded row/col.  Valid rows always
    # contain their own diagonal in eq, so count = sum(eq) - 1.
    pos_mask = jnp.logical_and(eq, row_ids != col_ids)
    pos_cnt = jnp.sum(eq.astype(jnp.float32), axis=1, keepdims=True) - 1.0
    pos_sum = jnp.sum(jnp.where(pos_mask, log_prob, 0.0), axis=1, keepdims=True)

    # NOTE: a row with zero positives would be 0/0 (NaN) in the PyTorch
    # reference; we intentionally return 0 for such rows via max(cnt, 1).
    mean_log_prob_pos = pos_sum / jnp.maximum(pos_cnt, 1.0)
    per_row = -temp_over_base * mean_log_prob_pos                    # (TR, 1)

    out_ref[...] = jnp.where(row_ids < n_valid, per_row, 0.0)


@functools.partial(jax.jit,
                   static_argnames=("temperature", "base_temperature",
                                    "vmem_limit", "single_buffered"))
def _contrastive_pallas(nvalid, lab_row, lab_col, frow, fcolT,
                        temperature, base_temperature, vmem_limit, single_buffered):
    n_pad, d = frow.shape
    tr = _ROW_BLOCK
    n_blocks = n_pad // tr

    kernel = functools.partial(
        _contrastive_kernel,
        inv_t=float(1.0 / temperature),
        temp_over_base=float(temperature / base_temperature))

    # Grid-invariant inputs (full contrast matrix, column labels): request a
    # single pipeline buffer — a second buffer is pure VMEM waste since their
    # index_map is constant.
    inv_kwargs = {}
    if single_buffered:
        inv_kwargs = dict(pipeline_mode=pl.Buffered(1))

    cost = pl.CostEstimate(
        flops=int(2 * n_pad * n_pad * d + 14 * n_pad * n_pad),
        transcendentals=int(2 * n_pad * n_pad),
        bytes_accessed=int(n_pad * d * (4 + 2) + 3 * n_pad * 4))

    per_row = pl.pallas_call(
        kernel,
        out_shape=jax.ShapeDtypeStruct((n_pad, 1), jnp.float32),
        grid_spec=pltpu.PrefetchScalarGridSpec(
            num_scalar_prefetch=1,                                   # nvalid -> SMEM
            grid=(n_blocks,),
            in_specs=[
                pl.BlockSpec((tr, 1), lambda i, nv: (i, 0)),         # row labels
                pl.BlockSpec((1, n_pad), lambda i, nv: (0, 0),       # col labels
                             **inv_kwargs),
                pl.BlockSpec((tr, d), lambda i, nv: (i, 0)),         # anchor rows f32
                pl.BlockSpec((d, n_pad), lambda i, nv: (0, 0),       # contrast^T bf16
                             **inv_kwargs),
            ],
            out_specs=pl.BlockSpec((tr, 1), lambda i, nv: (i, 0)),
        ),
        compiler_params=pltpu.CompilerParams(
            dimension_semantics=("parallel",),   # row blocks split across TCs (v7x)
            vmem_limit_bytes=vmem_limit),
        cost_estimate=cost,
    )(nvalid, lab_row, lab_col, frow, fcolT)

    return jnp.sum(per_row) / nvalid[0].astype(jnp.float32)


def _vmem_capacity_bytes():
    try:
        info = pltpu.get_tpu_info()
        for name in ("vmem_capacity_bytes", "vmem_bytes", "vmem_size_bytes"):
            v = getattr(info, name, None)
            if v:
                return int(v)
    except Exception:
        pass
    return 64 << 20      # conservative (v7x per-TC VMEM)


# --------------------------------------------------------------------------
# Host-side glue reproducing the data-dependent, dynamically-shaped pieces of
# the module: nearest label resize + _hard_anchor_sampling.
# --------------------------------------------------------------------------
def _hard_anchor_sampling(X, y_hat, y, max_samples, max_views, ignore_label, rng):
    batch_size, feat_dim = X.shape[0], X.shape[-1]
    classes, total_classes = [], 0
    for ii in range(batch_size):
        this_y = y_hat[ii]
        cs = [int(c) for c in np.unique(this_y)
              if int(c) != ignore_label and int((this_y == c).sum()) > max_views]
        classes.append(cs)
        total_classes += len(cs)
    if total_classes == 0:
        return None, None
    n_view = min(max_samples // total_classes, max_views)

    X_ = np.zeros((total_classes, n_view, feat_dim), dtype=np.float32)
    y_ = np.zeros((total_classes,), dtype=np.float32)
    ptr = 0
    for ii in range(batch_size):
        this_y_hat, this_y = y_hat[ii], y[ii]
        for cls_id in classes[ii]:
            hard = np.nonzero((this_y_hat == cls_id) & (this_y != cls_id))[0]
            easy = np.nonzero((this_y_hat == cls_id) & (this_y == cls_id))[0]
            num_hard, num_easy = len(hard), len(easy)
            if num_hard >= n_view / 2 and num_easy >= n_view / 2:
                num_hard_keep = n_view // 2
                num_easy_keep = n_view - num_hard_keep
            elif num_hard >= n_view / 2:
                num_easy_keep = num_easy
                num_hard_keep = n_view - num_easy_keep
            elif num_easy >= n_view / 2:
                num_hard_keep = num_hard
                num_easy_keep = n_view - num_hard_keep
            else:
                raise Exception("not enough samples for class %d" % cls_id)
            # TODO(synk): torch.randperm's exact sequence is not reproducible in
            # numpy; a deterministic numpy permutation is used instead.
            hard = hard[rng.permutation(num_hard)[:num_hard_keep]]
            easy = easy[rng.permutation(num_easy)[:num_easy_keep]]
            idx = np.concatenate([hard, easy], axis=0)
            X_[ptr] = X[ii, idx, :]
            y_[ptr] = cls_id
            ptr += 1
    return X_, y_


def pixel_contrast_loss(feats, labels, predict, rng,
                        temperature=TEMPERATURE, base_temperature=BASE_TEMPERATURE,
                        max_samples=MAX_SAMPLES, max_views=MAX_VIEWS,
                        ignore_label=IGNORE_LABEL):
    """feats: (B,C,H,W) f32; labels: (B,Hl,Wl) int; predict: (B,H,W) int."""
    feats = np.asarray(feats, dtype=np.float32)
    labels = np.asarray(labels)
    predict = np.asarray(predict)
    B, C, H, W = feats.shape

    # F.interpolate(labels[:,None], (H,W), mode='nearest')
    hi = (np.arange(H) * labels.shape[1]) // H
    wi = (np.arange(W) * labels.shape[2]) // W
    labels_r = labels[:, hi][:, :, wi].astype(np.int64)

    labels_flat = labels_r.reshape(B, -1)
    predict_flat = predict.reshape(B, -1)
    feats_nhwc = np.transpose(feats, (0, 2, 3, 1)).reshape(B, -1, C)

    feats_, labels_ = _hard_anchor_sampling(
        feats_nhwc, labels_flat, predict_flat,
        max_samples, max_views, ignore_label, rng)
    if feats_ is None:
        raise ValueError("no valid classes to sample")

    anchor_num, n_view, feat_dim = feats_.shape
    # contrast_feature = torch.cat(torch.unbind(feats_, dim=1), dim=0)
    contrast = np.transpose(feats_, (1, 0, 2)).reshape(anchor_num * n_view, feat_dim)
    row_labels = np.tile(labels_, n_view)      # label of row i = y_[i % anchor_num]

    N = contrast.shape[0]
    tr = _ROW_BLOCK
    # Pad to a multiple of 2*TR so the "parallel" row axis splits evenly across
    # v7x's two TensorCores (harmless elsewhere).
    n_pad = int(-(-N // (2 * tr)) * (2 * tr))

    # Anchor rows: f32, zero-padded (scaled/cast per block inside the kernel).
    frow = np.zeros((n_pad, feat_dim), np.float32)
    frow[:N] = contrast
    # Contrast operand: pre-transposed to (D, N_pad), pre-cast bf16 on the
    # host; padding stays exactly zero (row-max-over-all-columns invariant).
    fcolT_np = np.zeros((feat_dim, n_pad), np.float32)
    fcolT_np[:, :N] = contrast.T
    fcolT = jnp.asarray(fcolT_np, dtype=jnp.bfloat16)

    lab_row = np.full((n_pad, 1), -1, np.int32)
    lab_row[:N, 0] = row_labels.astype(np.int32)
    lab_col = np.full((1, n_pad), -2, np.int32)
    lab_col[0, :N] = row_labels.astype(np.int32)
    nvalid = np.array([N], np.int32)

    # Size the scoped VMEM to the live temporaries (with headroom); cap to
    # 3/4 of the per-TC capacity (~48 MiB v7x, ~96 MiB v5e/v6e).
    est_vmem = (10 * tr * n_pad * 4            # live (TR, NP) temporaries
                + 2 * n_pad * feat_dim * 2     # contrast^T bf16 (<=2 buffers)
                + 2 * tr * feat_dim * 4        # anchor-row double buffer
                + 4 * n_pad * 4                # label planes + output
                + (4 << 20))                   # Mosaic scratch headroom
    vmem_limit = int(min(_vmem_capacity_bytes() * 3 // 4,
                         max(32 << 20, est_vmem)))

    common = dict(temperature=temperature, base_temperature=base_temperature,
                  vmem_limit=vmem_limit)
    try:
        loss = _contrastive_pallas(jnp.asarray(nvalid), jnp.asarray(lab_row),
                                   jnp.asarray(lab_col), jnp.asarray(frow), fcolT,
                                   single_buffered=True, **common)
        loss = jax.block_until_ready(loss)
    except Exception:
        # pipeline_mode=pl.Buffered(1) unsupported on this jax version ->
        # default double buffering (only VMEM footprint changes).
        loss = _contrastive_pallas(jnp.asarray(nvalid), jnp.asarray(lab_row),
                                   jnp.asarray(lab_col), jnp.asarray(frow), fcolT,
                                   single_buffered=False, **common)
    return loss, contrast, row_labels


# --------------------------------------------------------------------------
# References for the self-test.
# --------------------------------------------------------------------------
def _round_to_bf16(x):
    return np.asarray(jnp.asarray(np.asarray(x, np.float32),
                                  dtype=jnp.bfloat16)).astype(np.float64)


def _contrastive_ref(contrast, row_labels, temperature, base_temperature,
                     match_kernel_bf16):
    if match_kernel_bf16:
        # Mirror the kernel's rounding: anchors = bf16(f32(cf * 1/T)),
        # contrast side = bf16(cf); accumulate in high precision.
        inv_t = np.float32(1.0 / temperature)
        a = _round_to_bf16(contrast.astype(np.float32) * inv_t)
        b = _round_to_bf16(contrast.astype(np.float32))
        dot = a @ b.T
    else:
        cf = contrast.astype(np.float64)
        dot = (cf @ cf.T) / float(temperature)
    N = contrast.shape[0]
    logits = dot - dot.max(axis=1, keepdims=True)
    mask = (row_labels[:, None] == row_labels[None, :]).astype(np.float64)
    pos_mask = mask * (1.0 - np.eye(N))
    neg_mask = 1.0 - mask
    exp_logits = np.exp(logits)
    neg_logits = (exp_logits * neg_mask).sum(1, keepdims=True)
    log_prob = logits - np.log(exp_logits + neg_logits)
    mean_log_prob_pos = (pos_mask * log_prob).sum(1) / pos_mask.sum(1)
    return float((-(temperature / base_temperature) * mean_log_prob_pos).mean())


if __name__ == "__main__":
    B, C, H, W = 2, 32, 16, 16

    key = jax.random.PRNGKey(0)
    feats = jax.random.normal(key, (B, C, H, W), dtype=jnp.float32)
    feats = feats / jnp.linalg.norm(feats, axis=1, keepdims=True)
    feats_np = np.asarray(feats)

    # ground-truth labels at 2x spatial resolution (nearest-downsampled inside)
    labels = np.zeros((B, 2 * H, 2 * W), dtype=np.int64)
    labels[0, :, : W] = 0
    labels[0, :, W:] = 1
    labels[1, : H, :] = 2
    labels[1, H:, :] = 3

    # predictions at feature resolution: mostly correct, with some "hard" pixels
    hi = (np.arange(H) * labels.shape[1]) // H
    wi = (np.arange(W) * labels.shape[2]) // W
    labels_down = labels[:, hi][:, :, wi]
    predict = labels_down.copy()
    predict[0, 0:4, :] = 1 - labels_down[0, 0:4, :]            # swap classes 0<->1
    predict[1, :, 0:4] = 5 - labels_down[1, :, 0:4]            # swap classes 2<->3

    rng = np.random.RandomState(0)
    loss, contrast, row_labels = pixel_contrast_loss(feats_np, labels, predict, rng)
    loss = jax.block_until_ready(loss)

    # Tight check against a reference using the same bf16-rounded MXU inputs.
    ref_bf16 = _contrastive_ref(contrast, row_labels, TEMPERATURE,
                                BASE_TEMPERATURE, match_kernel_bf16=True)
    np.testing.assert_allclose(float(loss), ref_bf16, rtol=1e-3, atol=1e-3)

    # Loose sanity check against the full-precision reference (bf16 matmul noise).
    ref_f64 = _contrastive_ref(contrast, row_labels, TEMPERATURE,
                               BASE_TEMPERATURE, match_kernel_bf16=False)
    np.testing.assert_allclose(float(loss), ref_f64, rtol=5e-2, atol=5e-2)

    print("KERNEL_OK")
</pallas_src>

<mosaic_0001>
module attributes {stable_mosaic.version = 11 : i64} {
  func.func @_contrastive_kernel(%arg0: i32, %arg1: memref<1xi32, #tpu.memory_space<smem>>, %arg2: memref<128x1xi32, #tpu.memory_space<vmem>>, %arg3: memref<1x256xi32, #tpu.memory_space<vmem>>, %arg4: memref<128x32xf32, #tpu.memory_space<vmem>>, %arg5: memref<32x256xbf16, #tpu.memory_space<vmem>>, %arg6: memref<128x1xf32, #tpu.memory_space<vmem>>) attributes {dimension_semantics = [#tpu.dimension_semantics<parallel>], iteration_bounds = array<i64: 2>, scalar_prefetch = 1 : i64, scratch_operands = 0 : i64, tpu.core_type = #tpu.core_type<tc>, window_params = [{transform_indices = @transform_0, window_bounds = array<i64: 128, 1>}, {pipeline_mode = #tpu.pipeline_mode<synchronous>, transform_indices = @transform_1, window_bounds = array<i64: 1, 256>}, {transform_indices = @transform_2, window_bounds = array<i64: 128, 32>}, {pipeline_mode = #tpu.pipeline_mode<synchronous>, transform_indices = @transform_3, window_bounds = array<i64: 32, 256>}, {transform_indices = @transform_4, window_bounds = array<i64: 128, 1>}]} {
    %c0 = arith.constant 0 : index
    %0 = memref.load %arg1[%c0] : memref<1xi32, #tpu.memory_space<smem>>
    %c128_i32 = arith.constant 128 : i32
    %1 = arith.muli %arg0, %c128_i32 : i32
    %c0_0 = arith.constant 0 : index
    %c0_1 = arith.constant 0 : index
    %2 = vector.load %arg4[%c0_0, %c0_1] : memref<128x32xf32, #tpu.memory_space<vmem>>, vector<128x32xf32>
    %cst = arith.constant 14.2857141 : f32
    %3 = vector.broadcast %cst : f32 to vector<128x32xf32>
    %4 = arith.mulf %2, %3 : vector<128x32xf32>
    %5 = arith.truncf %4 : vector<128x32xf32> to vector<128x32xbf16>
    %c0_2 = arith.constant 0 : index
    %c0_3 = arith.constant 0 : index
    %6 = vector.load %arg5[%c0_2, %c0_3] : memref<32x256xbf16, #tpu.memory_space<vmem>>, vector<32x256xbf16>
    %cst_4 = arith.constant dense<0.000000e+00> : vector<128x256xf32>
    %7 = tpu.matmul %5, %6, %cst_4 {dimension_numbers = #tpu.dot_dimension_numbers<[1], [0], [0], [1], [0, 0, 1, 1], [], []>} : vector<128x32xbf16>, vector<32x256xbf16>, vector<128x256xf32> -> vector<128x256xf32>
    %cst_5 = arith.constant dense<0xFF800000> : vector<128xf32>
    %8 = vector.multi_reduction <maximumf>, %7, %cst_5 [1] : vector<128x256xf32> to vector<128xf32>
    %9 = vector.shape_cast %8 : vector<128xf32> to vector<128x1xf32>
    %10 = vector.broadcast %9 : vector<128x1xf32> to vector<128x256xf32>
    %11 = arith.subf %7, %10 : vector<128x256xf32>
    %12 = math.exp %11 : vector<128x256xf32>
    %c0_6 = arith.constant 0 : index
    %c0_7 = arith.constant 0 : index
    %13 = vector.load %arg2[%c0_6, %c0_7] : memref<128x1xi32, #tpu.memory_space<vmem>>, vector<128x1xi32>
    %c0_8 = arith.constant 0 : index
    %c0_9 = arith.constant 0 : index
    %14 = vector.load %arg3[%c0_8, %c0_9] : memref<1x256xi32, #tpu.memory_space<vmem>>, vector<1x256xi32>
    %15 = vector.broadcast %13 : vector<128x1xi32> to vector<128x256xi32>
    %16 = vector.broadcast %14 : vector<1x256xi32> to vector<128x256xi32>
    %17 = arith.cmpi eq, %15, %16 : vector<128x256xi32>
    %18 = tpu.iota {dimensions = array<i32: 1>} : vector<1x256xi32>
    %19 = tpu.iota {dimensions = array<i32: 0>} : vector<128x1xi32>
    %20 = vector.broadcast %1 : i32 to vector<128x1xi32>
    %21 = arith.addi %20, %19 : vector<128x1xi32>
    %cst_10 = arith.constant dense<true> : vector<128x256xi1>
    %22 = arith.xori %17, %cst_10 : vector<128x256xi1>
    %23 = vector.broadcast %0 : i32 to vector<1x256xi32>
    %24 = arith.cmpi slt, %18, %23 : vector<1x256xi32>
    %25 = vector.broadcast %24 : vector<1x256xi1> to vector<128x256xi1>
    %26 = arith.andi %22, %25 : vector<128x256xi1>
    %cst_11 = arith.constant 0.000000e+00 : f32
    %27 = vector.broadcast %cst_11 : f32 to vector<128x256xf32>
    %28 = arith.select %26, %12, %27 : vector<128x256xi1>, vector<128x256xf32>
    %cst_12 = arith.constant dense<0.000000e+00> : vector<128xf32>
    %29 = vector.multi_reduction <add>, %28, %cst_12 [1] : vector<128x256xf32> to vector<128xf32>
    %30 = vector.shape_cast %29 : vector<128xf32> to vector<128x1xf32>
    %31 = vector.broadcast %30 : vector<128x1xf32> to vector<128x256xf32>
    %32 = arith.addf %12, %31 : vector<128x256xf32>
    %33 = math.log %32 : vector<128x256xf32>
    %34 = arith.subf %11, %33 : vector<128x256xf32>
    %35 = vector.broadcast %21 : vector<128x1xi32> to vector<128x256xi32>
    %36 = vector.broadcast %18 : vector<1x256xi32> to vector<128x256xi32>
    %37 = arith.cmpi ne, %35, %36 : vector<128x256xi32>
    %38 = arith.andi %17, %37 : vector<128x256xi1>
    %39 = arith.extui %17 : vector<128x256xi1> to vector<128x256xi32>
    %40 = arith.sitofp %39 : vector<128x256xi32> to vector<128x256xf32>
    %cst_13 = arith.constant dense<0.000000e+00> : vector<128xf32>
    %41 = vector.multi_reduction <add>, %40, %cst_13 [1] : vector<128x256xf32> to vector<128xf32>
    %42 = vector.shape_cast %41 : vector<128xf32> to vector<128x1xf32>
    %cst_14 = arith.constant 1.000000e+00 : f32
    %43 = vector.broadcast %cst_14 : f32 to vector<128x1xf32>
    %44 = arith.subf %42, %43 : vector<128x1xf32>
    %cst_15 = arith.constant 0.000000e+00 : f32
    %45 = vector.broadcast %cst_15 : f32 to vector<128x256xf32>
    %46 = arith.select %38, %34, %45 : vector<128x256xi1>, vector<128x256xf32>
    %cst_16 = arith.constant dense<0.000000e+00> : vector<128xf32>
    %47 = vector.multi_reduction <add>, %46, %cst_16 [1] : vector<128x256xf32> to vector<128xf32>
    %48 = vector.shape_cast %47 : vector<128xf32> to vector<128x1xf32>
    %cst_17 = arith.constant 1.000000e+00 : f32
    %49 = vector.broadcast %cst_17 : f32 to vector<128x1xf32>
    %50 = arith.maximumf %44, %49 : vector<128x1xf32>
    %51 = arith.divf %48, %50 : vector<128x1xf32>
    %cst_18 = arith.constant -1.000000e+00 : f32
    %52 = vector.broadcast %cst_18 : f32 to vector<128x1xf32>
    %53 = arith.mulf %52, %51 : vector<128x1xf32>
    %54 = vector.broadcast %0 : i32 to vector<128x1xi32>
    %55 = arith.cmpi slt, %21, %54 : vector<128x1xi32>
    %cst_19 = arith.constant 0.000000e+00 : f32
    %56 = vector.broadcast %cst_19 : f32 to vector<128x1xf32>
    %57 = arith.select %55, %53, %56 : vector<128x1xi1>, vector<128x1xf32>
    %c0_20 = arith.constant 0 : index
    %c0_21 = arith.constant 0 : index
    %58 = vector.load %arg6[%c0_20, %c0_21] : memref<128x1xf32, #tpu.memory_space<vmem>>, vector<128x1xf32>
    tpu.vector_store %arg6[%c0_20, %c0_21], %57 {strides = array<i32>} : memref<128x1xf32, #tpu.memory_space<vmem>>, vector<128x1xf32>,
    return
  }
  func.func @transform_0(%arg0: i32, %arg1: memref<1xi32, #tpu.memory_space<smem>>) -> (i32, i32) {
    %c0_i32 = arith.constant 0 : i32
    %c0_i32_0 = arith.constant 0 : i32
    return %arg0, %c0_i32 : i32, i32
  }
  func.func @transform_1(%arg0: i32, %arg1: memref<1xi32, #tpu.memory_space<smem>>) -> (i32, i32) {
    %c0_i32 = arith.constant 0 : i32
    %c0_i32_0 = arith.constant 0 : i32
    %c0_i32_1 = arith.constant 0 : i32
    return %c0_i32, %c0_i32_0 : i32, i32
  }
  func.func @transform_2(%arg0: i32, %arg1: memref<1xi32, #tpu.memory_space<smem>>) -> (i32, i32) {
    %c0_i32 = arith.constant 0 : i32
    %c0_i32_0 = arith.constant 0 : i32
    return %arg0, %c0_i32 : i32, i32
  }
  func.func @transform_3(%arg0: i32, %arg1: memref<1xi32, #tpu.memory_space<smem>>) -> (i32, i32) {
    %c0_i32 = arith.constant 0 : i32
    %c0_i32_0 = arith.constant 0 : i32
    %c0_i32_1 = arith.constant 0 : i32
    return %c0_i32, %c0_i32_0 : i32, i32
  }
  func.func @transform_4(%arg0: i32, %arg1: memref<1xi32, #tpu.memory_space<smem>>) -> (i32, i32) {
    %c0_i32 = arith.constant 0 : i32
    %c0_i32_0 = arith.constant 0 : i32
    return %arg0, %c0_i32 : i32, i32
  }
}

module attributes {stable_mosaic.version = 11 : i64} {
  func.func @_contrastive_kernel(%arg0: i32, %arg1: memref<1xi32, #tpu.memory_space<smem>>, %arg2: memref<128x1xi32, #tpu.memory_space<vmem>>, %arg3: memref<1x256xi32, #tpu.memory_space<vmem>>, %arg4: memref<128x32xf32, #tpu.memory_space<vmem>>, %arg5: memref<32x256xbf16, #tpu.memory_space<vmem>>, %arg6: memref<128x1xf32, #tpu.memory_space<vmem>>) attributes {dimension_semantics = [#tpu.dimension_semantics<parallel>], iteration_bounds = array<i64: 2>, scalar_prefetch = 1 : i64, scratch_operands = 0 : i64, tpu.core_type = #tpu.core_type<tc>, window_params = [{transform_indices = @transform_0, window_bounds = array<i64: 128, 1>}, {pipeline_mode = #tpu.pipeline_mode<synchronous>, transform_indices = @transform_1, window_bounds = array<i64: 1, 256>}, {transform_indices = @transform_2, window_bounds = array<i64: 128, 32>}, {pipeline_mode = #tpu.pipeline_mode<synchronous>, transform_indices = @transform_3, window_bounds = array<i64: 32, 256>}, {transform_indices = @transform_4, window_bounds = array<i64: 128, 1>}]} {
    %c0 = arith.constant 0 : index
    %0 = memref.load %arg1[%c0] : memref<1xi32, #tpu.memory_space<smem>>
    %c128_i32 = arith.constant 128 : i32
    %1 = arith.muli %arg0, %c128_i32 : i32
    %c0_0 = arith.constant 0 : index
    %c0_1 = arith.constant 0 : index
    %2 = vector.load %arg4[%c0_0, %c0_1] : memref<128x32xf32, #tpu.memory_space<vmem>>, vector<128x32xf32>
    %cst = arith.constant 14.2857141 : f32
    %3 = vector.broadcast %cst : f32 to vector<128x32xf32>
    %4 = arith.mulf %2, %3 : vector<128x32xf32>
    %5 = arith.truncf %4 : vector<128x32xf32> to vector<128x32xbf16>
    %c0_2 = arith.constant 0 : index
    %c0_3 = arith.constant 0 : index
    %6 = vector.load %arg5[%c0_2, %c0_3] : memref<32x256xbf16, #tpu.memory_space<vmem>>, vector<32x256xbf16>
    %cst_4 = arith.constant dense<0.000000e+00> : vector<128x256xf32>
    %7 = tpu.matmul %5, %6, %cst_4 {dimension_numbers = #tpu.dot_dimension_numbers<[1], [0], [0], [1], [0, 0, 1, 1], [], []>} : vector<128x32xbf16>, vector<32x256xbf16>, vector<128x256xf32> -> vector<128x256xf32>
    %cst_5 = arith.constant dense<0xFF800000> : vector<128xf32>
    %8 = vector.multi_reduction <maximumf>, %7, %cst_5 [1] : vector<128x256xf32> to vector<128xf32>
    %9 = vector.shape_cast %8 : vector<128xf32> to vector<128x1xf32>
    %10 = vector.broadcast %9 : vector<128x1xf32> to vector<128x256xf32>
    %11 = arith.subf %7, %10 : vector<128x256xf32>
    %12 = math.exp %11 : vector<128x256xf32>
    %c0_6 = arith.constant 0 : index
    %c0_7 = arith.constant 0 : index
    %13 = vector.load %arg2[%c0_6, %c0_7] : memref<128x1xi32, #tpu.memory_space<vmem>>, vector<128x1xi32>
    %c0_8 = arith.constant 0 : index
    %c0_9 = arith.constant 0 : index
    %14 = vector.load %arg3[%c0_8, %c0_9] : memref<1x256xi32, #tpu.memory_space<vmem>>, vector<1x256xi32>
    %15 = vector.broadcast %13 : vector<128x1xi32> to vector<128x256xi32>
    %16 = vector.broadcast %14 : vector<1x256xi32> to vector<128x256xi32>
    %17 = arith.cmpi eq, %15, %16 : vector<128x256xi32>
    %18 = tpu.iota {dimensions = array<i32: 1>} : vector<1x256xi32>
    %19 = tpu.iota {dimensions = array<i32: 0>} : vector<128x1xi32>
    %20 = vector.broadcast %1 : i32 to vector<128x1xi32>
    %21 = arith.addi %20, %19 : vector<128x1xi32>
    %cst_10 = arith.constant dense<true> : vector<128x256xi1>
    %22 = arith.xori %17, %cst_10 : vector<128x256xi1>
    %23 = vector.broadcast %0 : i32 to vector<1x256xi32>
    %24 = arith.cmpi slt, %18, %23 : vector<1x256xi32>
    %25 = vector.broadcast %24 : vector<1x256xi1> to vector<128x256xi1>
    %26 = arith.andi %22, %25 : vector<128x256xi1>
    %cst_11 = arith.constant 0.000000e+00 : f32
    %27 = vector.broadcast %cst_11 : f32 to vector<128x256xf32>
    %28 = arith.select %26, %12, %27 : vector<128x256xi1>, vector<128x256xf32>
    %cst_12 = arith.constant dense<0.000000e+00> : vector<128xf32>
    %29 = vector.multi_reduction <add>, %28, %cst_12 [1] : vector<128x256xf32> to vector<128xf32>
    %30 = vector.shape_cast %29 : vector<128xf32> to vector<128x1xf32>
    %31 = vector.broadcast %30 : vector<128x1xf32> to vector<128x256xf32>
    %32 = arith.addf %12, %31 : vector<128x256xf32>
    %33 = math.log %32 : vector<128x256xf32>
    %34 = arith.subf %11, %33 : vector<128x256xf32>
    %35 = vector.broadcast %21 : vector<128x1xi32> to vector<128x256xi32>
    %36 = vector.broadcast %18 : vector<1x256xi32> to vector<128x256xi32>
    %37 = arith.cmpi ne, %35, %36 : vector<128x256xi32>
    %38 = arith.andi %17, %37 : vector<128x256xi1>
    %39 = arith.extui %17 : vector<128x256xi1> to vector<128x256xi32>
    %40 = arith.sitofp %39 : vector<128x256xi32> to vector<128x256xf32>
    %cst_13 = arith.constant dense<0.000000e+00> : vector<128xf32>
    %41 = vector.multi_reduction <add>, %40, %cst_13 [1] : vector<128x256xf32> to vector<128xf32>
    %42 = vector.shape_cast %41 : vector<128xf32> to vector<128x1xf32>
    %cst_14 = arith.constant 1.000000e+00 : f32
    %43 = vector.broadcast %cst_14 : f32 to vector<128x1xf32>
    %44 = arith.subf %42, %43 : vector<128x1xf32>
    %cst_15 = arith.constant 0.000000e+00 : f32
    %45 = vector.broadcast %cst_15 : f32 to vector<128x256xf32>
    %46 = arith.select %38, %34, %45 : vector<128x256xi1>, vector<128x256xf32>
    %cst_16 = arith.constant dense<0.000000e+00> : vector<128xf32>
    %47 = vector.multi_reduction <add>, %46, %cst_16 [1] : vector<128x256xf32> to vector<128xf32>
    %48 = vector.shape_cast %47 : vector<128xf32> to vector<128x1xf32>
    %cst_17 = arith.constant 1.000000e+00 : f32
    %49 = vector.broadcast %cst_17 : f32 to vector<128x1xf32>
    %50 = arith.maximumf %44, %49 : vector<128x1xf32>
    %51 = arith.divf %48, %50 : vector<128x1xf32>
    %cst_18 = arith.constant -1.000000e+00 : f32
    %52 = vector.broadcast %cst_18 : f32 to vector<128x1xf32>
    %53 = arith.mulf %52, %51 : vector<128x1xf32>
    %54 = vector.broadcast %0 : i32 to vector<128x1xi32>
    %55 = arith.cmpi slt, %21, %54 : vector<128x1xi32>
    %cst_19 = arith.constant 0.000000e+00 : f32
    %56 = vector.broadcast %cst_19 : f32 to vector<128x1xf32>
    %57 = arith.select %55, %53, %56 : vector<128x1xi1>, vector<128x1xf32>
    %c0_20 = arith.constant 0 : index
    %c0_21 = arith.constant 0 : index
    %58 = vector.load %arg6[%c0_20, %c0_21] : memref<128x1xf32, #tpu.memory_space<vmem>>, vector<128x1xf32>
    tpu.vector_store %arg6[%c0_20, %c0_21], %57 {strides = array<i32>} : memref<128x1xf32, #tpu.memory_space<vmem>>, vector<128x1xf32>,
    return
  }
  func.func @transform_0(%arg0: i32, %arg1: memref<1xi32, #tpu.memory_space<smem>>) -> (i32, i32) {
    %c0_i32 = arith.constant 0 : i32
    %c0_i32_0 = arith.constant 0 : i32
    return %arg0, %c0_i32 : i32, i32
  }
  func.func @transform_1(%arg0: i32, %arg1: memref<1xi32, #tpu.memory_space<smem>>) -> (i32, i32) {
    %c0_i32 = arith.constant 0 : i32
    %c0_i32_0 = arith.constant 0 : i32
    %c0_i32_1 = arith.constant 0 : i32
    return %c0_i32, %c0_i32_0 : i32, i32
  }
  func.func @transform_2(%arg0: i32, %arg1: memref<1xi32, #tpu.memory_space<smem>>) -> (i32, i32) {
    %c0_i32 = arith.constant 0 : i32
    %c0_i32_0 = arith.constant 0 : i32
    return %arg0, %c0_i32 : i32, i32
  }
  func.func @transform_3(%arg0: i32, %arg1: memref<1xi32, #tpu.memory_space<smem>>) -> (i32, i32) {
    %c0_i32 = arith.constant 0 : i32
    %c0_i32_0 = arith.constant 0 : i32
    %c0_i32_1 = arith.constant 0 : i32
    return %c0_i32, %c0_i32_0 : i32, i32
  }
  func.func @transform_4(%arg0: i32, %arg1: memref<1xi32, #tpu.memory_space<smem>>) -> (i32, i32) {
    %c0_i32 = arith.constant 0 : i32
    %c0_i32_0 = arith.constant 0 : i32
    return %arg0, %c0_i32 : i32, i32
  }
}

</mosaic_0001>

<bundles_post_ra>
// kernel: _contrastive_pallas.1
= control target key start
LH: loop header
LB: loop body
LE: loop exit
PB: predicated region body
PF: predicated region fallthrough
CT: control target
= control target key end

     0   :  { %s1749_s20 = smov 0   ;;  %s3341_s0 = inlined_call_operand.<no memory space> [shape: s32[1], index: 0, kind: input, shape index: {}]   ;;  %s3342_s1 = inlined_call_operand.vmem [shape: s32[256,1], index: 1, kind: input, shape index: {}]   ;;  %s3343_s2 = inlined_call_operand.vmem [shape: s32[1,256], index: 2, kind: input, shape index: {}]   ;;  %s3344_s3 = inlined_call_operand.vmem [shape: f32[256,32], index: 3, kind: input, shape index: {}]   ;;  %s3345_s4 = inlined_call_operand.vmem [shape: bf16[32,256], index: 4, kind: input, shape index: {}]   ;;  %s3346_s5 = inlined_call_operand.vmem [shape: f32[256,1], index: 5, kind: output, shape index: {}]  }
   0x1   :  { %10 = sst [smem:[#allocation3]] %s3341_s0 }
   0x2 LB: > { %s1448_s21 = sadd.s32 4294967295, %s1711_s20   ;;  %p1452_p0 = scmp.ge.s32.totalorder %s1711_s20, 1  ;;  %s1711_s20 = sphi %s1749_s20, %s16_s20  }
   0x3   : > { %p176_p1 = scmp.lt.s32.totalorder %s1711_s20, 3 }
   0x5   : > { %p177_p2 = pnand %p1452_p0, %p176_p1 }
   0x7   : > { %180 = sbr.rel (%p177_p2) target bundleno = 781 (0x30d), region = 36 }
   0xe   : > { %v1539_v0 = vld [vmem:[%s3345_s4 + $0x4] ss:$8 sps:$4 sm:$0xff]   ;;  %s1453_s0 = sshll.u32 %s1448_s21, 4  ;;  %v1541_v1 = vld [vmem:[%s3345_s4] ss:$8 sps:$4 sm:$0xff]   ;;  %v1713_v2 = vmov 0  }
   0xf   : > { %349 = vmatprep.mubr.bf16.mxu0 %v1713_v2  ;;  %389 = vmatprep.mubr.bf16.mxu1 %v1713_v2  ;;  %p208_p3 = scmp.lt.s32.totalorder %s1453_s0, 31  ;;  %v1542_v3 = vld [vmem:[%s3345_s4 + $0x14] ss:$8 sps:$4 sm:$0xff]   ;;  %v1544_v4 = vld [vmem:[%s3345_s4 + $0x10] ss:$8 sps:$4 sm:$0xff]   ;;  %vm292_vm0 = vcmask 261120  }
  0x10   : > { %317 = vmatprep.subr.bf16.mxu0 %v1539_v0  ;;  %1522 = vmatprep.subr.bf16.mxu1 %v1539_v0  ;;  %s1970_s14 = sld [smem:[#allocation3]]  ;;  %vm3395_vm8 = vmmov 1   ;;  %s1459_s15 = sshll.u32 %s1448_s21, 7 }
  0x11   : > { %318 = vmatpush1.bf16.msra.mxu0 %v1541_v1  ;;  %1524 = vmatpush1.bf16.msra.mxu1 %v1541_v1  ;;  %s3730_s0 = smov (!%p208_p3, %s1453_s0), 31 }
  0x12   : > { %319 = vmatprep.subr.bf16.mxu0 %v1542_v3  ;;  %1523 = vmatprep.subr.bf16.mxu1 %v1542_v3  ;;  %s1773_s30 = sshll.u32 %s3730_s0, 3 }
  0x13   : > { %1538 = vset.pattern.permute.xlu1 %v1713_v2  ;;  %1537 = vset.pattern.permute.xlu0 %v1713_v2  ;;  %s1781_s8 = scalar_lea.vmem %s3344_s3, %s1773_s30  ;;  %s1795_s11 = scalar_lea.vmem %s3342_s1, %s1773_s30 }
  0x14   : > { %v228_v5 = vld [vmem:[%s1781_s8] sm:$0xff]  ;;  %v229_v6 = vld [vmem:[%s1781_s8 + $0x8] sm:$0xff]  ;;  %v230_v13 = vld [vmem:[%s1781_s8 + $0x10] sm:$0xff]  ;;  %s3271_s18 = scalar_lea.vmem %s3346_s5, %s1773_s30 }
  0x15   : > { %320 = vmatpush1.bf16.msra.mxu0 %v1544_v4  ;;  %1525 = vmatpush1.bf16.msra.mxu1 %v1544_v4  ;;  %v236_v7 = vld [vmem:[%s1781_s8 + $0x40] sm:$0xff]  ;;  %v244_v8 = vmul.f32 14.285714, %v228_v5  ;;  %v245_v9 = vmul.f32 14.285714, %v229_v6  ;;  %v237_v10 = vld [vmem:[%s1781_s8 + $0x48] sm:$0xff] }
  0x16   : > { %v252_v11 = vmul.f32 14.285714, %v236_v7  ;;  %v253_v12 = vmul.f32 14.285714, %v237_v10  ;;  %v231_v14 = vld [vmem:[%s1781_s8 + $0x18] sm:$0xff]  ;;  %v238_v16 = vld [vmem:[%s1781_s8 + $0x50] sm:$0xff] }
  0x17   : > { %v260_v15 = vpack.c.bf16 %v245_v9, %v244_v8  ;;  %v239_v17 = vld [vmem:[%s1781_s8 + $0x58] sm:$0xff]  ;;  %v246_v19 = vmul.f32 14.285714, %v230_v13  ;;  %v247_v20 = vmul.f32 14.285714, %v231_v14  ;;  %v575_v23 = vld [vmem:[%s1795_s11 + $0x8] sm:$0xff] }
  0x18   : > { %v264_v18 = vpack.c.bf16 %v253_v12, %v252_v11  ;;  %v254_v21 = vmul.f32 14.285714, %v238_v16  ;;  %v255_v22 = vmul.f32 14.285714, %v239_v17  ;;  %595 = vperm.xlu1 %1538, %v575_v23   ;;  %v576_v25 = vld [vmem:[%s1795_s11 + $0x10] sm:$0xff]  ;;  %v232_v27 = vld [vmem:[%s1781_s8 + $0x20] sm:$0xff] }
  0x19   : > { %1464 = vmatmul.mubr.msk.bf16.vlgmr.msra.gmra.mrb[0].mxu0 %vm292_vm0, %v260_v15  ;;  %v261_v24 = vpack.c.bf16 %v247_v20, %v246_v19  ;;  %v233_v28 = vld [vmem:[%s1781_s8 + $0x28] sm:$0xff]  ;;  %v240_v29 = vld [vmem:[%s1781_s8 + $0x60] sm:$0xff]  ;;  %v248_v32 = vmul.f32 14.285714, %v232_v27  ;;  %v577_v34 = vld [vmem:[%s1795_s11 + $0x18] sm:$0xff] }
  0x1a   : > { %1468 = vmatmul.mubr.msk.bf16.vlgmr.msra.gmra.mrb[0].mxu1 %vm292_vm0, %v264_v18  ;;  %359 = vmatprep.mubr.bf16.mxu0 %v1713_v2  ;;  %v265_v26 = vpack.c.bf16 %v255_v22, %v254_v21  ;;  %v241_v30 = vld [vmem:[%s1781_s8 + $0x68] sm:$0xff]  ;;  %v574_v31 = vld [vmem:[%s1795_s11] sm:$0xff]  ;;  %v249_v33 = vmul.f32 14.285714, %v233_v28  ;;  %v256_v36 = vmul.f32 14.285714, %v240_v29 }
  0x1b   : > { %399 = vmatprep.mubr.bf16.mxu1 %v1713_v2  ;;  %592 = vperm.xlu0 %1537, %v574_v31   ;;  %v583_v35 = vld [vmem:[%s1795_s11 + $0x48] sm:$0xff]  ;;  %v257_v37 = vmul.f32 14.285714, %v241_v30  ;;  %v578_v39 = vld [vmem:[%s1795_s11 + $0x20] sm:$0xff]  ;;  %v585_v40 = vld [vmem:[%s1795_s11 + $0x58] sm:$0xff] }
  0x1c   : > { %598 = vperm.xlu1 %1538, %v576_v25   ;;  %v262_v38 = vpack.c.bf16 %v249_v33, %v248_v32  ;;  %v234_v42 = vld [vmem:[%s1781_s8 + $0x30] sm:$0xff]  ;;  %v235_v43 = vld [vmem:[%s1781_s8 + $0x38] sm:$0xff]  ;;  %v579_v48 = vld [vmem:[%s1795_s11 + $0x28] sm:$0xff] }
  0x1d   : > { %v266_v41 = vpack.c.bf16 %v257_v37, %v256_v36  ;;  %v242_v44 = vld [vmem:[%s1781_s8 + $0x70] sm:$0xff]  ;;  %v243_v45 = vld [vmem:[%s1781_s8 + $0x78] sm:$0xff]  ;;  %v250_v46 = vmul.f32 14.285714, %v234_v42  ;;  %v251_v47 = vmul.f32 14.285714, %v235_v43 }
  0x1e   : > { %v587_v49 = vld [vmem:[%s1795_s11 + $0x68] sm:$0xff]  ;;  %v258_v50 = vmul.f32 14.285714, %v242_v44  ;;  %v259_v51 = vmul.f32 14.285714, %v243_v45  ;;  %v580_v53 = vld [vmem:[%s1795_s11 + $0x30] sm:$0xff] }
  0x1f   : > { %619 = vperm.xlu0 %1537, %v583_v35   ;;  %v263_v52 = vpack.c.bf16 %v251_v47, %v250_v46  ;;  %v581_v55 = vld [vmem:[%s1795_s11 + $0x38] sm:$0xff]  ;;  %v582_v56 = vld [vmem:[%s1795_s11 + $0x40] sm:$0xff]  ;;  %v584_v57 = vld [vmem:[%s1795_s11 + $0x50] sm:$0xff] }
  0x20   : > { %601 = vperm.xlu1 %1538, %v577_v34   ;;  %v267_v54 = vpack.c.bf16 %v259_v51, %v258_v50  ;;  %v586_v58 = vld [vmem:[%s1795_s11 + $0x60] sm:$0xff]  ;;  %v588_v43 = vld [vmem:[%s1795_s11 + $0x70] sm:$0xff]  ;;  %v589_v44 = vld [vmem:[%s1795_s11 + $0x78] sm:$0xff] }
  0x21   : > { %1465 = vmatmul.mubr.msk.bf16.gmra.mrb[4].mxu0 %vm292_vm0, %v261_v24 }
  0x22   : > { %1469 = vmatmul.mubr.msk.bf16.gmra.mrb[4].mxu1 %vm292_vm0, %v265_v26  ;;  %369 = vmatprep.mubr.bf16.mxu0 %v1713_v2 }
  0x23   : > { %409 = vmatprep.mubr.bf16.mxu1 %v1713_v2  ;;  %625 = vperm.xlu0 %1537, %v585_v40  }
  0x24   : > { %604 = vperm.xlu1 %1538, %v578_v39  }
  0x27   : > { %631 = vperm.xlu0 %1537, %v587_v49  }
  0x28   : > { %607 = vperm.xlu1 %1538, %v579_v48  }
  0x29   : > { %1466 = vmatmul.mubr.msk.bf16.gmra.mrb[8].mxu0 %vm292_vm0, %v262_v38 }
  0x2a   : > { %1470 = vmatmul.mubr.msk.bf16.gmra.mrb[8].mxu1 %vm292_vm0, %v266_v41  ;;  %379 = vmatprep.mubr.bf16.mxu0 %v1713_v2 }
  0x2b   : > { %419 = vmatprep.mubr.bf16.mxu1 %v1713_v2 }
  0x2c   : > { %610 = vperm.xlu1 %1538, %v580_v53  }
  0x30   : > { %613 = vperm.xlu1 %1538, %v581_v55  }
  0x31   : > { %1467 = vmatmul.mubr.msk.bf16.gmra.mrb[12].mxu0 %vm292_vm0, %v263_v52 }
  0x32   : > { %1471 = vmatmul.mubr.msk.bf16.gmra.mrb[12].mxu1 %vm292_vm0, %v267_v54  ;;  %v639_v54 = vlaneseq }
  0x34   : > { %616 = vperm.xlu1 %1538, %v582_v56   ;;  %v1951_v56 = vshrl.u32 %v639_v54, 7 }
  0x36   : > { %3445 = vst [vmem:[#allocation8_spill] sm:$0xff] %v1951_v56 }
  0x38   : > { %622 = vperm.xlu1 %1538, %v584_v57  }
  0x3c   : > { %628 = vperm.xlu1 %1538, %v586_v58  }
  0x97   : > { %v1931_v45 = vpop.permute.xlu1 %595 }
  0x9a   : > { %v1943_v51 = vpop.permute.xlu0 %592 }
  0x9b   : > { %v1933_v46 = vpop.permute.xlu1 %598 }
  0x9e   : > { %v1947_v53 = vpop.permute.xlu0 %619 }
  0x9f   : > { %v1935_v47 = vpop.permute.xlu1 %601 }
  0xa2   : > { %v1953_v57 = vpop.permute.xlu0 %625 }
  0xa3   : > { %v1937_v48 = vpop.permute.xlu1 %604  ;;  %3446 = vst [vmem:[#allocation9_spill] sm:$0xff] %v1953_v57 }
  0xa4   : > { %3441 = vst [vmem:[#allocation4_spill] sm:$0xff] %v1937_v48 }
  0xa7   : > { %v1939_v49 = vpop.permute.xlu1 %607 }
  0xa8   : > { %3442 = vst [vmem:[#allocation5_spill] sm:$0xff] %v1939_v49 }
  0xab   : > { %v1941_v50 = vpop.permute.xlu1 %610 }
  0xac   : > { %3443 = vst [vmem:[#allocation6_spill] sm:$0xff] %v1941_v50 }
  0xaf   : > { %v1945_v52 = vpop.permute.xlu1 %613 }
  0xb0   : > { %3444 = vst [vmem:[#allocation7_spill] sm:$0xff] %v1945_v52 }
  0xb3   : > { %v1949_v55 = vpop.permute.xlu1 %616 }
  0xb7   : > { %v1955_v58 = vpop.permute.xlu1 %622 }
  0xb8   : > { %3447 = vst [vmem:[#allocation10_spill] sm:$0xff] %v1955_v58 }
  0xec   : > { %v1833_v59 = vpop.f32.mrb[0].mxu0 }
  0xed   : > { %v1835_v60 = vpop.f32.mrb[0].mxu1  ;;  %v1837_v61 = vpop.f32.mrb[1].mxu0 }
  0xee   : > { %v1839_v62 = vpop.f32.mrb[1].mxu1  ;;  %v1841_v63 = vpop.f32.mrb[2].mxu0  ;;  %v430_v0 = vmax.f32 %v1833_v59, %v1837_v61 }
  0xef   : > { %v1845_v1 = vpop.f32.mrb[2].mxu1  ;;  %v1847_v2 = vpop.f32.mrb[3].mxu0  ;;  %v454_v3 = vmax.f32 %v1835_v60, %v1839_v62 }
  0xf0   : > { %v1851_v4 = vpop.f32.mrb[3].mxu1  ;;  %431 = vmax.xlane.f32.xlu0 %v430_v0  ;;  %v433_v5 = vmax.f32 %v1841_v63, %v1847_v2  ;;  %v641_v0 = vsub.s32 0, %v1951_v56 }
  0xf1   : > { %v457_v6 = vmax.f32 %v1845_v1, %v1851_v4 }
  0xf3   : > { %458 = vmax.xlane.f32.xlu1 %v457_v6  ;;  %v1962_v6 = vpop.permute.xlu0 %631 }
  0xf4   : > { %v1857_v7 = vpop.f32.mrb[4].mxu0  ;;  %455 = vmax.xlane.f32.xlu0 %v454_v3  ;;  %v645_v3 = vsub.s32 1, %v1951_v56  ;;  %3448 = vst [vmem:[#allocation11_spill] sm:$0xff] %v1962_v6 }
  0xf5   : > { %v1859_v8 = vpop.f32.mrb[5].mxu0  ;;  %v1861_v9 = vpop.f32.mrb[4].mxu1 }
  0xf6   : > { %v1863_v10 = vpop.f32.mrb[6].mxu0  ;;  %v436_v11 = vmax.f32 %v1857_v7, %v1859_v8  ;;  %v1867_v12 = vpop.f32.mrb[5].mxu1 }
  0xf7   : > { %v1869_v13 = vpop.f32.mrb[7].mxu0  ;;  %v1871_v14 = vpop.f32.mrb[6].mxu1  ;;  %v460_v15 = vmax.f32 %v1861_v9, %v1867_v12 }
  0xf8   : > { %437 = vmax.xlane.f32.xlu1 %v436_v11  ;;  %434 = vmax.xlane.f32.xlu0 %v433_v5  ;;  %v439_v16 = vmax.f32 %v1863_v10, %v1869_v13  ;;  %v1877_v17 = vpop.f32.mrb[7].mxu1  ;;  %v590_v5 = vld [vmem:[%s3343_s2] sm:$0x3] }
  0xf9   : > { %v463_v18 = vmax.f32 %v1871_v14, %v1877_v17  ;;  %v1964_v11 = vrot.slane %v590_v5, %v641_v0  ;;  %v2033_v0 = vstv %s1970_s14 }
  0xfa   : > { %3461 = vst [vmem:[#allocation20_spill] sm:$0xff] %v2033_v0 }
  0xfb   : > { %vm3351_vm1 = vcmp.eq.s32.totalorder %v1931_v45, %v1964_v11  ;;  %vm3347_vm4 = vcmp.eq.s32.totalorder %v1943_v51, %v1964_v11  ;;  %vm3353_vm7 = vcmp.eq.s32.totalorder %v1935_v47, %v1964_v11  ;;  %vm3352_vm12 = vcmp.eq.s32.totalorder %v1947_v53, %v1964_v11 }
  0xfc   : > { %v1881_v19 = vpop.f32.mrb[8].mxu0  ;;  %440 = vmax.xlane.f32.xlu1 %v439_v16  ;;  %461 = vmax.xlane.f32.xlu0 %v460_v15  ;;  %v1966_v15 = vrot.slane %v590_v5, %v645_v3  ;;  %v1968_v16 = vpop.permute.xlu1 %628  ;;  %vm2012_vm9 = vmxor %vm3351_vm1, %vm3395_vm8  ;;  %vm3354_vm13 = vcmp.eq.s32.totalorder %v1949_v55, %v1964_v11 }
  0xfd   : > { %v1883_v20 = vpop.f32.mrb[9].mxu0  ;;  %v1885_v21 = vpop.f32.mrb[8].mxu1  ;;  %3449 = vst [vmem:[#allocation12_spill] sm:$0xff] %v1968_v16  ;;  %vm2041_vm14 = vmxor %vm3347_vm4, %vm3395_vm8 }
  0xfe   : > { %v1887_v22 = vpop.f32.mrb[10].mxu0  ;;  %v442_v23 = vmax.f32 %v1881_v19, %v1883_v20  ;;  %v1891_v24 = vpop.f32.mrb[9].mxu1  ;;  %vm3348_vm2 = vcmp.eq.s32.totalorder %v1931_v45, %v1966_v15  ;;  %vm3349_vm6 = vcmp.eq.s32.totalorder %v1943_v51, %v1966_v15  ;;  %vm3358_vm10 = vcmp.eq.s32.totalorder %v1935_v47, %v1966_v15  ;;  %vm2102_vm1 = vmxor %vm3354_vm13, %vm3395_vm8 }
  0xff   : > { %v1893_v25 = vpop.f32.mrb[11].mxu0  ;;  %v1895_v26 = vpop.f32.mrb[10].mxu1  ;;  %v466_v27 = vmax.f32 %v1885_v21, %v1891_v24  ;;  %vm2024_vm11 = vmxor %vm3348_vm2, %vm3395_vm8  ;;  %vm3365_vm15 = vcmp.eq.s32.totalorder %v1947_v53, %v1966_v15  ;;  %vm3485_vm13 = vcmp.eq.s32.totalorder %v1949_v55, %v1966_v15 }
 0x100   : > { %464 = vmax.xlane.f32.xlu1 %v463_v18  ;;  %443 = vmax.xlane.f32.xlu0 %v442_v23  ;;  %v445_v28 = vmax.f32 %v1887_v22, %v1893_v25  ;;  %v1901_v29 = vpop.f32.mrb[11].mxu1  ;;  %vm2056_vm4 = vmxor %vm3349_vm6, %vm3395_vm8 }
 0x101   : > { %v469_v30 = vmax.f32 %v1895_v26, %v1901_v29  ;;  %vm2075_vm6 = vmxor %vm3352_vm12, %vm3395_vm8 }
 0x102   : > { %vm2094_vm12 = vmxor %vm3353_vm7, %vm3395_vm8 }
 0x103   : > { %vm2115_vm7 = vmxor %vm3358_vm10, %vm3395_vm8 }
 0x104   : > { %v1905_v31 = vpop.f32.mrb[12].mxu0  ;;  %446 = vmax.xlane.f32.xlu1 %v445_v28  ;;  %467 = vmax.xlane.f32.xlu0 %v466_v27  ;;  %vm2129_vm2 = vmxor %vm3365_vm15, %vm3395_vm8  ;;  %vm3491_vm15 = vcmp.eq.s32.totalorder %v1933_v46, %v1964_v11 }
 0x105   : > { %v1907_v32 = vpop.f32.mrb[13].mxu0  ;;  %v1909_v33 = vpop.f32.mrb[12].mxu1  ;;  %vm2144_vm3 = vmxor %vm3485_vm13, %vm3395_vm8  ;;  %vm3495_vm13 = vcmp.eq.s32.totalorder %v1933_v46, %v1966_v15 }
 0x106   : > { %v1911_v34 = vpop.f32.mrb[14].mxu0  ;;  %v448_v35 = vmax.f32 %v1905_v31, %v1907_v32  ;;  %v1915_v36 = vpop.f32.mrb[13].mxu1  ;;  %vm2161_vm5 = vmxor %vm3491_vm15, %vm3395_vm8 }
 0x107   : > { %v1917_v37 = vpop.f32.mrb[15].mxu0  ;;  %v1919_v38 = vpop.f32.mrb[14].mxu1  ;;  %v472_v39 = vmax.f32 %v1909_v33, %v1915_v36 }
 0x108   : > { %470 = vmax.xlane.f32.xlu1 %v469_v30  ;;  %449 = vmax.xlane.f32.xlu0 %v448_v35  ;;  %v451_v40 = vmax.f32 %v1911_v34, %v1917_v37  ;;  %v1925_v41 = vpop.f32.mrb[15].mxu1 }
 0x109   : > { %v475_v42 = vmax.f32 %v1919_v38, %v1925_v41 }
 0x10c   : > { %452 = vmax.xlane.f32.xlu1 %v451_v40  ;;  %473 = vmax.xlane.f32.xlu0 %v472_v39  ;;  %v1998_v40 = vand.u32 127, %v639_v54 }
 0x10e   : > { %3454 = vst [vmem:[#allocation17_spill] sm:$0xff] %v1998_v40  ;;  %vm2086_vm0 = vcmp.lt.s32.totalorder %v1998_v40, %v2033_v0 }
 0x10f   : > { %vm755_vm15 = vmand %vm2041_vm14, %vm2086_vm0 }
 0x110   : > { %476 = vmax.xlane.f32.xlu1 %v475_v42 }
 0x121   : > { %634 = vperm.xlu1 %1538, %v588_v43  }
 0x122   : > { %637 = vperm.xlu0 %1537, %v589_v44  }
 0x17d   : > { %v432_v18 = vpop.xlane.xlu0 %431 }
 0x17e   : > { %v1973_v23 = vsub.f32 %v1833_v59, %v432_v18  ;;  %v1976_v27 = vsub.f32 %v1837_v61, %v432_v18 }
 0x180   : > { %3450 = vst [vmem:[#allocation13_spill] sm:$0xff] %v1973_v23  ;;  %3451 = vst [vmem:[#allocation14_spill] sm:$0xff] %v1976_v27  ;;  %v510_v28 = vmul.f32 1.442695, %v1973_v23  ;;  %v512_v59 = vmul.f32 1.442695, %v1976_v27  ;;  %v459_v30 = vpop.xlane.xlu1 %458 }
 0x181   : > { %v1993_v61 = vsub.f32 %v1845_v1, %v459_v30  ;;  %v1996_v35 = vsub.f32 %v1851_v4, %v459_v30  ;;  %v456_v39 = vpop.xlane.xlu0 %455  ;;  %v3492_v27 = vmov 0 }
 0x182   : > { %1545 = vpow2.f32 %v510_v28  ;;  %v2003_v42 = vsub.f32 %v1835_v60, %v456_v39  ;;  %v2006_v43 = vsub.f32 %v1839_v62, %v456_v39  ;;  %v2048_v28 = vadd.s32 128, %v1998_v40 }
 0x183   : > { %3452 = vst [vmem:[#allocation15_spill] sm:$0xff] %v1993_v61  ;;  %3453 = vst [vmem:[#allocation16_spill] sm:$0xff] %v1996_v35  ;;  %1547 = vpow2.f32 %v512_v59  ;;  %v546_v4 = vmul.f32 1.442695, %v1993_v61  ;;  %v548_v60 = vmul.f32 1.442695, %v1996_v35 }
 0x184   : > { %3455 = vst [vmem:[#allocation18_spill] sm:$0xff] %v2003_v42  ;;  %3456 = vst [vmem:[#allocation19_spill] sm:$0xff] %v2006_v43  ;;  %v542_v44 = vmul.f32 1.442695, %v2003_v42  ;;  %v544_v54 = vmul.f32 1.442695, %v2006_v43  ;;  %vm2136_vm10 = vcmp.lt.s32.totalorder %v2048_v28, %v2033_v0 }
 0x185   : > { %1549 = vpow2.f32 %v546_v4  ;;  %v438_v5 = vpop.xlane.xlu1 %437  ;;  %v435_v18 = vpop.xlane.xlu0 %434  ;;  %3464 = vst [vmem:[#allocation21_spill] sm:$0xff] %v2048_v28  ;;  %v3493_v27 = vsel %vm2161_vm5, 4294967295, %v3492_v27  ;;  %vm2184_vm5 = vmxor %vm3495_vm13, %vm3395_vm8 }
 0x186   : > { %1551 = vpow2.f32 %v548_v60  ;;  %v2061_v30 = vsub.f32 %v1857_v7, %v438_v5  ;;  %v2064_v39 = vsub.f32 %v1859_v8, %v438_v5  ;;  %v2067_v4 = vsub.f32 %v1841_v63, %v435_v18 }
 0x187   : > { %1553 = vpow2.f32 %v542_v44  ;;  %v2082_v7 = vsub.f32 %v1847_v2, %v435_v18  ;;  %v3475_v8 = vmov 0  ;;  %v3479_v18 = vmov 0 }
 0x188   : > { %3467 = vst [vmem:[#allocation22_spill] sm:$0xff] %v2061_v30  ;;  %3468 = vst [vmem:[#allocation23_spill] sm:$0xff] %v2064_v39  ;;  %v3476_v8 = vsel %vm2094_vm12, 4294967295, %v3475_v8  ;;  %1555 = vpow2.f32 %v544_v54  ;;  %v518_v60 = vmul.f32 1.442695, %v2061_v30  ;;  %v3480_v18 = vsel %vm2115_vm7, 4294967295, %v3479_v18 }
 0x189   : > { %3469 = vst [vmem:[#allocation24_spill] sm:$0xff] %v2067_v4  ;;  %3472 = vst [vmem:[#allocation25_spill] sm:$0xff] %v2082_v7  ;;  %v520_v44 = vmul.f32 1.442695, %v2064_v39  ;;  %v514_v5 = vmul.f32 1.442695, %v2067_v4  ;;  %v441_v30 = vpop.xlane.xlu1 %440  ;;  %v462_v61 = vpop.xlane.xlu0 %461  ;;  %vm3502_vm12 = vcmp.eq.s32.totalorder %v1939_v49, %v1964_v11 }
 0x18a   : > { %v516_v39 = vmul.f32 1.442695, %v2082_v7  ;;  %1557 = vpow2.f32 %v518_v60  ;;  %v2149_v42 = vsub.f32 %v1863_v10, %v441_v30  ;;  %v2152_v7 = vsub.f32 %v1869_v13, %v441_v30  ;;  %vm2232_vm13 = vmxor %vm3502_vm12, %vm3395_vm8 }
 0x18b   : > { %v2155_v0 = vsub.f32 %v1861_v9, %v462_v61  ;;  %1559 = vpow2.f32 %v520_v44  ;;  %v2172_v9 = vsub.f32 %v1867_v12, %v462_v61  ;;  %v3496_v13 = vmov 0 }
 0x18c   : > { %3488 = vst [vmem:[#allocation26_spill] sm:$0xff] %v2149_v42  ;;  %3489 = vst [vmem:[#allocation27_spill] sm:$0xff] %v2152_v7  ;;  %v2178_v10 = vpop.eup %1545  ;;  %v3497_v13 = vsel %vm2184_vm5, 4294967295, %v3496_v13  ;;  %1561 = vpow2.f32 %v514_v5  ;;  %v522_v12 = vmul.f32 1.442695, %v2149_v42 }
 0x18d   : > { %3490 = vst [vmem:[#allocation28_spill] sm:$0xff] %v2155_v0  ;;  %3494 = vst [vmem:[#allocation29_spill] sm:$0xff] %v2172_v9  ;;  %v524_v61 = vmul.f32 1.442695, %v2152_v7  ;;  %v550_v30 = vmul.f32 1.442695, %v2155_v0  ;;  %v2197_v60 = vpop.eup %1547  ;;  %1563 = vpow2.f32 %v516_v39  ;;  %v465_v5 = vpop.xlane.xlu1 %464 }
 0x18e   : > { %3498 = vst [vmem:[#allocation30_spill] sm:$0xff] %v2197_v60  ;;  %v552_v44 = vmul.f32 1.442695, %v2172_v9  ;;  %v444_v23 = vpop.xlane.xlu0 %443  ;;  %v787_v42 = vsel %vm755_vm15, %v2178_v10, 0.0  ;;  %1565 = vpow2.f32 %v522_v12  ;;  %v2210_v3 = vsub.f32 %v1871_v14, %v465_v5  ;;  %vm756_vm15 = vmand %vm2056_vm4, %vm2136_vm10 }
 0x18f   : > { %v2213_v39 = vsub.f32 %v1877_v17, %v465_v5  ;;  %v2216_v9 = vsub.f32 %v1881_v19, %v444_v23  ;;  %v2226_v12 = vpop.eup %1549  ;;  %v3503_v14 = vmov 0  ;;  %vm3505_vm4 = vcmp.eq.s32.totalorder %v1955_v58, %v1964_v11 }
 0x190   : > { %3499 = vst [vmem:[#allocation31_spill] sm:$0xff] %v2210_v3  ;;  %v3504_v14 = vsel %vm2232_vm13, 4294967295, %v3503_v14  ;;  %vm2242_vm5 = vmxor %vm3505_vm4, %vm3395_vm8  ;;  %1567 = vpow2.f32 %v524_v61  ;;  %v2249_v19 = vsub.f32 %v1883_v20, %v444_v23  ;;  %v788_v59 = vsel %vm756_vm15, %v2197_v60, 0.0  ;;  %v2256_v5 = vpop.eup %1551 }
 0x191   : > { %3500 = vst [vmem:[#allocation32_spill] sm:$0xff] %v2213_v39  ;;  %3501 = vst [vmem:[#allocation33_spill] sm:$0xff] %v2216_v9  ;;  %vm3509_vm4 = vcmp.eq.s32.totalorder %v1939_v49, %v1966_v15  ;;  %v3510_v0 = vmov 0  ;;  %1569 = vpow2.f32 %v550_v30  ;;  %v554_v20 = vmul.f32 1.442695, %v2210_v3  ;;  %v2275_v7 = vpop.eup %1553 }
 0x192   : > { %3508 = vst [vmem:[#allocation34_spill] sm:$0xff] %v2249_v19  ;;  %vm2262_vm7 = vmxor %vm3509_vm4, %vm3395_vm8  ;;  %v556_v23 = vmul.f32 1.442695, %v2213_v39  ;;  %v526_v61 = vmul.f32 1.442695, %v2216_v9  ;;  %vm3513_vm4 = vcmp.eq.s32.totalorder %v1937_v48, %v1964_v11  ;;  %1571 = vpow2.f32 %v552_v44  ;;  %v447_v39 = vpop.xlane.xlu1 %446  ;;  %v468_v3 = vpop.xlane.xlu0 %467 }
 0x193   : > { %v3511_v0 = vsel %vm2262_vm7, 4294967295, %v3510_v0  ;;  %vm773_vm15 = vmand %vm2075_vm6, %vm2086_vm0  ;;  %3512 = vst [vmem:[#allocation35_spill] sm:$0xff] %v2275_v7  ;;  %vm3516_vm7 = vcmp.eq.s32.totalorder %v1955_v58, %v1966_v15  ;;  %v528_v30 = vmul.f32 1.442695, %v2249_v19  ;;  %v819_v9 = vadd.f32 %v788_v59, %v787_v42  ;;  %v2297_v56 = vpop.eup %1555 }
 0x194   : > { %vm2281_vm12 = vmxor %vm3513_vm4, %vm3395_vm8  ;;  %v805_v40 = vsel %vm773_vm15, %v2226_v12, 0.0  ;;  %vm3519_vm6 = vcmp.eq.s32.totalorder %v1953_v57, %v1964_v11  ;;  %v3520_v60 = vmov 0  ;;  %1573 = vpow2.f32 %v554_v20  ;;  %v2342_v54 = vpop.eup %1557 }
 0x195   : > { %vm2291_vm13 = vmxor %vm3516_vm7, %vm3395_vm8  ;;  %v2308_v44 = vsub.f32 %v1887_v22, %v447_v39  ;;  %v2311_v42 = vsub.f32 %v1893_v25, %v447_v39  ;;  %v2314_v59 = vsub.f32 %v1885_v21, %v468_v3  ;;  %vm3525_vm15 = vcmp.eq.s32.totalorder %v1953_v57, %v1966_v15  ;;  %820 = vadd.xlane.f32.xlu1 %v819_v9  ;;  %v2359_v39 = vpop.eup %1559 }
 0x196   : > { %vm2303_vm4 = vmxor %vm3519_vm6, %vm3395_vm8  ;;  %v3526_v20 = vmov 0  ;;  %1575 = vpow2.f32 %v556_v23  ;;  %v2329_v22 = vsub.f32 %v1891_v24, %v468_v3  ;;  %v3532_v24 = vmov 0  ;;  %v450_v19 = vpop.xlane.xlu0 %449 }
 0x197   : > { %v3521_v60 = vsel %vm2303_vm4, 4294967295, %v3520_v60  ;;  %3522 = vst [vmem:[#allocation36_spill] sm:$0xff] %v2308_v44  ;;  %3523 = vst [vmem:[#allocation37_spill] sm:$0xff] %v2311_v42  ;;  %1577 = vpow2.f32 %v526_v61  ;;  %v530_v2 = vmul.f32 1.442695, %v2308_v44  ;;  %v3536_v23 = vmov 0  ;;  %v471_v44 = vpop.xlane.xlu1 %470 }
 0x198   : > { %3524 = vst [vmem:[#allocation38_spill] sm:$0xff] %v2314_v59  ;;  %vm774_vm7 = vmand %vm2129_vm2, %vm2136_vm10  ;;  %v532_v9 = vmul.f32 1.442695, %v2311_v42  ;;  %v558_v3 = vmul.f32 1.442695, %v2314_v59  ;;  %1579 = vpow2.f32 %v528_v30  ;;  %v3540_v30 = vmov 0 }
 0x199   : > { %vm2324_vm6 = vmxor %vm3525_vm15, %vm3395_vm8  ;;  %3528 = vst [vmem:[#allocation39_spill] sm:$0xff] %v2329_v22  ;;  %v806_v21 = vsel %vm774_vm7, %v2256_v5, 0.0  ;;  %vm3530_vm15 = vnez %v3476_v8  ;;  %v560_v61 = vmul.f32 1.442695, %v2329_v22  ;;  %1581 = vpow2.f32 %v530_v2 }
 0x19a   : > { %v3527_v20 = vsel %vm2324_vm6, 4294967295, %v3526_v20  ;;  %vm3529_vm2 = vmand %vm2102_vm1, %vm2086_vm0  ;;  %vm3531_vm6 = vcmp.eq.s32.totalorder %v1937_v48, %v1966_v15  ;;  %vm3534_vm1 = vnez %v3480_v18  ;;  %v846_v42 = vadd.f32 %v806_v21, %v805_v40 }
 0x19b   : > { %v803_v25 = vsel %vm3529_vm2, %v2275_v7, 0.0  ;;  %vm2348_vm4 = vmxor %vm3531_vm6, %vm3395_vm8  ;;  %vm3535_vm6 = vcmp.eq.s32.totalorder %v1968_v16, %v1964_v11  ;;  %v2376_v7 = vpop.eup %1561  ;;  %v2387_v43 = vsub.f32 %v1895_v26, %v471_v44  ;;  %v2390_v21 = vsub.f32 %v1901_v29, %v471_v44 }
 0x19c   : > { %v3533_v24 = vsel %vm2348_vm4, 4294967295, %v3532_v24  ;;  %vm2365_vm2 = vmxor %vm3535_vm6, %vm3395_vm8  ;;  %vm3539_vm6 = vcmp.eq.s32.totalorder %v1962_v6, %v1964_v11  ;;  %v2396_v22 = vpop.eup %1563  ;;  %v3546_v2 = vmov 0  ;;  %1583 = vpow2.f32 %v532_v9  ;;  %847 = vadd.xlane.f32.xlu1 %v846_v42 }
 0x19d   : > { %v3537_v23 = vsel %vm2365_vm2, 4294967295, %v3536_v23  ;;  %vm3538_vm7 = vmand %vm2144_vm3, %vm2136_vm10  ;;  %3542 = vst [vmem:[#allocation40_spill] sm:$0xff] %v2387_v43  ;;  %vm3544_vm3 = vnez %v3493_v27  ;;  %v2407_v26 = vsub.f32 %v1905_v31, %v450_v19  ;;  %v2410_v29 = vsub.f32 %v1907_v32, %v450_v19 }
 0x19e   : > { %v804_v59 = vsel %vm3538_vm7, %v2297_v56, 0.0  ;;  %vm2382_vm14 = vmxor %vm3539_vm6, %vm3395_vm8  ;;  %3543 = vst [vmem:[#allocation41_spill] sm:$0xff] %v2390_v21  ;;  %vm3545_vm6 = vcmp.eq.s32.totalorder %v1962_v6, %v1966_v15  ;;  %vm3554_vm2 = vcmp.eq.s32.totalorder %v1968_v16, %v1966_v15  ;;  %v3555_v31 = vmov 0 }
 0x19f   : > { %v3541_v30 = vsel %vm2382_vm14, 4294967295, %v3540_v30  ;;  %v843_v40 = vadd.f32 %v804_v59, %v803_v25  ;;  %vm2402_vm14 = vmxor %vm3545_vm6, %vm3395_vm8  ;;  %3548 = vst [vmem:[#allocation42_spill] sm:$0xff] %v2407_v26  ;;  %vm3551_vm6 = vnez %v3497_v13  ;;  %v2422_v59 = vpop.eup %1565  ;;  %1585 = vpow2.f32 %v558_v3 }
 0x1a0   : > { %v3547_v2 = vsel %vm2402_vm14, 4294967295, %v3546_v2  ;;  %3549 = vst [vmem:[#allocation43_spill] sm:$0xff] %v2410_v29  ;;  %vm3550_vm7 = vmand %vm2012_vm9, %vm2086_vm0  ;;  %vm3553_vm14 = vmmov 1   ;;  %v562_v32 = vmul.f32 1.442695, %v2387_v43  ;;  %v2444_v42 = vpop.eup %1567  ;;  %v3560_v25 = vmov 0 }
 0x1a1   : > { %v789_v44 = vsel %vm3550_vm7, %v2376_v7, 0.0  ;;  %3552 = vst [vmem:[#allocation44_spill] sm:$0xff] %v2422_v59  ;;  %vm2428_vm4 = vmxor %vm3554_vm2, %vm3553_vm14  ;;  %844 = vadd.xlane.f32.xlu0 %v843_v40  ;;  %v564_v1 = vmul.f32 1.442695, %v2390_v21  ;;  %vm3559_vm7 = vcmp.eq.s32.totalorder %v1945_v52, %v1964_v11  ;;  %1587 = vpow2.f32 %v560_v61  ;;  %v453_v40 = vpop.xlane.xlu1 %452  ;;  %v474_v21 = vpop.xlane.xlu0 %473 }
 0x1a2   : > { %v3556_v31 = vsel %vm2428_vm4, 4294967295, %v3555_v31  ;;  %vm3557_vm9 = vmand %vm2024_vm11, %vm2136_vm10  ;;  %3558 = vst [vmem:[#allocation45_spill] sm:$0xff] %v2444_v42  ;;  %v534_v62 = vmul.f32 1.442695, %v2407_v26  ;;  %v536_v9 = vmul.f32 1.442695, %v2410_v29  ;;  %v2460_v43 = vpop.eup %1569  ;;  %1589 = vpow2.f32 %v562_v32 }
 0x1a3   : > { %v790_v19 = vsel %vm3557_vm9, %v2396_v22, 0.0  ;;  %vm2450_vm8 = vmxor %vm3559_vm7, %vm3553_vm14  ;;  %vm3562_vm9 = vcmp.eq.s32.totalorder %v1945_v52, %v1966_v15  ;;  %v3563_v61 = vmov 0  ;;  %v2477_v29 = vsub.f32 %v1909_v33, %v474_v21  ;;  %v2483_v26 = vpop.eup %1571 }
 0x1a4   : > { %v3561_v25 = vsel %vm2450_vm8, 4294967295, %v3560_v25  ;;  %v822_v3 = vadd.f32 %v790_v19, %v789_v44  ;;  %vm2466_vm7 = vmxor %vm3562_vm9, %vm3553_vm14  ;;  %v2471_v44 = vsub.f32 %v1911_v34, %v453_v40  ;;  %v2474_v19 = vsub.f32 %v1917_v37, %v453_v40 }
 0x1a5   : > { %v3564_v61 = vsel %vm2466_vm7, 4294967295, %v3563_v61  ;;  %3567 = vst [vmem:[#allocation48_spill] sm:$0xff] %v2477_v29  ;;  %vm3568_vm11 = vnez %v3504_v14  ;;  %vm3569_vm9 = vcmp.eq.s32.totalorder %v1941_v50, %v1964_v11  ;;  %v3570_v34 = vmov 0  ;;  %vm3573_vm2 = vmand %vm3530_vm15, %vm2086_vm0 }
 0x1a6   : > { %3565 = vst [vmem:[#allocation46_spill] sm:$0xff] %v2471_v44  ;;  %3566 = vst [vmem:[#allocation47_spill] sm:$0xff] %v2474_v19  ;;  %1591 = vpow2.f32 %v564_v1  ;;  %v2494_v37 = vsub.f32 %v1915_v36, %v474_v21  ;;  %v793_v33 = vsel %vm3573_vm2, %v2422_v59, 0.0  ;;  %v2512_v36 = vpop.eup %1573  ;;  %vm3576_vm4 = vcmp.eq.s32.totalorder %v1941_v50, %v1966_v15  ;;  %823 = vadd.xlane.f32.xlu0 %v822_v3  ;;  %v477_v3 = vpop.xlane.xlu1 %476 }
 0x1a7   : > { %vm2489_vm7 = vmxor %vm3569_vm9, %vm3553_vm14  ;;  %1593 = vpow2.f32 %v534_v62  ;;  %v538_v18 = vmul.f32 1.442695, %v2471_v44  ;;  %v540_v21 = vmul.f32 1.442695, %v2474_v19  ;;  %v566_v1 = vmul.f32 1.442695, %v2477_v29  ;;  %v2529_v40 = vpop.eup %1575 }
 0x1a8   : > { %v3571_v34 = vsel %vm2489_vm7, 4294967295, %v3570_v34  ;;  %3572 = vst [vmem:[#allocation49_spill] sm:$0xff] %v2494_v37  ;;  %vm3574_vm9 = vmand %vm3534_vm1, %vm2136_vm10  ;;  %vm3575_vm7 = vnez %v3511_v0  ;;  %1595 = vpow2.f32 %v536_v9  ;;  %vm3580_vm2 = vnez %v3521_v60  ;;  %v2542_v29 = vpop.eup %1577 }
 0x1a9   : > { %v794_v32 = vsel %vm3574_vm9, %v2444_v42, 0.0  ;;  %vm766_vm8 = vmand %vm3575_vm7, %vm2136_vm10  ;;  %v568_v42 = vmul.f32 1.442695, %v2494_v37  ;;  %1597 = vpow2.f32 %v538_v18  ;;  %v2551_v9 = vsub.f32 %v1919_v38, %v477_v3  ;;  %v2560_v60 = vpop.eup %1579 }
 0x1aa   : > { %vm2518_vm15 = vmxor %vm3576_vm4, %vm3553_vm14  ;;  %v828_v59 = vadd.f32 %v794_v32, %v793_v33  ;;  %v2554_v33 = vsub.f32 %v1925_v41, %v477_v3  ;;  %1599 = vpow2.f32 %v540_v21  ;;  %v2568_v38 = vpop.eup %1581  ;;  %v2602_v35 = vpop.permute.xlu1 %634  ;;  %vm3597_vm7 = vnez %v3561_v25 }
 0x1ab   : > { %vm3579_vm4 = vmand %vm3544_vm3, %vm2086_vm0  ;;  %3582 = vst [vmem:[#allocation50_spill] sm:$0xff] %v2551_v9  ;;  %vm3584_vm3 = vnez %v3527_v20  ;;  %1601 = vpow2.f32 %v566_v1  ;;  %v570_v41 = vmul.f32 1.442695, %v2551_v9 }
 0x1ac   : > { %v791_v62 = vsel %vm3579_vm4, %v2342_v54, 0.0  ;;  %vm777_vm9 = vmand %vm3580_vm2, %vm2086_vm0  ;;  %3583 = vst [vmem:[#allocation51_spill] sm:$0xff] %v2554_v33  ;;  %829 = vadd.xlane.f32.xlu1 %v828_v59  ;;  %v572_v20 = vmul.f32 1.442695, %v2554_v33  ;;  %vm3586_vm2 = vnez %v3537_v23  ;;  %v2576_v59 = vpop.eup %1583  ;;  %1603 = vpow2.f32 %v568_v42 }
 0x1ad   : > { %vm3581_vm1 = vmand %vm3551_vm6, %vm2136_vm10  ;;  %v809_v32 = vsel %vm777_vm9, %v2512_v36, 0.0  ;;  %vm3585_vm6 = vnez %v3533_v24  ;;  %v2600_v17 = vpop.eup %1585  ;;  %1605 = vpow2.f32 %v570_v41  ;;  %3591 = vst [vmem:[#allocation52_spill] sm:$0xff] %v2602_v35 }
 0x1ae   : > { %v792_v27 = vsel %vm3581_vm1, %v2359_v39, 0.0  ;;  %vm778_vm4 = vmand %vm3584_vm3, %vm2136_vm10  ;;  %vm3590_vm1 = vnez %v3541_v30  ;;  %v2608_v14 = vpop.eup %1587  ;;  %1607 = vpow2.f32 %v572_v20 }
 0x1af   : > { %v825_v13 = vadd.f32 %v792_v27, %v791_v62  ;;  %v810_v18 = vsel %vm778_vm4, %v2529_v40, 0.0  ;;  %vm3587_vm3 = vmand %vm2242_vm5, %vm2086_vm0  ;;  %v2610_v27 = vpop.permute.xlu0 %637 }
 0x1b0   : > { %v852_v3 = vadd.f32 %v810_v18, %v809_v32  ;;  %v807_v21 = vsel %vm3587_vm3, %v2460_v43, 0.0  ;;  %vm3588_vm4 = vmand %vm2291_vm13, %vm2136_vm10  ;;  %vm3592_vm13 = vnez %v3547_v2  ;;  %3593 = vst [vmem:[#allocation53_spill] sm:$0xff] %v2610_v27  ;;  %v2622_v32 = vpop.eup %1589  ;;  %vm3411_vm3 = vcmp.eq.s32.totalorder %v2602_v35, %v1964_v11 }
 0x1b1   : > { %826 = vadd.xlane.f32.xlu0 %v825_v13  ;;  %v808_v1 = vsel %vm3588_vm4, %v2483_v26, 0.0  ;;  %vm3589_vm9 = vmand %vm3568_vm11, %vm2086_vm0  ;;  %v798_v13 = vsel %vm766_vm8, %v2576_v59, 0.0  ;;  %vm3594_vm11 = vnez %v3556_v31  ;;  %v2640_v20 = vpop.eup %1591 }
 0x1b2   : > { %v797_v42 = vsel %vm3589_vm9, %v2568_v38, 0.0  ;;  %vm781_vm5 = vmand %vm3590_vm1, %vm2086_vm0  ;;  %853 = vadd.xlane.f32.xlu1 %v852_v3  ;;  %v849_v62 = vadd.f32 %v808_v1, %v807_v21  ;;  %v2654_v24 = vpop.eup %1593  ;;  %vm3600_vm1 = vnez %v3571_v34 }
 0x1b3   : > { %v834_v18 = vadd.f32 %v798_v13, %v797_v42  ;;  %vm3595_vm4 = vmand %vm2281_vm12, %vm2086_vm0  ;;  %v813_v28 = vsel %vm781_vm5, %v2622_v32, 0.0  ;;  %vm3598_vm12 = vnez %v3564_v61  ;;  %v2668_v3 = vpop.eup %1595 }
 0x1b4   : > { %v795_v41 = vsel %vm3595_vm4, %v2542_v29, 0.0  ;;  %vm3596_vm8 = vmand %vm3585_vm6, %vm2136_vm10  ;;  %vm3440_vm4 = vcmp.eq.s32.totalorder %v2610_v27, %v1964_v11  ;;  %vm3439_vm6 = vcmp.eq.s32.totalorder %v2610_v27, %v1966_v15  ;;  %v2676_v2 = vpop.eup %1597 }
 0x1b5   : > { %v796_v0 = vsel %vm3596_vm8, %v2560_v60, 0.0  ;;  %850 = vadd.xlane.f32.xlu0 %v849_v62  ;;  %vm3599_vm8 = vmand %vm3592_vm13, %vm2136_vm10  ;;  %vm676_vm13 = vcmp.eq.s32.totalorder %v2602_v35, %v1966_v15 }
 0x1b6   : > { %v814_v30 = vsel %vm3599_vm8, %v2640_v20, 0.0  ;;  %835 = vadd.xlane.f32.xlu1 %v834_v18  ;;  %v831_v21 = vadd.f32 %v796_v0, %v795_v41  ;;  %vm2684_vm8 = vmxor %vm3411_vm3, %vm3553_vm14  ;;  %v2700_v18 = vpop.eup %1599  ;;  %v1715_v0 = vmov 0.0  }
 0x1b7   : > { %v858_v1 = vadd.f32 %v814_v30, %v813_v28  ;;  %vm3603_vm5 = vmand %vm3586_vm2, %vm2086_vm0  ;;  %v2716_v31 = vpop.eup %1601 }
 0x1b8   : > { %v811_v62 = vsel %vm3603_vm5, %v2600_v17, 0.0  ;;  %vm3604_vm9 = vmand %vm3594_vm11, %vm2136_vm10  ;;  %v2732_v28 = vpop.eup %1603 }
 0x1b9   : > { %v812_v13 = vsel %vm3604_vm9, %v2608_v14, 0.0  ;;  %vm2706_vm3 = vmxor %vm3440_vm4, %vm3553_vm14  ;;  %832 = vadd.xlane.f32.xlu0 %v831_v21  ;;  %v2742_v9 = vpop.eup %1605 }
 0x1ba   : > { %vm3607_vm2 = vmand %vm3597_vm7, %vm2086_vm0  ;;  %859 = vadd.xlane.f32.xlu1 %v858_v1  ;;  %v855_v21 = vadd.f32 %v812_v13, %v811_v62  ;;  %v2760_v1 = vpop.eup %1607 }
 0x1bb   : > { %v801_v23 = vsel %vm3607_vm2, %v2676_v2, 0.0  ;;  %vm2722_vm11 = vmxor %vm3439_vm6, %vm3553_vm14  ;;  %vm3615_vm2 = vcmp.eq.s32.totalorder %v1931_v45, %v1964_v11 }
 0x1bc   : > { %vm3610_vm9 = vmand %vm3598_vm12, %vm2136_vm10  ;;  %v1474_v63 = vsel %vm3615_vm2, 1.0, %v1715_v0  ;;  %vm3628_vm2 = vcmp.eq.s32.totalorder %v1945_v52, %v1966_v15 }
 0x1bd   : > { %v802_v25 = vsel %vm3610_vm9, %v2700_v18, 0.0  ;;  %vm2738_vm7 = vmxor %vm676_vm13, %vm3553_vm14  ;;  %856 = vadd.xlane.f32.xlu0 %v855_v21  ;;  %vm3620_vm9 = vcmp.eq.s32.totalorder %v1935_v47, %v1966_v15 }
 0x1be   : > { %v840_v33 = vadd.f32 %v802_v25, %v801_v23  ;;  %vm3613_vm12 = vmand %vm3600_vm1, %vm2086_vm0  ;;  %v1479_v21 = vsel %vm3620_vm9, 1.0, %v1715_v0  ;;  %vm3633_vm9 = vcmp.eq.s32.totalorder %v1949_v55, %v1964_v11 }
 0x1bf   : > { %v799_v61 = vsel %vm3613_vm12, %v2654_v24, 0.0  ;;  %vm3614_vm14 = vmand %vm2518_vm15, %vm2136_vm10  ;;  %vm3622_vm12 = vcmp.eq.s32.totalorder %v1933_v46, %v1966_v15 }
 0x1c0   : > { %v800_v37 = vsel %vm3614_vm14, %v2668_v3, 0.0  ;;  %vm785_vm5 = vmand %vm2706_vm3, %vm2086_vm0  ;;  %841 = vadd.xlane.f32.xlu1 %v840_v33  ;;  %vm3623_vm14 = vcmp.eq.s32.totalorder %v1939_v49, %v1964_v11 }
 0x1c1   : > { %vm786_vm1 = vmand %vm2722_vm11, %vm2136_vm10  ;;  %v817_v34 = vsel %vm785_vm5, %v2742_v9, 0.0  ;;  %v837_v62 = vadd.f32 %v800_v37, %v799_v61  ;;  %vm3619_vm11 = vcmp.eq.s32.totalorder %v1935_v47, %v1964_v11  ;;  %vm3624_vm5 = vcmp.eq.s32.totalorder %v1939_v49, %v1966_v15 }
 0x1c2   : > { %vm783_vm15 = vmand %vm2684_vm8, %vm2086_vm0  ;;  %v818_v8 = vsel %vm786_vm1, %v2760_v1, 0.0  ;;  %vm3616_vm0 = vcmp.eq.s32.totalorder %v1931_v45, %v1966_v15  ;;  %vm3618_vm8 = vcmp.eq.s32.totalorder %v1943_v51, %v1966_v15  ;;  %v1478_v30 = vsel %vm3619_vm11, 1.0, %v1715_v0 }
 0x1c3   : > { %vm784_vm3 = vmand %vm2738_vm7, %vm2136_vm10  ;;  %v864_v13 = vadd.f32 %v818_v8, %v817_v34  ;;  %v815_v41 = vsel %vm783_vm15, %v2716_v31, 0.0  ;;  %838 = vadd.xlane.f32.xlu0 %v837_v62  ;;  %v1475_v37 = vsel %vm3616_vm0, 1.0, %v1715_v0  ;;  %vm3617_vm10 = vcmp.eq.s32.totalorder %v1943_v51, %v1964_v11 }
 0x1c4   : > { %v816_v23 = vsel %vm784_vm3, %v2732_v28, 0.0  ;;  %v1472_v4 = vsel %vm3617_vm10, 1.0, %v1715_v0  ;;  %v1473_v42 = vsel %vm3618_vm8, 1.0, %v1715_v0  ;;  %v1126_v25 = vadd.f32 %v1475_v37, %v1474_v63 }
 0x1c5   : > { %v861_v33 = vadd.f32 %v816_v23, %v815_v41  ;;  %865 = vadd.xlane.f32.xlu1 %v864_v13  ;;  %v1123_v61 = vadd.f32 %v1473_v42, %v1472_v4  ;;  %vm3621_vm7 = vcmp.eq.s32.totalorder %v1933_v46, %v1964_v11  ;;  %v1477_v8 = vsel %vm3622_vm12, 1.0, %v1715_v0 }
 0x1c6   : > { %v1476_v34 = vsel %vm3621_vm7, 1.0, %v1715_v0  ;;  %v1132_v62 = vadd.f32 %v1479_v21, %v1478_v30  ;;  %v1482_v13 = vsel %vm3623_vm14, 1.0, %v1715_v0  ;;  %v1483_v41 = vsel %vm3624_vm5, 1.0, %v1715_v0 }
 0x1c7   : > { %862 = vadd.xlane.f32.xlu0 %v861_v33  ;;  %v1129_v23 = vadd.f32 %v1477_v8, %v1476_v34  ;;  %vm3625_vm1 = vcmp.eq.s32.totalorder %v1937_v48, %v1964_v11  ;;  %vm3626_vm15 = vcmp.eq.s32.totalorder %v1937_v48, %v1966_v15  ;;  %v1138_v33 = vadd.f32 %v1483_v41, %v1482_v13 }
 0x1c8   : > { %v1480_v63 = vsel %vm3625_vm1, 1.0, %v1715_v0  ;;  %v1481_v37 = vsel %vm3626_vm15, 1.0, %v1715_v0  ;;  %vm3627_vm3 = vcmp.eq.s32.totalorder %v1945_v52, %v1964_v11  ;;  %v1487_v42 = vsel %vm3628_vm2, 1.0, %v1715_v0  ;;  %v3651_v52 = vld [vmem:[#allocation45_spill] sm:$0xff] }
 0x1c9   : > { %1127 = vadd.xlane.f32.xlu1 %v1126_v25  ;;  %v1486_v4 = vsel %vm3627_vm3, 1.0, %v1715_v0  ;;  %v1135_v25 = vadd.f32 %v1481_v37, %v1480_v63  ;;  %vm3629_vm0 = vcmp.eq.s32.totalorder %v1941_v50, %v1964_v11  ;;  %vm3630_vm10 = vcmp.eq.s32.totalorder %v1941_v50, %v1966_v15 }
 0x1ca   : > { %v1484_v30 = vsel %vm3629_vm0, 1.0, %v1715_v0  ;;  %v1485_v21 = vsel %vm3630_vm10, 1.0, %v1715_v0  ;;  %vm3631_vm8 = vcmp.eq.s32.totalorder %v1947_v53, %v1964_v11  ;;  %vm3632_vm11 = vcmp.eq.s32.totalorder %v1947_v53, %v1966_v15 }
 0x1cb   : > { %1124 = vadd.xlane.f32.xlu0 %v1123_v61  ;;  %v1144_v61 = vadd.f32 %v1487_v42, %v1486_v4  ;;  %v1490_v34 = vsel %vm3631_vm8, 1.0, %v1715_v0  ;;  %v1491_v8 = vsel %vm3632_vm11, 1.0, %v1715_v0  ;;  %v1488_v13 = vsel %vm3633_vm9, 1.0, %v1715_v0 }
 0x1cc   : > { %vm3634_vm7 = vcmp.eq.s32.totalorder %v1949_v55, %v1966_v15  ;;  %vm3635_vm12 = vcmp.eq.s32.totalorder %v1953_v57, %v1964_v11  ;;  %vm3636_vm14 = vcmp.eq.s32.totalorder %v1953_v57, %v1966_v15  ;;  %vm3637_vm5 = vcmp.eq.s32.totalorder %v1955_v58, %v1964_v11 }
 0x1cd   : > { %1133 = vadd.xlane.f32.xlu1 %v1132_v62  ;;  %v1141_v62 = vadd.f32 %v1485_v21, %v1484_v30  ;;  %v1489_v41 = vsel %vm3634_vm7, 1.0, %v1715_v0  ;;  %v1494_v63 = vsel %vm3635_vm12, 1.0, %v1715_v0  ;;  %v1495_v37 = vsel %vm3636_vm14, 1.0, %v1715_v0 }
 0x1ce   : > { %v1492_v4 = vsel %vm3637_vm5, 1.0, %v1715_v0  ;;  %vm3638_vm1 = vcmp.eq.s32.totalorder %v1955_v58, %v1966_v15  ;;  %vm3639_vm15 = vcmp.eq.s32.totalorder %v1962_v6, %v1964_v11  ;;  %vm3640_vm3 = vcmp.eq.s32.totalorder %v1962_v6, %v1966_v15 }
 0x1cf   : > { %1130 = vadd.xlane.f32.xlu0 %v1129_v23  ;;  %v1150_v23 = vadd.f32 %v1491_v8, %v1490_v34  ;;  %v1493_v42 = vsel %vm3638_vm1, 1.0, %v1715_v0  ;;  %v1498_v30 = vsel %vm3639_vm15, 1.0, %v1715_v0  ;;  %v1499_v21 = vsel %vm3640_vm3, 1.0, %v1715_v0 }
 0x1d0   : > { %vm3641_vm2 = vcmp.eq.s32.totalorder %v1968_v16, %v1964_v11  ;;  %vm3642_vm0 = vcmp.eq.s32.totalorder %v1968_v16, %v1966_v15  ;;  %vm3643_vm10 = vcmp.eq.s32.totalorder %v2602_v35, %v1964_v11  ;;  %vm3654_vm14 = vcmp.eq.s32.totalorder %v1943_v51, %v1964_v11 }
 0x1d1   : > { %1139 = vadd.xlane.f32.xlu1 %v1138_v33  ;;  %v1147_v33 = vadd.f32 %v1489_v41, %v1488_v13  ;;  %v1496_v34 = vsel %vm3641_vm2, 1.0, %v1715_v0  ;;  %v1497_v8 = vsel %vm3642_vm0, 1.0, %v1715_v0  ;;  %v1502_v13 = vsel %vm3440_vm4, 1.0, %v1715_v0 }
 0x1d2   : > { %v1503_v41 = vsel %vm3439_vm6, 1.0, %v1715_v0  ;;  %vm3655_vm15 = vcmp.eq.s32.totalorder %v1943_v51, %v1966_v15  ;;  %vm3659_vm0 = vcmp.eq.s32.totalorder %v1949_v55, %v1964_v11 }
 0x1d3   : > { %1136 = vadd.xlane.f32.xlu0 %v1135_v25  ;;  %v1156_v25 = vadd.f32 %v1495_v37, %v1494_v63  ;;  %v1500_v63 = vsel %vm3643_vm10, 1.0, %v1715_v0  ;;  %v1501_v37 = vsel %vm676_vm13, 1.0, %v1715_v0 }
 0x1d5   : > { %1145 = vadd.xlane.f32.xlu1 %v1144_v61  ;;  %v1153_v61 = vadd.f32 %v1493_v42, %v1492_v4  ;;  %v1165_v4 = vadd.f32 %v1501_v37, %v1500_v63  ;;  %v2883_v37 = vstv %s1459_s15 }
 0x1d7   : > { %1142 = vadd.xlane.f32.xlu0 %v1141_v62  ;;  %v1162_v62 = vadd.f32 %v1499_v21, %v1498_v30  ;;  %v3644_v30 = vld [vmem:[#allocation30_spill] sm:$0xff] }
 0x1d9   : > { %1151 = vadd.xlane.f32.xlu1 %v1150_v23  ;;  %v1159_v23 = vadd.f32 %v1497_v8, %v1496_v34 }
 0x1db   : > { %1148 = vadd.xlane.f32.xlu0 %v1147_v33  ;;  %v1168_v33 = vadd.f32 %v1503_v41, %v1502_v13  ;;  %v3646_v41 = vld [vmem:[#allocation35_spill] sm:$0xff] }
 0x1dd   : > { %1157 = vadd.xlane.f32.xlu1 %v1156_v25 }
 0x1df   : > { %1154 = vadd.xlane.f32.xlu0 %v1153_v61 }
 0x1e1   : > { %1163 = vadd.xlane.f32.xlu1 %v1162_v62  ;;  %v3645_v62 = vld [vmem:[#allocation8_spill] sm:$0xff] }
 0x1e2   : > { %v691_v13 = vadd.s32 64, %v3645_v62  ;;  %v689_v27 = vadd.s32 48, %v3645_v62  ;;  %v2923_v6 = vadd.s32 56, %v3645_v62 }
 0x1e3   : > { %1160 = vadd.xlane.f32.xlu0 %v1159_v23 }
 0x1e4   : > { %v2966_v51 = vadd.s32 %v2883_v37, %v689_v27 }
 0x1e5   : > { %1169 = vadd.xlane.f32.xlu1 %v1168_v33 }
 0x1e6   : > { %3656 = vst [vmem:[#allocation8_spill] sm:$0xff] %v2966_v51  ;;  %v3658_v51 = vld [vmem:[#allocation19_spill] sm:$0xff] }
 0x1e7   : > { %1166 = vadd.xlane.f32.xlu0 %v1165_v4  ;;  %v2887_v4 = vadd.s32 %v2883_v37, %v691_v13  ;;  %v688_v13 = vadd.s32 40, %v3645_v62 }
 0x222   : > { %v821_v42 = vpop.xlane.xlu1 %820 }
 0x223   : > { %v867_v25 = vadd.f32 %v2178_v10, %v821_v42  ;;  %v868_v21 = vadd.f32 %v3644_v30, %v821_v42  ;;  %v684_v10 = vadd.s32 8, %v3645_v62 }
 0x225   : > { %1609 = vlog2.f32 %v867_v25  ;;  %v2897_v25 = vadd.s32 %v2883_v37, %v684_v10 }
 0x226   : > { %1611 = vlog2.f32 %v868_v21  ;;  %v686_v21 = vadd.s32 24, %v3645_v62 }
 0x229   : > { %v848_v61 = vpop.xlane.xlu1 %847 }
 0x22a   : > { %v885_v34 = vadd.f32 %v2226_v12, %v848_v61  ;;  %v886_v8 = vadd.f32 %v2256_v5, %v848_v61  ;;  %v685_v12 = vadd.s32 16, %v3645_v62  ;;  %v693_v61 = vadd.s32 80, %v3645_v62 }
 0x22c   : > { %1613 = vlog2.f32 %v885_v34  ;;  %v687_v34 = vadd.s32 32, %v3645_v62 }
 0x22d   : > { %1615 = vlog2.f32 %v886_v8 }
 0x22e   : > { %v845_v0 = vpop.xlane.xlu0 %844 }
 0x22f   : > { %v883_v23 = vadd.f32 %v3646_v41, %v845_v0  ;;  %v884_v63 = vadd.f32 %v2297_v56, %v845_v0  ;;  %v2894_v56 = vadd.s32 %v2883_v37, %v3645_v62  ;;  %v1610_v8 = vpop.eup %1609  ;;  %v2906_v0 = vadd.s32 %v2883_v37, %v685_v12 }
 0x230   : > { %v1612_v41 = vpop.eup %1611 }
 0x231   : > { %1617 = vlog2.f32 %v883_v23  ;;  %3647 = vst [vmem:[#allocation30_spill] sm:$0xff] %v2894_v56  ;;  %v900_v23 = vmul.f32 0.6931472, %v1610_v8  ;;  %v902_v35 = vmul.f32 0.6931472, %v1612_v41  ;;  %v3653_v41 = vld [vmem:[#allocation14_spill] sm:$0xff] }
 0x232   : > { %1619 = vlog2.f32 %v884_v63  ;;  %v3649_v63 = vld [vmem:[#allocation44_spill] sm:$0xff] }
 0x233   : > { %v824_v33 = vpop.xlane.xlu0 %823 }
 0x234   : > { %v869_v5 = vadd.f32 %v2376_v7, %v824_v33  ;;  %v870_v42 = vadd.f32 %v2396_v22, %v824_v33  ;;  %v3648_v7 = vld [vmem:[#allocation17_spill] sm:$0xff]  ;;  %v692_v22 = vadd.s32 72, %v3645_v62 }
 0x235   : > { %vm1011_vm8 = vcmp.ne.s32.totalorder %v2887_v4, %v3648_v7  ;;  %vm995_vm9 = vcmp.ne.s32.totalorder %v2894_v56, %v3648_v7  ;;  %vm997_vm12 = vcmp.ne.s32.totalorder %v2897_v25, %v3648_v7 }
 0x236   : > { %1621 = vlog2.f32 %v869_v5  ;;  %v3650_v5 = vld [vmem:[#allocation21_spill] sm:$0xff]  ;;  %v1614_v16 = vpop.eup %1613  ;;  %vm1027_vm5 = vmand %vm3654_vm14, %vm995_vm9  ;;  %vm999_vm9 = vcmp.ne.s32.totalorder %v2906_v0, %v3648_v7 }
 0x237   : > { %1623 = vlog2.f32 %v870_v42  ;;  %vm1012_vm11 = vcmp.ne.s32.totalorder %v2887_v4, %v3650_v5  ;;  %v695_v42 = vadd.s32 96, %v3645_v62  ;;  %vm996_vm7 = vcmp.ne.s32.totalorder %v2894_v56, %v3650_v5  ;;  %vm1043_vm10 = vmand %vm3659_vm0, %vm1011_vm8 }
 0x238   : > { %vm998_vm1 = vcmp.ne.s32.totalorder %v2897_v25, %v3650_v5  ;;  %vm1028_vm3 = vmand %vm3655_vm15, %vm996_vm7  ;;  %v936_v56 = vmul.f32 0.6931472, %v1614_v16  ;;  %vm3660_vm7 = vcmp.eq.s32.totalorder %v1949_v55, %v1966_v15  ;;  %vm1000_vm8 = vcmp.ne.s32.totalorder %v2906_v0, %v3650_v5 }
 0x239   : > { %v830_v30 = vpop.xlane.xlu1 %829  ;;  %vm1044_vm14 = vmand %vm3660_vm7, %vm1012_vm11  ;;  %vm3667_vm7 = vcmp.eq.s32.totalorder %v1947_v53, %v1964_v11 }
 0x23a   : > { %v873_v10 = vadd.f32 %v3649_v63, %v830_v30  ;;  %v874_v8 = vadd.f32 %v3651_v52, %v830_v30  ;;  %v3652_v63 = vld [vmem:[#allocation13_spill] sm:$0xff]  ;;  %v2932_v52 = vadd.s32 %v2883_v37, %v686_v21  ;;  %v1616_v30 = vpop.eup %1615  ;;  %v2949_v21 = vadd.s32 %v2883_v37, %v688_v13 }
 0x23b   : > { %v963_v50 = vsub.f32 %v3652_v63, %v900_v23 }
 0x23c   : > { %vm1001_vm11 = vcmp.ne.s32.totalorder %v2932_v52, %v3648_v7  ;;  %vm1002_vm0 = vcmp.ne.s32.totalorder %v2932_v52, %v3650_v5 }
 0x23e   : > { %v827_v33 = vpop.xlane.xlu0 %826 }
 0x23f   : > { %v871_v19 = vadd.f32 %v2342_v54, %v827_v33  ;;  %v872_v12 = vadd.f32 %v2359_v39, %v827_v33  ;;  %v854_v44 = vpop.xlane.xlu1 %853  ;;  %v964_v54 = vsub.f32 %v3653_v41, %v902_v35  ;;  %v2929_v39 = vadd.s32 %v2883_v37, %v692_v22  ;;  %v1618_v22 = vpop.eup %1617 }
 0x240   : > { %v2946_v35 = vadd.s32 %v2883_v37, %v687_v34  ;;  %v1187_v33 = vsel %vm1027_vm5, %v963_v50, 0.0  ;;  %v1620_v34 = vpop.eup %1619  ;;  %v932_v63 = vmul.f32 0.6931472, %v1618_v22  ;;  %vm3664_vm5 = vcmp.eq.s32.totalorder %v1931_v45, %v1964_v11 }
 0x241   : > { %1625 = vlog2.f32 %v871_v19  ;;  %v2943_v19 = vadd.s32 %v2883_v37, %v693_v61  ;;  %v2959_v61 = vadd.s32 %v2883_v37, %v695_v42  ;;  %v934_v49 = vmul.f32 0.6931472, %v1620_v34  ;;  %v1622_v50 = vpop.eup %1621  ;;  %vm1029_vm15 = vmand %vm3664_vm5, %vm997_vm12 }
 0x242   : > { %1627 = vlog2.f32 %v873_v10  ;;  %v851_v23 = vpop.xlane.xlu0 %850  ;;  %vm1013_vm2 = vcmp.ne.s32.totalorder %v2929_v39, %v3648_v7  ;;  %v890_v42 = vadd.f32 %v2529_v40, %v854_v44  ;;  %v3661_v40 = vld [vmem:[#allocation24_spill] sm:$0xff]  ;;  %vm3668_vm5 = vcmp.eq.s32.totalorder %v1947_v53, %v1966_v15 }
 0x243   : > { %1629 = vlog2.f32 %v872_v12  ;;  %v887_v10 = vadd.f32 %v2460_v43, %v851_v23  ;;  %v888_v13 = vadd.f32 %v2483_v26, %v851_v23  ;;  %v836_v41 = vpop.xlane.xlu1 %835  ;;  %v1188_v12 = vsel %vm1028_vm3, %v964_v54, 0.0  ;;  %v1624_v26 = vpop.eup %1623 }
 0x244   : > { %1631 = vlog2.f32 %v874_v8  ;;  %v889_v43 = vadd.f32 %v2512_v36, %v854_v44  ;;  %v1219_v22 = vadd.f32 %v1188_v12, %v1187_v33  ;;  %v3657_v8 = vld [vmem:[#allocation18_spill] sm:$0xff]  ;;  %v938_v23 = vmul.f32 0.6931472, %v1616_v30  ;;  %v3662_v33 = vld [vmem:[#allocation25_spill] sm:$0xff] }
 0x245   : > { %v979_v57 = vsub.f32 %v3657_v8, %v932_v63  ;;  %v904_v54 = vmul.f32 0.6931472, %v1622_v50  ;;  %1633 = vlog2.f32 %v887_v10  ;;  %v877_v36 = vadd.f32 %v2568_v38, %v836_v41 }
 0x246   : > { %v833_v48 = vpop.xlane.xlu0 %832  ;;  %v906_v34 = vmul.f32 0.6931472, %v1624_v26  ;;  %1635 = vlog2.f32 %v888_v13  ;;  %v878_v58 = vadd.f32 %v2576_v59, %v836_v41  ;;  %1220 = vadd.xlane.f32.xlu0 %v1219_v22  ;;  %v980_v16 = vsub.f32 %v3658_v51, %v934_v49  ;;  %v3663_v41 = vld [vmem:[#allocation15_spill] sm:$0xff] }
 0x247   : > { %v860_v27 = vpop.xlane.xlu1 %859  ;;  %1637 = vlog2.f32 %v889_v43  ;;  %v875_v44 = vadd.f32 %v2542_v29, %v833_v48  ;;  %v1203_v49 = vsel %vm1043_vm10, %v979_v57, 0.0  ;;  %v965_v38 = vsub.f32 %v3661_v40, %v904_v54 }
 0x248   : > { %1639 = vlog2.f32 %v890_v42  ;;  %v876_v59 = vadd.f32 %v2560_v60, %v833_v48  ;;  %v1204_v10 = vsel %vm1044_vm14, %v980_v16, 0.0  ;;  %v966_v63 = vsub.f32 %v3662_v33, %v906_v34  ;;  %v3665_v60 = vld [vmem:[#allocation16_spill] sm:$0xff] }
 0x249   : > { %1641 = vlog2.f32 %v877_v36  ;;  %v893_v13 = vadd.f32 %v2622_v32, %v860_v27  ;;  %v981_v55 = vsub.f32 %v3663_v41, %v936_v56  ;;  %v694_v57 = vadd.s32 88, %v3645_v62 }
 0x24a   : > { %v857_v30 = vpop.xlane.xlu0 %856  ;;  %1643 = vlog2.f32 %v878_v58  ;;  %v1243_v48 = vadd.f32 %v1204_v10, %v1203_v49  ;;  %v982_v43 = vsub.f32 %v3665_v60, %v938_v23  ;;  %vm1014_vm3 = vcmp.ne.s32.totalorder %v2929_v39, %v3650_v5 }
 0x24b   : > { %v1626_v29 = vpop.eup %1625  ;;  %1645 = vlog2.f32 %v875_v44  ;;  %v891_v58 = vadd.f32 %v2600_v17, %v857_v30  ;;  %vm3666_vm10 = vcmp.eq.s32.totalorder %v1931_v45, %v1966_v15  ;;  %v1189_v51 = vsel %vm1029_vm15, %v965_v38, 0.0  ;;  %vm1046_vm15 = vmand %vm3668_vm5, %vm1014_vm3 }
 0x24c   : > { %v1628_v12 = vpop.eup %1627  ;;  %vm1030_vm12 = vmand %vm3666_vm10, %vm998_vm1  ;;  %v3018_v50 = vadd.s32 %v2883_v37, %v2923_v6  ;;  %v908_v22 = vmul.f32 0.6931472, %v1626_v29  ;;  %1647 = vlog2.f32 %v876_v59  ;;  %v892_v8 = vadd.f32 %v2608_v14, %v857_v30  ;;  %1244 = vadd.xlane.f32.xlu0 %v1243_v48  ;;  %v3669_v59 = vld [vmem:[#allocation22_spill] sm:$0xff] }
 0x24d   : > { %v1630_v32 = vpop.eup %1629  ;;  %v842_v56 = vpop.xlane.xlu1 %841  ;;  %v1190_v26 = vsel %vm1030_vm12, %v966_v63, 0.0  ;;  %vm1045_vm1 = vmand %vm3667_vm7, %vm1013_vm2  ;;  %vm1015_vm14 = vcmp.ne.s32.totalorder %v2943_v19, %v3648_v7  ;;  %v894_v45 = vadd.f32 %v2640_v20, %v860_v27  ;;  %1649 = vlog2.f32 %v893_v13  ;;  %v3671_v63 = vld [vmem:[#allocation23_spill] sm:$0xff] }
 0x24e   : > { %v1632_v42 = vpop.eup %1631  ;;  %v1205_v6 = vsel %vm1045_vm1, %v981_v55, 0.0  ;;  %v3037_v14 = vadd.s32 %v2883_v37, %v694_v57  ;;  %v910_v23 = vmul.f32 0.6931472, %v1630_v32  ;;  %v881_v54 = vadd.f32 %v2676_v2, %v842_v56 }
 0x24f   : > { %v1222_v36 = vadd.f32 %v1190_v26, %v1189_v51  ;;  %v1206_v34 = vsel %vm1046_vm15, %v982_v43, 0.0  ;;  %vm1016_vm2 = vcmp.ne.s32.totalorder %v2943_v19, %v3650_v5  ;;  %v1634_v20 = vpop.eup %1633  ;;  %v912_v27 = vmul.f32 0.6931472, %v1628_v12  ;;  %v3673_v12 = vld [vmem:[#allocation26_spill] sm:$0xff]  ;;  %v3677_v26 = vld [vmem:[#allocation28_spill] sm:$0xff] }
 0x250   : > { %v839_v17 = vpop.xlane.xlu0 %838  ;;  %v914_v16 = vmul.f32 0.6931472, %v1632_v42  ;;  %1651 = vlog2.f32 %v891_v58  ;;  %v1636_v53 = vpop.eup %1635  ;;  %v1246_v38 = vadd.f32 %v1206_v34, %v1205_v6  ;;  %v967_v2 = vsub.f32 %v3669_v59, %v908_v22  ;;  %v3674_v58 = vld [vmem:[#allocation27_spill] sm:$0xff]  ;;  %v3683_v59 = vld [vmem:[#allocation32_spill] sm:$0xff] }
 0x251   : > { %v879_v44 = vadd.f32 %v2654_v24, %v839_v17  ;;  %1653 = vlog2.f32 %v892_v8  ;;  %v880_v49 = vadd.f32 %v2668_v3, %v839_v17  ;;  %1223 = vadd.xlane.f32.xlu1 %v1222_v36  ;;  %v1638_v30 = vpop.eup %1637  ;;  %v882_v10 = vadd.f32 %v2700_v18, %v842_v56  ;;  %v3680_v36 = vld [vmem:[#allocation29_spill] sm:$0xff] }
 0x252   : > { %1655 = vlog2.f32 %v894_v45  ;;  %vm3670_vm3 = vcmp.eq.s32.totalorder %v1933_v46, %v1964_v11  ;;  %vm1017_vm12 = vcmp.ne.s32.totalorder %v3037_v14, %v3648_v7  ;;  %v696_v24 = vadd.s32 104, %v3645_v62  ;;  %v1640_v3 = vpop.eup %1639  ;;  %v866_v55 = vpop.xlane.xlu1 %865 }
 0x253   : > { %vm1031_vm10 = vmand %vm3670_vm3, %vm999_vm9  ;;  %v940_v33 = vmul.f32 0.6931472, %v1634_v20  ;;  %1657 = vlog2.f32 %v881_v54  ;;  %v968_v29 = vsub.f32 %v3671_v63, %v910_v23  ;;  %vm1003_vm7 = vcmp.ne.s32.totalorder %v2946_v35, %v3648_v7  ;;  %v1642_v18 = vpop.eup %1641  ;;  %v3678_v54 = vld [vmem:[#allocation10_spill] sm:$0xff] }
 0x254   : > { %v863_v40 = vpop.xlane.xlu0 %862  ;;  %v1191_v13 = vsel %vm1031_vm10, %v967_v2, 0.0  ;;  %v942_v41 = vmul.f32 0.6931472, %v1636_v53  ;;  %1659 = vlog2.f32 %v879_v44  ;;  %vm3672_vm9 = vcmp.eq.s32.totalorder %v1933_v46, %v1966_v15  ;;  %v1644_v60 = vpop.eup %1643 }
 0x255   : > { %v895_v57 = vadd.f32 %v2716_v31, %v863_v40  ;;  %vm1032_vm1 = vmand %vm3672_vm9, %vm1000_vm8  ;;  %v969_v48 = vsub.f32 %v3673_v12, %v912_v27  ;;  %vm1004_vm5 = vcmp.ne.s32.totalorder %v2946_v35, %v3650_v5  ;;  %1661 = vlog2.f32 %v880_v49  ;;  %1247 = vadd.xlane.f32.xlu1 %v1246_v38  ;;  %v1646_v46 = vpop.eup %1645 }
 0x256   : > { %v896_v43 = vadd.f32 %v2732_v28, %v863_v40  ;;  %v1192_v32 = vsel %vm1032_vm1, %v968_v29, 0.0  ;;  %v970_v31 = vsub.f32 %v3674_v58, %v914_v16  ;;  %vm3675_vm15 = vcmp.eq.s32.totalorder %v1935_v47, %v1964_v11  ;;  %v1648_v28 = vpop.eup %1647  ;;  %v3682_v16 = vld [vmem:[#allocation31_spill] sm:$0xff] }
 0x257   : > { %vm1033_vm8 = vmand %vm3675_vm15, %vm1001_vm11  ;;  %vm1005_vm3 = vcmp.ne.s32.totalorder %v2949_v21, %v3648_v7  ;;  %v944_v56 = vmul.f32 0.6931472, %v1638_v30  ;;  %v946_v51 = vmul.f32 0.6931472, %v1640_v3  ;;  %1663 = vlog2.f32 %v882_v10  ;;  %v1650_v6 = vpop.eup %1649  ;;  %v3684_v30 = vld [vmem:[#allocation9_spill] sm:$0xff]  ;;  %v3686_v10 = vld [vmem:[#allocation8_spill] sm:$0xff] }
 0x258   : > { %v1225_v42 = vadd.f32 %v1192_v32, %v1191_v13  ;;  %vm3676_vm10 = vcmp.eq.s32.totalorder %v1935_v47, %v1966_v15  ;;  %vm1006_vm1 = vcmp.ne.s32.totalorder %v2949_v21, %v3650_v5  ;;  %v897_v22 = vadd.f32 %v2742_v9, %v866_v55  ;;  %v3690_v32 = vld [vmem:[#allocation4_spill] sm:$0xff] }
 0x259   : > { %vm1034_vm9 = vmand %vm3676_vm10, %vm1002_vm0  ;;  %v1193_v8 = vsel %vm1033_vm8, %v969_v48, 0.0  ;;  %v983_v45 = vsub.f32 %v3677_v26, %v940_v33  ;;  %vm1019_vm11 = vcmp.ne.s32.totalorder %v2959_v61, %v3648_v7  ;;  %v898_v23 = vadd.f32 %v2760_v1, %v866_v55 }
 0x25a   : > { %v1194_v17 = vsel %vm1034_vm9, %v970_v31, 0.0  ;;  %1665 = vlog2.f32 %v895_v57  ;;  %1226 = vadd.xlane.f32.xlu0 %v1225_v42  ;;  %vm3679_vm0 = vcmp.eq.s32.totalorder %v3678_v54, %v1964_v11  ;;  %vm1018_vm8 = vcmp.ne.s32.totalorder %v3037_v14, %v3650_v5  ;;  %v1652_v27 = vpop.eup %1651 }
 0x25b   : > { %v1228_v47 = vadd.f32 %v1194_v17, %v1193_v8  ;;  %vm1047_vm15 = vmand %vm3679_vm0, %vm1015_vm14  ;;  %v916_v9 = vmul.f32 0.6931472, %v1646_v46  ;;  %1667 = vlog2.f32 %v896_v43  ;;  %v984_v34 = vsub.f32 %v3680_v36, %v942_v41  ;;  %v1654_v49 = vpop.eup %1653  ;;  %v3688_v41 = vld [vmem:[#allocation33_spill] sm:$0xff] }
 0x25c   : > { %v1207_v20 = vsel %vm1047_vm15, %v983_v45, 0.0  ;;  %v918_v1 = vmul.f32 0.6931472, %v1648_v28  ;;  %vm3681_vm10 = vcmp.eq.s32.totalorder %v3678_v54, %v1966_v15  ;;  %v985_v44 = vsub.f32 %v3682_v16, %v944_v56  ;;  %v1656_v3 = vpop.eup %1655  ;;  %v3694_v17 = vld [vmem:[#allocation37_spill] sm:$0xff]  ;;  %v3700_v16 = vld [vmem:[#allocation12_spill] sm:$0xff] }
 0x25d   : > { %1229 = vadd.xlane.f32.xlu1 %v1228_v47  ;;  %vm1048_vm9 = vmand %vm3681_vm10, %vm1016_vm2  ;;  %vm1020_vm14 = vcmp.ne.s32.totalorder %v2959_v61, %v3650_v5  ;;  %v3110_v53 = vadd.s32 %v2883_v37, %v696_v24  ;;  %v920_v40 = vmul.f32 0.6931472, %v1642_v18  ;;  %1669 = vlog2.f32 %v897_v22  ;;  %v1658_v29 = vpop.eup %1657  ;;  %v3693_v22 = vld [vmem:[#allocation36_spill] sm:$0xff]  ;;  %v3695_v45 = vld [vmem:[#allocation5_spill] sm:$0xff] }
 0x25e   : > { %v1208_v38 = vsel %vm1048_vm9, %v984_v34, 0.0  ;;  %v986_v2 = vsub.f32 %v3683_v59, %v946_v51  ;;  %vm3685_vm2 = vcmp.eq.s32.totalorder %v3684_v30, %v1964_v11  ;;  %vm1007_vm15 = vcmp.ne.s32.totalorder %v3686_v10, %v3648_v7  ;;  %v1660_v57 = vpop.eup %1659 }
 0x25f   : > { %vm1049_vm0 = vmand %vm3685_vm2, %vm1017_vm12  ;;  %v922_v33 = vmul.f32 0.6931472, %v1644_v60  ;;  %1671 = vlog2.f32 %v898_v23  ;;  %v1249_v24 = vadd.f32 %v1208_v38, %v1207_v20  ;;  %vm3687_vm10 = vcmp.eq.s32.totalorder %v3684_v30, %v1966_v15  ;;  %v3689_v60 = vld [vmem:[#allocation34_spill] sm:$0xff]  ;;  %v1662_v58 = vpop.eup %1661 }
 0x260   : > { %vm1050_vm9 = vmand %vm3687_vm10, %vm1018_vm8  ;;  %v1209_v63 = vsel %vm1049_vm0, %v985_v44, 0.0  ;;  %vm1008_vm6 = vcmp.ne.s32.totalorder %v3686_v10, %v3650_v5  ;;  %v948_v13 = vmul.f32 0.6931472, %v1652_v27  ;;  %v971_v55 = vsub.f32 %v3688_v41, %v916_v9  ;;  %v3699_v27 = vld [vmem:[#allocation39_spill] sm:$0xff]  ;;  %v3706_v41 = vld [vmem:[#allocation41_spill] sm:$0xff] }
 0x261   : > { %v1210_v18 = vsel %vm1050_vm9, %v986_v2, 0.0  ;;  %vm1009_vm12 = vcmp.ne.s32.totalorder %v3018_v50, %v3648_v7  ;;  %v950_v12 = vmul.f32 0.6931472, %v1654_v49  ;;  %1250 = vadd.xlane.f32.xlu0 %v1249_v24  ;;  %v972_v43 = vsub.f32 %v3689_v60, %v918_v1  ;;  %v1664_v51 = vpop.eup %1663  ;;  %v3704_v24 = vld [vmem:[#allocation11_spill] sm:$0xff] }
 0x262   : > { %v1252_v48 = vadd.f32 %v1210_v18, %v1209_v63  ;;  %vm3691_vm8 = vcmp.eq.s32.totalorder %v3690_v32, %v1964_v11  ;;  %vm1021_vm0 = vcmp.ne.s32.totalorder %v3110_v53, %v3648_v7  ;;  %vm3692_vm10 = vcmp.eq.s32.totalorder %v3690_v32, %v1966_v15 }
 0x263   : > { %vm1035_vm2 = vmand %vm3691_vm8, %vm1003_vm7  ;;  %vm1022_vm4 = vcmp.ne.s32.totalorder %v3110_v53, %v3650_v5  ;;  %v697_v46 = vadd.s32 112, %v3645_v62  ;;  %v698_v56 = vadd.s32 120, %v3645_v62  ;;  %v952_v42 = vmul.f32 0.6931472, %v1650_v6  ;;  %v3698_v62 = vld [vmem:[#allocation38_spill] sm:$0xff] }
 0x264   : > { %vm1036_vm9 = vmand %vm3692_vm10, %vm1004_vm5  ;;  %v1195_v31 = vsel %vm1035_vm2, %v971_v55, 0.0  ;;  %1253 = vadd.xlane.f32.xlu1 %v1252_v48  ;;  %v973_v8 = vsub.f32 %v3693_v22, %v920_v40  ;;  %v974_v26 = vsub.f32 %v3694_v17, %v922_v33  ;;  %vm3696_vm7 = vcmp.eq.s32.totalorder %v3695_v45, %v1964_v11  ;;  %v1666_v9 = vpop.eup %1665 }
 0x265   : > { %v1196_v28 = vsel %vm1036_vm9, %v972_v43, 0.0  ;;  %vm1037_vm5 = vmand %vm3696_vm7, %vm1005_vm3  ;;  %v954_v23 = vmul.f32 0.6931472, %v1656_v3  ;;  %v924_v47 = vmul.f32 0.6931472, %v1660_v57  ;;  %vm3697_vm8 = vcmp.eq.s32.totalorder %v3695_v45, %v1966_v15  ;;  %v1668_v44 = vpop.eup %1667  ;;  %v3703_v3 = vld [vmem:[#allocation40_spill] sm:$0xff] }
 0x266   : > { %v1231_v54 = vadd.f32 %v1196_v28, %v1195_v31  ;;  %vm1038_vm2 = vmand %vm3697_vm8, %vm1006_vm1  ;;  %v987_v6 = vsub.f32 %v3698_v62, %v948_v13  ;;  %v926_v36 = vmul.f32 0.6931472, %v1662_v58  ;;  %v1197_v34 = vsel %vm1037_vm5, %v973_v8, 0.0  ;;  %v3709_v43 = vld [vmem:[#allocation43_spill] sm:$0xff]  ;;  %v3710_v58 = vld [vmem:[#allocation6_spill] sm:$0xff] }
 0x267   : > { %v1198_v20 = vsel %vm1038_vm2, %v974_v26, 0.0  ;;  %v988_v1 = vsub.f32 %v3699_v27, %v950_v12  ;;  %vm3701_vm3 = vcmp.eq.s32.totalorder %v3700_v16, %v1964_v11  ;;  %vm3702_vm1 = vcmp.eq.s32.totalorder %v3700_v16, %v1966_v15  ;;  %v1670_v63 = vpop.eup %1669  ;;  %v3714_v8 = vld [vmem:[#allocation7_spill] sm:$0xff]  ;;  %v3722_v16 = vld [vmem:[#allocation50_spill] sm:$0xff] }
 0x268   : > { %vm1051_vm10 = vmand %vm3701_vm3, %vm1019_vm11  ;;  %1232 = vadd.xlane.f32.xlu0 %v1231_v54  ;;  %v1234_v49 = vadd.f32 %v1198_v20, %v1197_v34  ;;  %vm1010_vm7 = vcmp.ne.s32.totalorder %v3018_v50, %v3650_v5  ;;  %v3182_v38 = vadd.s32 %v2883_v37, %v697_v46  ;;  %v928_v59 = vmul.f32 0.6931472, %v1658_v29  ;;  %v3708_v29 = vld [vmem:[#allocation42_spill] sm:$0xff]  ;;  %v3716_v45 = vld [vmem:[#allocation47_spill] sm:$0xff] }
 0x269   : > { %vm1052_vm9 = vmand %vm3702_vm1, %vm1020_vm14  ;;  %v1211_v40 = vsel %vm1051_vm10, %v987_v6, 0.0  ;;  %v930_v2 = vmul.f32 0.6931472, %v1664_v51  ;;  %v989_v33 = vsub.f32 %v3703_v3, %v952_v42  ;;  %vm3705_vm11 = vcmp.eq.s32.totalorder %v3704_v24, %v1964_v11  ;;  %v1672_v12 = vpop.eup %1671  ;;  %v3719_v6 = vld [vmem:[#allocation49_spill] sm:$0xff]  ;;  %v1125_v3 = vpop.xlane.xlu0 %1124 }
 0x26a   : > { %v1212_v30 = vsel %vm1052_vm9, %v988_v1, 0.0  ;;  %vm1053_vm5 = vmand %vm3705_vm11, %vm1021_vm0  ;;  %v956_v13 = vmul.f32 0.6931472, %v1666_v9  ;;  %1235 = vadd.xlane.f32.xlu1 %v1234_v49  ;;  %v990_v55 = vsub.f32 %v3706_v41, %v954_v23  ;;  %vm3707_vm14 = vcmp.eq.s32.totalorder %v3704_v24, %v1966_v15  ;;  %v1128_v24 = vpop.xlane.xlu1 %1127 }
 0x26b   : > { %v1255_v18 = vadd.f32 %v1212_v30, %v1211_v40  ;;  %vm1054_vm8 = vmand %vm3707_vm14, %vm1022_vm4  ;;  %v975_v57 = vsub.f32 %v3708_v29, %v924_v47  ;;  %v958_v48 = vmul.f32 0.6931472, %v1668_v44  ;;  %v1213_v60 = vsel %vm1053_vm5, %v989_v33, 0.0  ;;  %v3718_v47 = vld [vmem:[#allocation48_spill] sm:$0xff]  ;;  %v3723_v40 = vld [vmem:[#allocation51_spill] sm:$0xff] }
 0x26c   : > { %v976_v32 = vsub.f32 %v3709_v43, %v926_v36  ;;  %vm3711_vm0 = vcmp.eq.s32.totalorder %v3710_v58, %v1964_v11  ;;  %v3207_v31 = vadd.s32 %v2883_v37, %v698_v56  ;;  %v1214_v46 = vsel %vm1054_vm8, %v990_v55, 0.0  ;;  %v3713_v56 = vld [vmem:[#allocation46_spill] sm:$0xff]  ;;  %v3720_v36 = vld [vmem:[#allocation52_spill] sm:$0xff] }
 0x26d   : > { %vm1039_vm2 = vmand %vm3711_vm0, %vm1007_vm15  ;;  %1256 = vadd.xlane.f32.xlu0 %v1255_v18  ;;  %vm3712_vm4 = vcmp.eq.s32.totalorder %v3710_v58, %v1966_v15  ;;  %vm1023_vm10 = vcmp.ne.s32.totalorder %v3182_v38, %v3648_v7  ;;  %vm1024_vm1 = vcmp.ne.s32.totalorder %v3182_v38, %v3650_v5  ;;  %v960_v42 = vmul.f32 0.6931472, %v1670_v63  ;;  %v1131_v33 = vpop.xlane.xlu0 %1130 }
 0x26e   : > { %vm1040_vm3 = vmand %vm3712_vm4, %vm1008_vm6  ;;  %v1199_v51 = vsel %vm1039_vm2, %v975_v57, 0.0  ;;  %v1258_v28 = vadd.f32 %v1214_v46, %v1213_v60  ;;  %v977_v22 = vsub.f32 %v3713_v56, %v928_v59  ;;  %vm3715_vm15 = vcmp.eq.s32.totalorder %v3714_v8, %v1964_v11  ;;  %v3724_v59 = vld [vmem:[#allocation53_spill] sm:$0xff] }
 0x26f   : > { %v1200_v37 = vsel %vm1040_vm3, %v976_v32, 0.0  ;;  %vm1041_vm9 = vmand %vm3715_vm15, %vm1009_vm12  ;;  %v962_v17 = vmul.f32 0.6931472, %v1672_v12  ;;  %v978_v23 = vsub.f32 %v3716_v45, %v930_v2  ;;  %vm3717_vm6 = vcmp.eq.s32.totalorder %v3714_v8, %v1966_v15  ;;  %v3727_v45 = vld [vmem:[#allocation20_spill] sm:$0xff] }
 0x270   : > { %v1237_v26 = vadd.f32 %v1200_v37, %v1199_v51  ;;  %vm1042_vm11 = vmand %vm3717_vm6, %vm1010_vm7  ;;  %v991_v54 = vsub.f32 %v3718_v47, %v956_v13  ;;  %1259 = vadd.xlane.f32.xlu1 %v1258_v28  ;;  %v1201_v62 = vsel %vm1041_vm9, %v977_v22, 0.0  ;;  %v992_v9 = vsub.f32 %v3719_v6, %v958_v48  ;;  %v1134_v13 = vpop.xlane.xlu1 %1133 }
 0x271   : > { %vm3721_vm12 = vcmp.eq.s32.totalorder %v3720_v36, %v1964_v11  ;;  %vm1025_vm14 = vcmp.ne.s32.totalorder %v3207_v31, %v3648_v7  ;;  %v1202_v34 = vsel %vm1042_vm11, %v978_v23, 0.0  ;;  %vm1056_vm7 = vmand %vm676_vm13, %vm1024_vm1  ;;  %vm1026_vm8 = vcmp.ne.s32.totalorder %v3207_v31, %v3650_v5  ;;  %v1137_v63 = vpop.xlane.xlu0 %1136  ;;  %v3728_v23 = vld [vmem:[#allocation30_spill] sm:$0xff] }
 0x272   : > { %vm1055_vm5 = vmand %vm3721_vm12, %vm1023_vm10  ;;  %1238 = vadd.xlane.f32.xlu0 %v1237_v26  ;;  %v1240_v27 = vadd.f32 %v1202_v34, %v1201_v62  ;;  %v1216_v1 = vsel %vm1056_vm7, %v992_v9, 0.0  ;;  %v993_v44 = vsub.f32 %v3722_v16, %v960_v42  ;;  %v994_v7 = vsub.f32 %v3723_v40, %v962_v17 }
 0x273   : > { %v1215_v20 = vsel %vm1055_vm5, %v991_v54, 0.0  ;;  %vm3725_vm0 = vcmp.eq.s32.totalorder %v3724_v59, %v1964_v11  ;;  %vm3726_vm4 = vcmp.eq.s32.totalorder %v3724_v59, %v1966_v15  ;;  %v1504_v55 = vadd.f32 -1.0, %v1125_v3 }
 0x274   : > { %v1261_v49 = vadd.f32 %v1216_v1, %v1215_v20  ;;  %vm1057_vm2 = vmand %vm3725_vm0, %vm1025_vm14  ;;  %1241 = vadd.xlane.f32.xlu1 %v1240_v27  ;;  %v1140_v41 = vpop.xlane.xlu1 %1139  ;;  %v1505_v43 = vadd.f32 -1.0, %v1128_v24  ;;  %v1506_v28 = vadd.f32 -1.0, %v1131_v33  ;;  %v1507_v17 = vadd.f32 -1.0, %v1134_v13 }
 0x275   : > { %vm1058_vm13 = vmand %vm3726_vm4, %vm1026_vm8  ;;  %v1217_v2 = vsel %vm1057_vm2, %v993_v44, 0.0  ;;  %v3259_v18 = vpop.xlane.xlu0 %1142  ;;  %v1267_v15 = vmax.f32 %v1504_v55, 1.0  ;;  %vm1331_vm3 = vcmp.lt.s32.totalorder %v3728_v23, %v3727_v45  ;;  %vm1363_vm10 = vcmask 7168  }
 0x276   : > { %1262 = vadd.xlane.f32.xlu0 %v1261_v49  ;;  %v1218_v30 = vsel %vm1058_vm13, %v994_v7, 0.0  ;;  %v1268_v46 = vmax.f32 %v1505_v43, 1.0  ;;  %v1269_v47 = vmax.f32 %v1506_v28, 1.0  ;;  %v1270_v62 = vmax.f32 %v1507_v17, 1.0 }
 0x277   : > { %v1264_v5 = vadd.f32 %v1218_v30, %v1217_v2  ;;  %1673 = vrcp.f32 %v1267_v15  ;;  %vm1339_vm1 = vcmp.lt.s32.totalorder %v2887_v4, %v3727_v45  ;;  %v1508_v40 = vadd.f32 -1.0, %v1137_v63 }
 0x278   : > { %v3261_v29 = vpop.xlane.xlu1 %1145  ;;  %vm1332_vm15 = vcmp.lt.s32.totalorder %v2897_v25, %v3727_v45  ;;  %vm1340_vm9 = vcmp.lt.s32.totalorder %v2929_v39, %v3727_v45  ;;  %vm1333_vm6 = vcmp.lt.s32.totalorder %v2906_v0, %v3727_v45  ;;  %vm1334_vm11 = vcmp.lt.s32.totalorder %v2932_v52, %v3727_v45 }
 0x279   : > { %1265 = vadd.xlane.f32.xlu1 %v1264_v5  ;;  %v1149_v11 = vpop.xlane.xlu0 %1148  ;;  %v1509_v5 = vadd.f32 -1.0, %v1140_v41  ;;  %v1271_v4 = vmax.f32 %v1508_v40, 1.0  ;;  %vm1341_vm12 = vcmp.lt.s32.totalorder %v2943_v19, %v3727_v45  ;;  %vm1342_vm5 = vcmp.lt.s32.totalorder %v3037_v14, %v3727_v45 }
 0x27a   : > { %v1512_v48 = vadd.f32 -1.0, %v1149_v11  ;;  %vm1335_vm14 = vcmp.lt.s32.totalorder %v2946_v35, %v3727_v45  ;;  %vm1336_vm7 = vcmp.lt.s32.totalorder %v2949_v21, %v3727_v45  ;;  %vm1343_vm8 = vcmp.lt.s32.totalorder %v2959_v61, %v3727_v45 }
 0x27b   : > { %v1272_v55 = vmax.f32 %v1509_v5, 1.0  ;;  %vm1344_vm0 = vcmp.lt.s32.totalorder %v3110_v53, %v3727_v45  ;;  %vm1337_vm2 = vcmp.lt.s32.totalorder %v3686_v10, %v3727_v45  ;;  %vm1338_vm4 = vcmp.lt.s32.totalorder %v3018_v50, %v3727_v45 }
 0x27c   : > { %v1152_v12 = vpop.xlane.xlu1 %1151  ;;  %v1275_v32 = vmax.f32 %v1512_v48, 1.0  ;;  %vm1345_vm13 = vcmp.lt.s32.totalorder %v3182_v38, %v3727_v45 }
 0x27d   : > { %v1155_v57 = vpop.xlane.xlu0 %1154  ;;  %v1513_v51 = vadd.f32 -1.0, %v1152_v12 }
 0x27e   : > { %1675 = vrcp.f32 %v1275_v32  ;;  %v1514_v6 = vadd.f32 -1.0, %v1155_v57  ;;  %v1510_v57 = vadd.f32 -1.0, %v3259_v18  ;;  %v1511_v18 = vadd.f32 -1.0, %v3261_v29 }
 0x27f   : > { %1677 = vrcp.f32 %v1268_v46  ;;  %v1276_v56 = vmax.f32 %v1513_v51, 1.0 }
 0x280   : > { %v1158_v58 = vpop.xlane.xlu1 %1157  ;;  %v1277_v16 = vmax.f32 %v1514_v6, 1.0  ;;  %v1273_v51 = vmax.f32 %v1510_v57, 1.0 }
 0x281   : > { %v1161_v60 = vpop.xlane.xlu0 %1160  ;;  %v1674_v37 = vpop.eup %1673  ;;  %1679 = vrcp.f32 %v1276_v56  ;;  %v1515_v27 = vadd.f32 -1.0, %v1158_v58 }
 0x282   : > { %1681 = vrcp.f32 %v1269_v47  ;;  %v1516_v24 = vadd.f32 -1.0, %v1161_v60  ;;  %v1274_v47 = vmax.f32 %v1511_v18, 1.0 }
 0x283   : > { %1683 = vrcp.f32 %v1270_v62  ;;  %v1278_v59 = vmax.f32 %v1515_v27, 1.0 }
 0x284   : > { %v1164_v22 = vpop.xlane.xlu1 %1163  ;;  %1685 = vrcp.f32 %v1277_v16  ;;  %v1279_v48 = vmax.f32 %v1516_v24, 1.0 }
 0x285   : > { %v3263_v42 = vpop.xlane.xlu0 %1166  ;;  %1687 = vrcp.f32 %v1278_v59  ;;  %v1517_v25 = vadd.f32 -1.0, %v1164_v22 }
 0x286   : > { %1689 = vrcp.f32 %v1271_v4 }
 0x287   : > { %1691 = vrcp.f32 %v1272_v55  ;;  %v1280_v28 = vmax.f32 %v1517_v25, 1.0 }
 0x288   : > { %v1676_v36 = vpop.eup %1675  ;;  %v1170_v34 = vpop.xlane.xlu1 %1169  ;;  %1693 = vrcp.f32 %v1279_v48 }
 0x289   : > { %v1678_v49 = vpop.eup %1677  ;;  %1695 = vrcp.f32 %v1280_v28  ;;  %v1519_v29 = vadd.f32 -1.0, %v1170_v34 }
 0x28a   : > { %1697 = vrcp.f32 %v1273_v51 }
 0x28b   : > { %v1680_v33 = vpop.eup %1679  ;;  %1699 = vrcp.f32 %v1274_v47  ;;  %v1282_v34 = vmax.f32 %v1519_v29, 1.0 }
 0x28c   : > { %v1682_v41 = vpop.eup %1681 }
 0x28d   : > { %v1684_v43 = vpop.eup %1683 }
 0x28e   : > { %v1686_v0 = vpop.eup %1685 }
 0x28f   : > { %v1688_v23 = vpop.eup %1687 }
 0x290   : > { %v1690_v6 = vpop.eup %1689 }
 0x291   : > { %v1692_v19 = vpop.eup %1691 }
 0x2d3   : > { %v1221_v8 = vpop.xlane.xlu0 %1220 }
 0x2d4   : > { %v1284_v26 = vmul.f32 %v1674_v37, %v1221_v8  ;;  %v1518_v37 = vadd.f32 -1.0, %v3263_v42 }
 0x2d6   : > { %v1315_v54 = vmul.f32 -1.0, %v1284_v26  ;;  %v1281_v42 = vmax.f32 %v1518_v37, 1.0 }
 0x2d8   : > { %v1347_v9 = vsel %vm1331_vm3, %v1315_v54, 0.0  ;;  %1701 = vrcp.f32 %v1281_v42  ;;  %vm1346_vm3 = vcmp.lt.s32.totalorder %v3207_v31, %v3727_v45 }
 0x2d9   : > { %1364 = vst.msk [vmem:[%s3271_s18] sm:$0xff] %vm1363_vm10, %v1347_v9  ;;  %v1245_v20 = vpop.xlane.xlu0 %1244  ;;  %1703 = vrcp.f32 %v1282_v34 }
 0x2da   : > { %v1300_v1 = vmul.f32 %v1676_v36, %v1245_v20 }
 0x2dc   : > { %v1323_v44 = vmul.f32 -1.0, %v1300_v1 }
 0x2de   : > { %v1224_v7 = vpop.xlane.xlu1 %1223  ;;  %v1355_v2 = vsel %vm1339_vm1, %v1323_v44, 0.0 }
 0x2df   : > { %v1286_v30 = vmul.f32 %v1678_v49, %v1224_v7  ;;  %1372 = vst.msk [vmem:[%s3271_s18 + $0x40] sm:$0xff] %vm1363_vm10, %v1355_v2  ;;  %v1694_v49 = vpop.eup %1693 }
 0x2e0   : > { %v1696_v35 = vpop.eup %1695 }
 0x2e1   : > { %v1316_v3 = vmul.f32 -1.0, %v1286_v30 }
 0x2e2   : > { %v1248_v13 = vpop.xlane.xlu1 %1247 }
 0x2e3   : > { %v1348_v11 = vsel %vm1332_vm15, %v1316_v3, 0.0  ;;  %v1302_v63 = vmul.f32 %v1680_v33, %v1248_v13  ;;  %v1698_v33 = vpop.eup %1697 }
 0x2e4   : > { %1365 = vst.msk [vmem:[%s3271_s18 + $0x8] sm:$0xff] %vm1363_vm10, %v1348_v11  ;;  %v1700_v61 = vpop.eup %1699 }
 0x2e5   : > { %v1324_v15 = vmul.f32 -1.0, %v1302_v63 }
 0x2e7   : > { %v1227_v12 = vpop.xlane.xlu0 %1226  ;;  %v1356_v32 = vsel %vm1340_vm9, %v1324_v15, 0.0 }
 0x2e8   : > { %v1288_v60 = vmul.f32 %v1682_v41, %v1227_v12  ;;  %1373 = vst.msk [vmem:[%s3271_s18 + $0x48] sm:$0xff] %vm1363_vm10, %v1356_v32  ;;  %v1702_v41 = vpop.eup %1701 }
 0x2e9   : > { %v1704_v48 = vpop.eup %1703 }
 0x2ea   : > { %v1230_v58 = vpop.xlane.xlu1 %1229  ;;  %v1317_v39 = vmul.f32 -1.0, %v1288_v60 }
 0x2eb   : > { %v1290_v46 = vmul.f32 %v1684_v43, %v1230_v58 }
 0x2ec   : > { %v1349_v56 = vsel %vm1333_vm6, %v1317_v39, 0.0 }
 0x2ed   : > { %v1318_v22 = vmul.f32 -1.0, %v1290_v46  ;;  %1366 = vst.msk [vmem:[%s3271_s18 + $0x10] sm:$0xff] %vm1363_vm10, %v1349_v56 }
 0x2ee   : > { %v1251_v8 = vpop.xlane.xlu0 %1250 }
 0x2ef   : > { %v1350_v17 = vsel %vm1334_vm11, %v1318_v22, 0.0  ;;  %v1304_v26 = vmul.f32 %v1686_v0, %v1251_v8 }
 0x2f0   : > { %1367 = vst.msk [vmem:[%s3271_s18 + $0x18] sm:$0xff] %vm1363_vm10, %v1350_v17 }
 0x2f1   : > { %v1254_v52 = vpop.xlane.xlu1 %1253  ;;  %v1325_v54 = vmul.f32 -1.0, %v1304_v26 }
 0x2f2   : > { %v1306_v62 = vmul.f32 %v1688_v23, %v1254_v52 }
 0x2f3   : > { %v1357_v9 = vsel %vm1341_vm12, %v1325_v54, 0.0 }
 0x2f4   : > { %v1326_v36 = vmul.f32 -1.0, %v1306_v62  ;;  %1374 = vst.msk [vmem:[%s3271_s18 + $0x50] sm:$0xff] %vm1363_vm10, %v1357_v9 }
 0x2f5   : > { %v1233_v20 = vpop.xlane.xlu0 %1232 }
 0x2f6   : > { %v1292_v27 = vmul.f32 %v1690_v6, %v1233_v20  ;;  %v1358_v1 = vsel %vm1342_vm5, %v1326_v36, 0.0 }
 0x2f7   : > { %v1236_v16 = vpop.xlane.xlu1 %1235  ;;  %1375 = vst.msk [vmem:[%s3271_s18 + $0x58] sm:$0xff] %vm1363_vm10, %v1358_v1 }
 0x2f8   : > { %v1319_v14 = vmul.f32 -1.0, %v1292_v27  ;;  %v1294_v44 = vmul.f32 %v1692_v19, %v1236_v16 }
 0x2fa   : > { %v1257_v40 = vpop.xlane.xlu0 %1256  ;;  %v1351_v7 = vsel %vm1335_vm14, %v1319_v14, 0.0  ;;  %v1320_v59 = vmul.f32 -1.0, %v1294_v44 }
 0x2fb   : > { %v1308_v2 = vmul.f32 %v1694_v49, %v1257_v40  ;;  %1368 = vst.msk [vmem:[%s3271_s18 + $0x20] sm:$0xff] %vm1363_vm10, %v1351_v7 }
 0x2fc   : > { %v1352_v30 = vsel %vm1336_vm7, %v1320_v59, 0.0 }
 0x2fd   : > { %v1327_v5 = vmul.f32 -1.0, %v1308_v2  ;;  %v1260_v3 = vpop.xlane.xlu1 %1259  ;;  %1369 = vst.msk [vmem:[%s3271_s18 + $0x28] sm:$0xff] %vm1363_vm10, %v1352_v30 }
 0x2fe   : > { %v1310_v21 = vmul.f32 %v1696_v35, %v1260_v3 }
 0x2ff   : > { %v1239_v4 = vpop.xlane.xlu0 %1238  ;;  %v1359_v24 = vsel %vm1343_vm8, %v1327_v5, 0.0 }
 0x300   : > { %v1296_v13 = vmul.f32 %v1698_v33, %v1239_v4  ;;  %1376 = vst.msk [vmem:[%s3271_s18 + $0x60] sm:$0xff] %vm1363_vm10, %v1359_v24  ;;  %v1328_v11 = vmul.f32 -1.0, %v1310_v21 }
 0x301   : > { %v1242_v55 = vpop.xlane.xlu1 %1241 }
 0x302   : > { %v1321_v63 = vmul.f32 -1.0, %v1296_v13  ;;  %v1360_v57 = vsel %vm1344_vm0, %v1328_v11, 0.0  ;;  %v1298_v25 = vmul.f32 %v1700_v61, %v1242_v55 }
 0x303   : > { %v1263_v15 = vpop.xlane.xlu0 %1262  ;;  %1377 = vst.msk [vmem:[%s3271_s18 + $0x68] sm:$0xff] %vm1363_vm10, %v1360_v57 }
 0x304   : > { %v1353_v53 = vsel %vm1337_vm2, %v1321_v63, 0.0  ;;  %v1312_v12 = vmul.f32 %v1702_v41, %v1263_v15  ;;  %v1322_v10 = vmul.f32 -1.0, %v1298_v25 }
 0x305   : > { %1370 = vst.msk [vmem:[%s3271_s18 + $0x30] sm:$0xff] %vm1363_vm10, %v1353_v53 }
 0x306   : > { %v1329_v60 = vmul.f32 -1.0, %v1312_v12  ;;  %v1266_v43 = vpop.xlane.xlu1 %1265  ;;  %v1354_v32 = vsel %vm1338_vm4, %v1322_v10, 0.0 }
 0x307   : > { %v1314_v58 = vmul.f32 %v1704_v48, %v1266_v43  ;;  %1371 = vst.msk [vmem:[%s3271_s18 + $0x38] sm:$0xff] %vm1363_vm10, %v1354_v32 }
 0x308   : > { %v1361_v39 = vsel %vm1345_vm13, %v1329_v60, 0.0 }
 0x309   : > { %1378 = vst.msk [vmem:[%s3271_s18 + $0x70] sm:$0xff] %vm1363_vm10, %v1361_v39  ;;  %v1330_v50 = vmul.f32 -1.0, %v1314_v58 }
 0x30b   : > { %v1362_v46 = vsel %vm1346_vm3, %v1330_v50, 0.0 }
 0x30c   : > { %1379 = vst.msk [vmem:[%s3271_s18 + $0x78] sm:$0xff] %vm1363_vm10, %v1362_v46 }
 0x30d PF: > { %s16_s20 = sadd.s32 1, %s1711_s20  }
 0x30e   : > { %p13_p4 = scmp.ge.s32.totalorder %s16_s20, 4  }
 0x310   :  { %15 = sbr.rel (!%p13_p4) target bundleno = 2 (0x2), region = 69 }

// kernel: _contrastive_pallas.1
= control target key start
LH: loop header
LB: loop body
LE: loop exit
PB: predicated region body
PF: predicated region fallthrough
CT: control target
= control target key end

     0   :  { %s1749_s20 = smov 0   ;;  %s3341_s0 = inlined_call_operand.<no memory space> [shape: s32[1], index: 0, kind: input, shape index: {}]   ;;  %s3342_s1 = inlined_call_operand.vmem [shape: s32[256,1], index: 1, kind: input, shape index: {}]   ;;  %s3343_s2 = inlined_call_operand.vmem [shape: s32[1,256], index: 2, kind: input, shape index: {}]   ;;  %s3344_s3 = inlined_call_operand.vmem [shape: f32[256,32], index: 3, kind: input, shape index: {}]   ;;  %s3345_s4 = inlined_call_operand.vmem [shape: bf16[32,256], index: 4, kind: input, shape index: {}]   ;;  %s3346_s5 = inlined_call_operand.vmem [shape: f32[256,1], index: 5, kind: output, shape index: {}]  }
   0x1   :  { %10 = sst [smem:[#allocation3]] %s3341_s0 }
   0x2 LB: > { %s1448_s21 = sadd.s32 4294967295, %s1711_s20   ;;  %p1452_p0 = scmp.ge.s32.totalorder %s1711_s20, 1  ;;  %s1711_s20 = sphi %s1749_s20, %s16_s20  }
   0x3   : > { %p176_p1 = scmp.lt.s32.totalorder %s1711_s20, 3 }
   0x5   : > { %p177_p2 = pnand %p1452_p0, %p176_p1 }
   0x7   : > { %180 = sbr.rel (%p177_p2) target bundleno = 781 (0x30d), region = 36 }
   0xe   : > { %v1539_v0 = vld [vmem:[%s3345_s4 + $0x4] ss:$8 sps:$4 sm:$0xff]   ;;  %s1453_s0 = sshll.u32 %s1448_s21, 4  ;;  %v1541_v1 = vld [vmem:[%s3345_s4] ss:$8 sps:$4 sm:$0xff]   ;;  %v1713_v2 = vmov 0  }
   0xf   : > { %349 = vmatprep.mubr.bf16.mxu0 %v1713_v2  ;;  %389 = vmatprep.mubr.bf16.mxu1 %v1713_v2  ;;  %p208_p3 = scmp.lt.s32.totalorder %s1453_s0, 31  ;;  %v1542_v3 = vld [vmem:[%s3345_s4 + $0x14] ss:$8 sps:$4 sm:$0xff]   ;;  %v1544_v4 = vld [vmem:[%s3345_s4 + $0x10] ss:$8 sps:$4 sm:$0xff]   ;;  %vm292_vm0 = vcmask 261120  }
  0x10   : > { %317 = vmatprep.subr.bf16.mxu0 %v1539_v0  ;;  %1522 = vmatprep.subr.bf16.mxu1 %v1539_v0  ;;  %s1970_s14 = sld [smem:[#allocation3]]  ;;  %vm3395_vm8 = vmmov 1   ;;  %s1459_s15 = sshll.u32 %s1448_s21, 7 }
  0x11   : > { %318 = vmatpush1.bf16.msra.mxu0 %v1541_v1  ;;  %1524 = vmatpush1.bf16.msra.mxu1 %v1541_v1  ;;  %s3730_s0 = smov (!%p208_p3, %s1453_s0), 31 }
  0x12   : > { %319 = vmatprep.subr.bf16.mxu0 %v1542_v3  ;;  %1523 = vmatprep.subr.bf16.mxu1 %v1542_v3  ;;  %s1773_s30 = sshll.u32 %s3730_s0, 3 }
  0x13   : > { %1538 = vset.pattern.permute.xlu1 %v1713_v2  ;;  %1537 = vset.pattern.permute.xlu0 %v1713_v2  ;;  %s1781_s8 = scalar_lea.vmem %s3344_s3, %s1773_s30  ;;  %s1795_s11 = scalar_lea.vmem %s3342_s1, %s1773_s30 }
  0x14   : > { %v228_v5 = vld [vmem:[%s1781_s8] sm:$0xff]  ;;  %v229_v6 = vld [vmem:[%s1781_s8 + $0x8] sm:$0xff]  ;;  %v230_v13 = vld [vmem:[%s1781_s8 + $0x10] sm:$0xff]  ;;  %s3271_s18 = scalar_lea.vmem %s3346_s5, %s1773_s30 }
  0x15   : > { %320 = vmatpush1.bf16.msra.mxu0 %v1544_v4  ;;  %1525 = vmatpush1.bf16.msra.mxu1 %v1544_v4  ;;  %v236_v7 = vld [vmem:[%s1781_s8 + $0x40] sm:$0xff]  ;;  %v244_v8 = vmul.f32 14.285714, %v228_v5  ;;  %v245_v9 = vmul.f32 14.285714, %v229_v6  ;;  %v237_v10 = vld [vmem:[%s1781_s8 + $0x48] sm:$0xff] }
  0x16   : > { %v252_v11 = vmul.f32 14.285714, %v236_v7  ;;  %v253_v12 = vmul.f32 14.285714, %v237_v10  ;;  %v231_v14 = vld [vmem:[%s1781_s8 + $0x18] sm:$0xff]  ;;  %v238_v16 = vld [vmem:[%s1781_s8 + $0x50] sm:$0xff] }
  0x17   : > { %v260_v15 = vpack.c.bf16 %v245_v9, %v244_v8  ;;  %v239_v17 = vld [vmem:[%s1781_s8 + $0x58] sm:$0xff]  ;;  %v246_v19 = vmul.f32 14.285714, %v230_v13  ;;  %v247_v20 = vmul.f32 14.285714, %v231_v14  ;;  %v575_v23 = vld [vmem:[%s1795_s11 + $0x8] sm:$0xff] }
  0x18   : > { %v264_v18 = vpack.c.bf16 %v253_v12, %v252_v11  ;;  %v254_v21 = vmul.f32 14.285714, %v238_v16  ;;  %v255_v22 = vmul.f32 14.285714, %v239_v17  ;;  %595 = vperm.xlu1 %1538, %v575_v23   ;;  %v576_v25 = vld [vmem:[%s1795_s11 + $0x10] sm:$0xff]  ;;  %v232_v27 = vld [vmem:[%s1781_s8 + $0x20] sm:$0xff] }
  0x19   : > { %1464 = vmatmul.mubr.msk.bf16.vlgmr.msra.gmra.mrb[0].mxu0 %vm292_vm0, %v260_v15  ;;  %v261_v24 = vpack.c.bf16 %v247_v20, %v246_v19  ;;  %v233_v28 = vld [vmem:[%s1781_s8 + $0x28] sm:$0xff]  ;;  %v240_v29 = vld [vmem:[%s1781_s8 + $0x60] sm:$0xff]  ;;  %v248_v32 = vmul.f32 14.285714, %v232_v27  ;;  %v577_v34 = vld [vmem:[%s1795_s11 + $0x18] sm:$0xff] }
  0x1a   : > { %1468 = vmatmul.mubr.msk.bf16.vlgmr.msra.gmra.mrb[0].mxu1 %vm292_vm0, %v264_v18  ;;  %359 = vmatprep.mubr.bf16.mxu0 %v1713_v2  ;;  %v265_v26 = vpack.c.bf16 %v255_v22, %v254_v21  ;;  %v241_v30 = vld [vmem:[%s1781_s8 + $0x68] sm:$0xff]  ;;  %v574_v31 = vld [vmem:[%s1795_s11] sm:$0xff]  ;;  %v249_v33 = vmul.f32 14.285714, %v233_v28  ;;  %v256_v36 = vmul.f32 14.285714, %v240_v29 }
  0x1b   : > { %399 = vmatprep.mubr.bf16.mxu1 %v1713_v2  ;;  %592 = vperm.xlu0 %1537, %v574_v31   ;;  %v583_v35 = vld [vmem:[%s1795_s11 + $0x48] sm:$0xff]  ;;  %v257_v37 = vmul.f32 14.285714, %v241_v30  ;;  %v578_v39 = vld [vmem:[%s1795_s11 + $0x20] sm:$0xff]  ;;  %v585_v40 = vld [vmem:[%s1795_s11 + $0x58] sm:$0xff] }
  0x1c   : > { %598 = vperm.xlu1 %1538, %v576_v25   ;;  %v262_v38 = vpack.c.bf16 %v249_v33, %v248_v32  ;;  %v234_v42 = vld [vmem:[%s1781_s8 + $0x30] sm:$0xff]  ;;  %v235_v43 = vld [vmem:[%s1781_s8 + $0x38] sm:$0xff]  ;;  %v579_v48 = vld [vmem:[%s1795_s11 + $0x28] sm:$0xff] }
  0x1d   : > { %v266_v41 = vpack.c.bf16 %v257_v37, %v256_v36  ;;  %v242_v44 = vld [vmem:[%s1781_s8 + $0x70] sm:$0xff]  ;;  %v243_v45 = vld [vmem:[%s1781_s8 + $0x78] sm:$0xff]  ;;  %v250_v46 = vmul.f32 14.285714, %v234_v42  ;;  %v251_v47 = vmul.f32 14.285714, %v235_v43 }
  0x1e   : > { %v587_v49 = vld [vmem:[%s1795_s11 + $0x68] sm:$0xff]  ;;  %v258_v50 = vmul.f32 14.285714, %v242_v44  ;;  %v259_v51 = vmul.f32 14.285714, %v243_v45  ;;  %v580_v53 = vld [vmem:[%s1795_s11 + $0x30] sm:$0xff] }
  0x1f   : > { %619 = vperm.xlu0 %1537, %v583_v35   ;;  %v263_v52 = vpack.c.bf16 %v251_v47, %v250_v46  ;;  %v581_v55 = vld [vmem:[%s1795_s11 + $0x38] sm:$0xff]  ;;  %v582_v56 = vld [vmem:[%s1795_s11 + $0x40] sm:$0xff]  ;;  %v584_v57 = vld [vmem:[%s1795_s11 + $0x50] sm:$0xff] }
  0x20   : > { %601 = vperm.xlu1 %1538, %v577_v34   ;;  %v267_v54 = vpack.c.bf16 %v259_v51, %v258_v50  ;;  %v586_v58 = vld [vmem:[%s1795_s11 + $0x60] sm:$0xff]  ;;  %v588_v43 = vld [vmem:[%s1795_s11 + $0x70] sm:$0xff]  ;;  %v589_v44 = vld [vmem:[%s1795_s11 + $0x78] sm:$0xff] }
  0x21   : > { %1465 = vmatmul.mubr.msk.bf16.gmra.mrb[4].mxu0 %vm292_vm0, %v261_v24 }
  0x22   : > { %1469 = vmatmul.mubr.msk.bf16.gmra.mrb[4].mxu1 %vm292_vm0, %v265_v26  ;;  %369 = vmatprep.mubr.bf16.mxu0 %v1713_v2 }
  0x23   : > { %409 = vmatprep.mubr.bf16.mxu1 %v1713_v2  ;;  %625 = vperm.xlu0 %1537, %v585_v40  }
  0x24   : > { %604 = vperm.xlu1 %1538, %v578_v39  }
  0x27   : > { %631 = vperm.xlu0 %1537, %v587_v49  }
  0x28   : > { %607 = vperm.xlu1 %1538, %v579_v48  }
  0x29   : > { %1466 = vmatmul.mubr.msk.bf16.gmra.mrb[8].mxu0 %vm292_vm0, %v262_v38 }
  0x2a   : > { %1470 = vmatmul.mubr.msk.bf16.gmra.mrb[8].mxu1 %vm292_vm0, %v266_v41  ;;  %379 = vmatprep.mubr.bf16.mxu0 %v1713_v2 }
  0x2b   : > { %419 = vmatprep.mubr.bf16.mxu1 %v1713_v2 }
  0x2c   : > { %610 = vperm.xlu1 %1538, %v580_v53  }
  0x30   : > { %613 = vperm.xlu1 %1538, %v581_v55  }
  0x31   : > { %1467 = vmatmul.mubr.msk.bf16.gmra.mrb[12].mxu0 %vm292_vm0, %v263_v52 }
  0x32   : > { %1471 = vmatmul.mubr.msk.bf16.gmra.mrb[12].mxu1 %vm292_vm0, %v267_v54  ;;  %v639_v54 = vlaneseq }
  0x34   : > { %616 = vperm.xlu1 %1538, %v582_v56   ;;  %v1951_v56 = vshrl.u32 %v639_v54, 7 }
  0x36   : > { %3445 = vst [vmem:[#allocation8_spill] sm:$0xff] %v1951_v56 }
  0x38   : > { %622 = vperm.xlu1 %1538, %v584_v57  }
  0x3c   : > { %628 = vperm.xlu1 %1538, %v586_v58  }
  0x97   : > { %v1931_v45 = vpop.permute.xlu1 %595 }
  0x9a   : > { %v1943_v51 = vpop.permute.xlu0 %592 }
  0x9b   : > { %v1933_v46 = vpop.permute.xlu1 %598 }
  0x9e   : > { %v1947_v53 = vpop.permute.xlu0 %619 }
  0x9f   : > { %v1935_v47 = vpop.permute.xlu1 %601 }
  0xa2   : > { %v1953_v57 = vpop.permute.xlu0 %625 }
  0xa3   : > { %v1937_v48 = vpop.permute.xlu1 %604  ;;  %3446 = vst [vmem:[#allocation9_spill] sm:$0xff] %v1953_v57 }
  0xa4   : > { %3441 = vst [vmem:[#allocation4_spill] sm:$0xff] %v1937_v48 }
  0xa7   : > { %v1939_v49 = vpop.permute.xlu1 %607 }
  0xa8   : > { %3442 = vst [vmem:[#allocation5_spill] sm:$0xff] %v1939_v49 }
  0xab   : > { %v1941_v50 = vpop.permute.xlu1 %610 }
  0xac   : > { %3443 = vst [vmem:[#allocation6_spill] sm:$0xff] %v1941_v50 }
  0xaf   : > { %v1945_v52 = vpop.permute.xlu1 %613 }
  0xb0   : > { %3444 = vst [vmem:[#allocation7_spill] sm:$0xff] %v1945_v52 }
  0xb3   : > { %v1949_v55 = vpop.permute.xlu1 %616 }
  0xb7   : > { %v1955_v58 = vpop.permute.xlu1 %622 }
  0xb8   : > { %3447 = vst [vmem:[#allocation10_spill] sm:$0xff] %v1955_v58 }
  0xec   : > { %v1833_v59 = vpop.f32.mrb[0].mxu0 }
  0xed   : > { %v1835_v60 = vpop.f32.mrb[0].mxu1  ;;  %v1837_v61 = vpop.f32.mrb[1].mxu0 }
  0xee   : > { %v1839_v62 = vpop.f32.mrb[1].mxu1  ;;  %v1841_v63 = vpop.f32.mrb[2].mxu0  ;;  %v430_v0 = vmax.f32 %v1833_v59, %v1837_v61 }
  0xef   : > { %v1845_v1 = vpop.f32.mrb[2].mxu1  ;;  %v1847_v2 = vpop.f32.mrb[3].mxu0  ;;  %v454_v3 = vmax.f32 %v1835_v60, %v1839_v62 }
  0xf0   : > { %v1851_v4 = vpop.f32.mrb[3].mxu1  ;;  %431 = vmax.xlane.f32.xlu0 %v430_v0  ;;  %v433_v5 = vmax.f32 %v1841_v63, %v1847_v2  ;;  %v641_v0 = vsub.s32 0, %v1951_v56 }
  0xf1   : > { %v457_v6 = vmax.f32 %v1845_v1, %v1851_v4 }
  0xf3   : > { %458 = vmax.xlane.f32.xlu1 %v457_v6  ;;  %v1962_v6 = vpop.permute.xlu0 %631 }
  0xf4   : > { %v1857_v7 = vpop.f32.mrb[4].mxu0  ;;  %455 = vmax.xlane.f32.xlu0 %v454_v3  ;;  %v645_v3 = vsub.s32 1, %v1951_v56  ;;  %3448 = vst [vmem:[#allocation11_spill] sm:$0xff] %v1962_v6 }
  0xf5   : > { %v1859_v8 = vpop.f32.mrb[5].mxu0  ;;  %v1861_v9 = vpop.f32.mrb[4].mxu1 }
  0xf6   : > { %v1863_v10 = vpop.f32.mrb[6].mxu0  ;;  %v436_v11 = vmax.f32 %v1857_v7, %v1859_v8  ;;  %v1867_v12 = vpop.f32.mrb[5].mxu1 }
  0xf7   : > { %v1869_v13 = vpop.f32.mrb[7].mxu0  ;;  %v1871_v14 = vpop.f32.mrb[6].mxu1  ;;  %v460_v15 = vmax.f32 %v1861_v9, %v1867_v12 }
  0xf8   : > { %437 = vmax.xlane.f32.xlu1 %v436_v11  ;;  %434 = vmax.xlane.f32.xlu0 %v433_v5  ;;  %v439_v16 = vmax.f32 %v1863_v10, %v1869_v13  ;;  %v1877_v17 = vpop.f32.mrb[7].mxu1  ;;  %v590_v5 = vld [vmem:[%s3343_s2] sm:$0x3] }
  0xf9   : > { %v463_v18 = vmax.f32 %v1871_v14, %v1877_v17  ;;  %v1964_v11 = vrot.slane %v590_v5, %v641_v0  ;;  %v2033_v0 = vstv %s1970_s14 }
  0xfa   : > { %3461 = vst [vmem:[#allocation20_spill] sm:$0xff] %v2033_v0 }
  0xfb   : > { %vm3351_vm1 = vcmp.eq.s32.totalorder %v1931_v45, %v1964_v11  ;;  %vm3347_vm4 = vcmp.eq.s32.totalorder %v1943_v51, %v1964_v11  ;;  %vm3353_vm7 = vcmp.eq.s32.totalorder %v1935_v47, %v1964_v11  ;;  %vm3352_vm12 = vcmp.eq.s32.totalorder %v1947_v53, %v1964_v11 }
  0xfc   : > { %v1881_v19 = vpop.f32.mrb[8].mxu0  ;;  %440 = vmax.xlane.f32.xlu1 %v439_v16  ;;  %461 = vmax.xlane.f32.xlu0 %v460_v15  ;;  %v1966_v15 = vrot.slane %v590_v5, %v645_v3  ;;  %v1968_v16 = vpop.permute.xlu1 %628  ;;  %vm2012_vm9 = vmxor %vm3351_vm1, %vm3395_vm8  ;;  %vm3354_vm13 = vcmp.eq.s32.totalorder %v1949_v55, %v1964_v11 }
  0xfd   : > { %v1883_v20 = vpop.f32.mrb[9].mxu0  ;;  %v1885_v21 = vpop.f32.mrb[8].mxu1  ;;  %3449 = vst [vmem:[#allocation12_spill] sm:$0xff] %v1968_v16  ;;  %vm2041_vm14 = vmxor %vm3347_vm4, %vm3395_vm8 }
  0xfe   : > { %v1887_v22 = vpop.f32.mrb[10].mxu0  ;;  %v442_v23 = vmax.f32 %v1881_v19, %v1883_v20  ;;  %v1891_v24 = vpop.f32.mrb[9].mxu1  ;;  %vm3348_vm2 = vcmp.eq.s32.totalorder %v1931_v45, %v1966_v15  ;;  %vm3349_vm6 = vcmp.eq.s32.totalorder %v1943_v51, %v1966_v15  ;;  %vm3358_vm10 = vcmp.eq.s32.totalorder %v1935_v47, %v1966_v15  ;;  %vm2102_vm1 = vmxor %vm3354_vm13, %vm3395_vm8 }
  0xff   : > { %v1893_v25 = vpop.f32.mrb[11].mxu0  ;;  %v1895_v26 = vpop.f32.mrb[10].mxu1  ;;  %v466_v27 = vmax.f32 %v1885_v21, %v1891_v24  ;;  %vm2024_vm11 = vmxor %vm3348_vm2, %vm3395_vm8  ;;  %vm3365_vm15 = vcmp.eq.s32.totalorder %v1947_v53, %v1966_v15  ;;  %vm3485_vm13 = vcmp.eq.s32.totalorder %v1949_v55, %v1966_v15 }
 0x100   : > { %464 = vmax.xlane.f32.xlu1 %v463_v18  ;;  %443 = vmax.xlane.f32.xlu0 %v442_v23  ;;  %v445_v28 = vmax.f32 %v1887_v22, %v1893_v25  ;;  %v1901_v29 = vpop.f32.mrb[11].mxu1  ;;  %vm2056_vm4 = vmxor %vm3349_vm6, %vm3395_vm8 }
 0x101   : > { %v469_v30 = vmax.f32 %v1895_v26, %v1901_v29  ;;  %vm2075_vm6 = vmxor %vm3352_vm12, %vm3395_vm8 }
 0x102   : > { %vm2094_vm12 = vmxor %vm3353_vm7, %vm3395_vm8 }
 0x103   : > { %vm2115_vm7 = vmxor %vm3358_vm10, %vm3395_vm8 }
 0x104   : > { %v1905_v31 = vpop.f32.mrb[12].mxu0  ;;  %446 = vmax.xlane.f32.xlu1 %v445_v28  ;;  %467 = vmax.xlane.f32.xlu0 %v466_v27  ;;  %vm2129_vm2 = vmxor %vm3365_vm15, %vm3395_vm8  ;;  %vm3491_vm15 = vcmp.eq.s32.totalorder %v1933_v46, %v1964_v11 }
 0x105   : > { %v1907_v32 = vpop.f32.mrb[13].mxu0  ;;  %v1909_v33 = vpop.f32.mrb[12].mxu1  ;;  %vm2144_vm3 = vmxor %vm3485_vm13, %vm3395_vm8  ;;  %vm3495_vm13 = vcmp.eq.s32.totalorder %v1933_v46, %v1966_v15 }
 0x106   : > { %v1911_v34 = vpop.f32.mrb[14].mxu0  ;;  %v448_v35 = vmax.f32 %v1905_v31, %v1907_v32  ;;  %v1915_v36 = vpop.f32.mrb[13].mxu1  ;;  %vm2161_vm5 = vmxor %vm3491_vm15, %vm3395_vm8 }
 0x107   : > { %v1917_v37 = vpop.f32.mrb[15].mxu0  ;;  %v1919_v38 = vpop.f32.mrb[14].mxu1  ;;  %v472_v39 = vmax.f32 %v1909_v33, %v1915_v36 }
 0x108   : > { %470 = vmax.xlane.f32.xlu1 %v469_v30  ;;  %449 = vmax.xlane.f32.xlu0 %v448_v35  ;;  %v451_v40 = vmax.f32 %v1911_v34, %v1917_v37  ;;  %v1925_v41 = vpop.f32.mrb[15].mxu1 }
 0x109   : > { %v475_v42 = vmax.f32 %v1919_v38, %v1925_v41 }
 0x10c   : > { %452 = vmax.xlane.f32.xlu1 %v451_v40  ;;  %473 = vmax.xlane.f32.xlu0 %v472_v39  ;;  %v1998_v40 = vand.u32 127, %v639_v54 }
 0x10e   : > { %3454 = vst [vmem:[#allocation17_spill] sm:$0xff] %v1998_v40  ;;  %vm2086_vm0 = vcmp.lt.s32.totalorder %v1998_v40, %v2033_v0 }
 0x10f   : > { %vm755_vm15 = vmand %vm2041_vm14, %vm2086_vm0 }
 0x110   : > { %476 = vmax.xlane.f32.xlu1 %v475_v42 }
 0x121   : > { %634 = vperm.xlu1 %1538, %v588_v43  }
 0x122   : > { %637 = vperm.xlu0 %1537, %v589_v44  }
 0x17d   : > { %v432_v18 = vpop.xlane.xlu0 %431 }
 0x17e   : > { %v1973_v23 = vsub.f32 %v1833_v59, %v432_v18  ;;  %v1976_v27 = vsub.f32 %v1837_v61, %v432_v18 }
 0x180   : > { %3450 = vst [vmem:[#allocation13_spill] sm:$0xff] %v1973_v23  ;;  %3451 = vst [vmem:[#allocation14_spill] sm:$0xff] %v1976_v27  ;;  %v510_v28 = vmul.f32 1.442695, %v1973_v23  ;;  %v512_v59 = vmul.f32 1.442695, %v1976_v27  ;;  %v459_v30 = vpop.xlane.xlu1 %458 }
 0x181   : > { %v1993_v61 = vsub.f32 %v1845_v1, %v459_v30  ;;  %v1996_v35 = vsub.f32 %v1851_v4, %v459_v30  ;;  %v456_v39 = vpop.xlane.xlu0 %455  ;;  %v3492_v27 = vmov 0 }
 0x182   : > { %1545 = vpow2.f32 %v510_v28  ;;  %v2003_v42 = vsub.f32 %v1835_v60, %v456_v39  ;;  %v2006_v43 = vsub.f32 %v1839_v62, %v456_v39  ;;  %v2048_v28 = vadd.s32 128, %v1998_v40 }
 0x183   : > { %3452 = vst [vmem:[#allocation15_spill] sm:$0xff] %v1993_v61  ;;  %3453 = vst [vmem:[#allocation16_spill] sm:$0xff] %v1996_v35  ;;  %1547 = vpow2.f32 %v512_v59  ;;  %v546_v4 = vmul.f32 1.442695, %v1993_v61  ;;  %v548_v60 = vmul.f32 1.442695, %v1996_v35 }
 0x184   : > { %3455 = vst [vmem:[#allocation18_spill] sm:$0xff] %v2003_v42  ;;  %3456 = vst [vmem:[#allocation19_spill] sm:$0xff] %v2006_v43  ;;  %v542_v44 = vmul.f32 1.442695, %v2003_v42  ;;  %v544_v54 = vmul.f32 1.442695, %v2006_v43  ;;  %vm2136_vm10 = vcmp.lt.s32.totalorder %v2048_v28, %v2033_v0 }
 0x185   : > { %1549 = vpow2.f32 %v546_v4  ;;  %v438_v5 = vpop.xlane.xlu1 %437  ;;  %v435_v18 = vpop.xlane.xlu0 %434  ;;  %3464 = vst [vmem:[#allocation21_spill] sm:$0xff] %v2048_v28  ;;  %v3493_v27 = vsel %vm2161_vm5, 4294967295, %v3492_v27  ;;  %vm2184_vm5 = vmxor %vm3495_vm13, %vm3395_vm8 }
 0x186   : > { %1551 = vpow2.f32 %v548_v60  ;;  %v2061_v30 = vsub.f32 %v1857_v7, %v438_v5  ;;  %v2064_v39 = vsub.f32 %v1859_v8, %v438_v5  ;;  %v2067_v4 = vsub.f32 %v1841_v63, %v435_v18 }
 0x187   : > { %1553 = vpow2.f32 %v542_v44  ;;  %v2082_v7 = vsub.f32 %v1847_v2, %v435_v18  ;;  %v3475_v8 = vmov 0  ;;  %v3479_v18 = vmov 0 }
 0x188   : > { %3467 = vst [vmem:[#allocation22_spill] sm:$0xff] %v2061_v30  ;;  %3468 = vst [vmem:[#allocation23_spill] sm:$0xff] %v2064_v39  ;;  %v3476_v8 = vsel %vm2094_vm12, 4294967295, %v3475_v8  ;;  %1555 = vpow2.f32 %v544_v54  ;;  %v518_v60 = vmul.f32 1.442695, %v2061_v30  ;;  %v3480_v18 = vsel %vm2115_vm7, 4294967295, %v3479_v18 }
 0x189   : > { %3469 = vst [vmem:[#allocation24_spill] sm:$0xff] %v2067_v4  ;;  %3472 = vst [vmem:[#allocation25_spill] sm:$0xff] %v2082_v7  ;;  %v520_v44 = vmul.f32 1.442695, %v2064_v39  ;;  %v514_v5 = vmul.f32 1.442695, %v2067_v4  ;;  %v441_v30 = vpop.xlane.xlu1 %440  ;;  %v462_v61 = vpop.xlane.xlu0 %461  ;;  %vm3502_vm12 = vcmp.eq.s32.totalorder %v1939_v49, %v1964_v11 }
 0x18a   : > { %v516_v39 = vmul.f32 1.442695, %v2082_v7  ;;  %1557 = vpow2.f32 %v518_v60  ;;  %v2149_v42 = vsub.f32 %v1863_v10, %v441_v30  ;;  %v2152_v7 = vsub.f32 %v1869_v13, %v441_v30  ;;  %vm2232_vm13 = vmxor %vm3502_vm12, %vm3395_vm8 }
 0x18b   : > { %v2155_v0 = vsub.f32 %v1861_v9, %v462_v61  ;;  %1559 = vpow2.f32 %v520_v44  ;;  %v2172_v9 = vsub.f32 %v1867_v12, %v462_v61  ;;  %v3496_v13 = vmov 0 }
 0x18c   : > { %3488 = vst [vmem:[#allocation26_spill] sm:$0xff] %v2149_v42  ;;  %3489 = vst [vmem:[#allocation27_spill] sm:$0xff] %v2152_v7  ;;  %v2178_v10 = vpop.eup %1545  ;;  %v3497_v13 = vsel %vm2184_vm5, 4294967295, %v3496_v13  ;;  %1561 = vpow2.f32 %v514_v5  ;;  %v522_v12 = vmul.f32 1.442695, %v2149_v42 }
 0x18d   : > { %3490 = vst [vmem:[#allocation28_spill] sm:$0xff] %v2155_v0  ;;  %3494 = vst [vmem:[#allocation29_spill] sm:$0xff] %v2172_v9  ;;  %v524_v61 = vmul.f32 1.442695, %v2152_v7  ;;  %v550_v30 = vmul.f32 1.442695, %v2155_v0  ;;  %v2197_v60 = vpop.eup %1547  ;;  %1563 = vpow2.f32 %v516_v39  ;;  %v465_v5 = vpop.xlane.xlu1 %464 }
 0x18e   : > { %3498 = vst [vmem:[#allocation30_spill] sm:$0xff] %v2197_v60  ;;  %v552_v44 = vmul.f32 1.442695, %v2172_v9  ;;  %v444_v23 = vpop.xlane.xlu0 %443  ;;  %v787_v42 = vsel %vm755_vm15, %v2178_v10, 0.0  ;;  %1565 = vpow2.f32 %v522_v12  ;;  %v2210_v3 = vsub.f32 %v1871_v14, %v465_v5  ;;  %vm756_vm15 = vmand %vm2056_vm4, %vm2136_vm10 }
 0x18f   : > { %v2213_v39 = vsub.f32 %v1877_v17, %v465_v5  ;;  %v2216_v9 = vsub.f32 %v1881_v19, %v444_v23  ;;  %v2226_v12 = vpop.eup %1549  ;;  %v3503_v14 = vmov 0  ;;  %vm3505_vm4 = vcmp.eq.s32.totalorder %v1955_v58, %v1964_v11 }
 0x190   : > { %3499 = vst [vmem:[#allocation31_spill] sm:$0xff] %v2210_v3  ;;  %v3504_v14 = vsel %vm2232_vm13, 4294967295, %v3503_v14  ;;  %vm2242_vm5 = vmxor %vm3505_vm4, %vm3395_vm8  ;;  %1567 = vpow2.f32 %v524_v61  ;;  %v2249_v19 = vsub.f32 %v1883_v20, %v444_v23  ;;  %v788_v59 = vsel %vm756_vm15, %v2197_v60, 0.0  ;;  %v2256_v5 = vpop.eup %1551 }
 0x191   : > { %3500 = vst [vmem:[#allocation32_spill] sm:$0xff] %v2213_v39  ;;  %3501 = vst [vmem:[#allocation33_spill] sm:$0xff] %v2216_v9  ;;  %vm3509_vm4 = vcmp.eq.s32.totalorder %v1939_v49, %v1966_v15  ;;  %v3510_v0 = vmov 0  ;;  %1569 = vpow2.f32 %v550_v30  ;;  %v554_v20 = vmul.f32 1.442695, %v2210_v3  ;;  %v2275_v7 = vpop.eup %1553 }
 0x192   : > { %3508 = vst [vmem:[#allocation34_spill] sm:$0xff] %v2249_v19  ;;  %vm2262_vm7 = vmxor %vm3509_vm4, %vm3395_vm8  ;;  %v556_v23 = vmul.f32 1.442695, %v2213_v39  ;;  %v526_v61 = vmul.f32 1.442695, %v2216_v9  ;;  %vm3513_vm4 = vcmp.eq.s32.totalorder %v1937_v48, %v1964_v11  ;;  %1571 = vpow2.f32 %v552_v44  ;;  %v447_v39 = vpop.xlane.xlu1 %446  ;;  %v468_v3 = vpop.xlane.xlu0 %467 }
 0x193   : > { %v3511_v0 = vsel %vm2262_vm7, 4294967295, %v3510_v0  ;;  %vm773_vm15 = vmand %vm2075_vm6, %vm2086_vm0  ;;  %3512 = vst [vmem:[#allocation35_spill] sm:$0xff] %v2275_v7  ;;  %vm3516_vm7 = vcmp.eq.s32.totalorder %v1955_v58, %v1966_v15  ;;  %v528_v30 = vmul.f32 1.442695, %v2249_v19  ;;  %v819_v9 = vadd.f32 %v788_v59, %v787_v42  ;;  %v2297_v56 = vpop.eup %1555 }
 0x194   : > { %vm2281_vm12 = vmxor %vm3513_vm4, %vm3395_vm8  ;;  %v805_v40 = vsel %vm773_vm15, %v2226_v12, 0.0  ;;  %vm3519_vm6 = vcmp.eq.s32.totalorder %v1953_v57, %v1964_v11  ;;  %v3520_v60 = vmov 0  ;;  %1573 = vpow2.f32 %v554_v20  ;;  %v2342_v54 = vpop.eup %1557 }
 0x195   : > { %vm2291_vm13 = vmxor %vm3516_vm7, %vm3395_vm8  ;;  %v2308_v44 = vsub.f32 %v1887_v22, %v447_v39  ;;  %v2311_v42 = vsub.f32 %v1893_v25, %v447_v39  ;;  %v2314_v59 = vsub.f32 %v1885_v21, %v468_v3  ;;  %vm3525_vm15 = vcmp.eq.s32.totalorder %v1953_v57, %v1966_v15  ;;  %820 = vadd.xlane.f32.xlu1 %v819_v9  ;;  %v2359_v39 = vpop.eup %1559 }
 0x196   : > { %vm2303_vm4 = vmxor %vm3519_vm6, %vm3395_vm8  ;;  %v3526_v20 = vmov 0  ;;  %1575 = vpow2.f32 %v556_v23  ;;  %v2329_v22 = vsub.f32 %v1891_v24, %v468_v3  ;;  %v3532_v24 = vmov 0  ;;  %v450_v19 = vpop.xlane.xlu0 %449 }
 0x197   : > { %v3521_v60 = vsel %vm2303_vm4, 4294967295, %v3520_v60  ;;  %3522 = vst [vmem:[#allocation36_spill] sm:$0xff] %v2308_v44  ;;  %3523 = vst [vmem:[#allocation37_spill] sm:$0xff] %v2311_v42  ;;  %1577 = vpow2.f32 %v526_v61  ;;  %v530_v2 = vmul.f32 1.442695, %v2308_v44  ;;  %v3536_v23 = vmov 0  ;;  %v471_v44 = vpop.xlane.xlu1 %470 }
 0x198   : > { %3524 = vst [vmem:[#allocation38_spill] sm:$0xff] %v2314_v59  ;;  %vm774_vm7 = vmand %vm2129_vm2, %vm2136_vm10  ;;  %v532_v9 = vmul.f32 1.442695, %v2311_v42  ;;  %v558_v3 = vmul.f32 1.442695, %v2314_v59  ;;  %1579 = vpow2.f32 %v528_v30  ;;  %v3540_v30 = vmov 0 }
 0x199   : > { %vm2324_vm6 = vmxor %vm3525_vm15, %vm3395_vm8  ;;  %3528 = vst [vmem:[#allocation39_spill] sm:$0xff] %v2329_v22  ;;  %v806_v21 = vsel %vm774_vm7, %v2256_v5, 0.0  ;;  %vm3530_vm15 = vnez %v3476_v8  ;;  %v560_v61 = vmul.f32 1.442695, %v2329_v22  ;;  %1581 = vpow2.f32 %v530_v2 }
 0x19a   : > { %v3527_v20 = vsel %vm2324_vm6, 4294967295, %v3526_v20  ;;  %vm3529_vm2 = vmand %vm2102_vm1, %vm2086_vm0  ;;  %vm3531_vm6 = vcmp.eq.s32.totalorder %v1937_v48, %v1966_v15  ;;  %vm3534_vm1 = vnez %v3480_v18  ;;  %v846_v42 = vadd.f32 %v806_v21, %v805_v40 }
 0x19b   : > { %v803_v25 = vsel %vm3529_vm2, %v2275_v7, 0.0  ;;  %vm2348_vm4 = vmxor %vm3531_vm6, %vm3395_vm8  ;;  %vm3535_vm6 = vcmp.eq.s32.totalorder %v1968_v16, %v1964_v11  ;;  %v2376_v7 = vpop.eup %1561  ;;  %v2387_v43 = vsub.f32 %v1895_v26, %v471_v44  ;;  %v2390_v21 = vsub.f32 %v1901_v29, %v471_v44 }
 0x19c   : > { %v3533_v24 = vsel %vm2348_vm4, 4294967295, %v3532_v24  ;;  %vm2365_vm2 = vmxor %vm3535_vm6, %vm3395_vm8  ;;  %vm3539_vm6 = vcmp.eq.s32.totalorder %v1962_v6, %v1964_v11  ;;  %v2396_v22 = vpop.eup %1563  ;;  %v3546_v2 = vmov 0  ;;  %1583 = vpow2.f32 %v532_v9  ;;  %847 = vadd.xlane.f32.xlu1 %v846_v42 }
 0x19d   : > { %v3537_v23 = vsel %vm2365_vm2, 4294967295, %v3536_v23  ;;  %vm3538_vm7 = vmand %vm2144_vm3, %vm2136_vm10  ;;  %3542 = vst [vmem:[#allocation40_spill] sm:$0xff] %v2387_v43  ;;  %vm3544_vm3 = vnez %v3493_v27  ;;  %v2407_v26 = vsub.f32 %v1905_v31, %v450_v19  ;;  %v2410_v29 = vsub.f32 %v1907_v32, %v450_v19 }
 0x19e   : > { %v804_v59 = vsel %vm3538_vm7, %v2297_v56, 0.0  ;;  %vm2382_vm14 = vmxor %vm3539_vm6, %vm3395_vm8  ;;  %3543 = vst [vmem:[#allocation41_spill] sm:$0xff] %v2390_v21  ;;  %vm3545_vm6 = vcmp.eq.s32.totalorder %v1962_v6, %v1966_v15  ;;  %vm3554_vm2 = vcmp.eq.s32.totalorder %v1968_v16, %v1966_v15  ;;  %v3555_v31 = vmov 0 }
 0x19f   : > { %v3541_v30 = vsel %vm2382_vm14, 4294967295, %v3540_v30  ;;  %v843_v40 = vadd.f32 %v804_v59, %v803_v25  ;;  %vm2402_vm14 = vmxor %vm3545_vm6, %vm3395_vm8  ;;  %3548 = vst [vmem:[#allocation42_spill] sm:$0xff] %v2407_v26  ;;  %vm3551_vm6 = vnez %v3497_v13  ;;  %v2422_v59 = vpop.eup %1565  ;;  %1585 = vpow2.f32 %v558_v3 }
 0x1a0   : > { %v3547_v2 = vsel %vm2402_vm14, 4294967295, %v3546_v2  ;;  %3549 = vst [vmem:[#allocation43_spill] sm:$0xff] %v2410_v29  ;;  %vm3550_vm7 = vmand %vm2012_vm9, %vm2086_vm0  ;;  %vm3553_vm14 = vmmov 1   ;;  %v562_v32 = vmul.f32 1.442695, %v2387_v43  ;;  %v2444_v42 = vpop.eup %1567  ;;  %v3560_v25 = vmov 0 }
 0x1a1   : > { %v789_v44 = vsel %vm3550_vm7, %v2376_v7, 0.0  ;;  %3552 = vst [vmem:[#allocation44_spill] sm:$0xff] %v2422_v59  ;;  %vm2428_vm4 = vmxor %vm3554_vm2, %vm3553_vm14  ;;  %844 = vadd.xlane.f32.xlu0 %v843_v40  ;;  %v564_v1 = vmul.f32 1.442695, %v2390_v21  ;;  %vm3559_vm7 = vcmp.eq.s32.totalorder %v1945_v52, %v1964_v11  ;;  %1587 = vpow2.f32 %v560_v61  ;;  %v453_v40 = vpop.xlane.xlu1 %452  ;;  %v474_v21 = vpop.xlane.xlu0 %473 }
 0x1a2   : > { %v3556_v31 = vsel %vm2428_vm4, 4294967295, %v3555_v31  ;;  %vm3557_vm9 = vmand %vm2024_vm11, %vm2136_vm10  ;;  %3558 = vst [vmem:[#allocation45_spill] sm:$0xff] %v2444_v42  ;;  %v534_v62 = vmul.f32 1.442695, %v2407_v26  ;;  %v536_v9 = vmul.f32 1.442695, %v2410_v29  ;;  %v2460_v43 = vpop.eup %1569  ;;  %1589 = vpow2.f32 %v562_v32 }
 0x1a3   : > { %v790_v19 = vsel %vm3557_vm9, %v2396_v22, 0.0  ;;  %vm2450_vm8 = vmxor %vm3559_vm7, %vm3553_vm14  ;;  %vm3562_vm9 = vcmp.eq.s32.totalorder %v1945_v52, %v1966_v15  ;;  %v3563_v61 = vmov 0  ;;  %v2477_v29 = vsub.f32 %v1909_v33, %v474_v21  ;;  %v2483_v26 = vpop.eup %1571 }
 0x1a4   : > { %v3561_v25 = vsel %vm2450_vm8, 4294967295, %v3560_v25  ;;  %v822_v3 = vadd.f32 %v790_v19, %v789_v44  ;;  %vm2466_vm7 = vmxor %vm3562_vm9, %vm3553_vm14  ;;  %v2471_v44 = vsub.f32 %v1911_v34, %v453_v40  ;;  %v2474_v19 = vsub.f32 %v1917_v37, %v453_v40 }
 0x1a5   : > { %v3564_v61 = vsel %vm2466_vm7, 4294967295, %v3563_v61  ;;  %3567 = vst [vmem:[#allocation48_spill] sm:$0xff] %v2477_v29  ;;  %vm3568_vm11 = vnez %v3504_v14  ;;  %vm3569_vm9 = vcmp.eq.s32.totalorder %v1941_v50, %v1964_v11  ;;  %v3570_v34 = vmov 0  ;;  %vm3573_vm2 = vmand %vm3530_vm15, %vm2086_vm0 }
 0x1a6   : > { %3565 = vst [vmem:[#allocation46_spill] sm:$0xff] %v2471_v44  ;;  %3566 = vst [vmem:[#allocation47_spill] sm:$0xff] %v2474_v19  ;;  %1591 = vpow2.f32 %v564_v1  ;;  %v2494_v37 = vsub.f32 %v1915_v36, %v474_v21  ;;  %v793_v33 = vsel %vm3573_vm2, %v2422_v59, 0.0  ;;  %v2512_v36 = vpop.eup %1573  ;;  %vm3576_vm4 = vcmp.eq.s32.totalorder %v1941_v50, %v1966_v15  ;;  %823 = vadd.xlane.f32.xlu0 %v822_v3  ;;  %v477_v3 = vpop.xlane.xlu1 %476 }
 0x1a7   : > { %vm2489_vm7 = vmxor %vm3569_vm9, %vm3553_vm14  ;;  %1593 = vpow2.f32 %v534_v62  ;;  %v538_v18 = vmul.f32 1.442695, %v2471_v44  ;;  %v540_v21 = vmul.f32 1.442695, %v2474_v19  ;;  %v566_v1 = vmul.f32 1.442695, %v2477_v29  ;;  %v2529_v40 = vpop.eup %1575 }
 0x1a8   : > { %v3571_v34 = vsel %vm2489_vm7, 4294967295, %v3570_v34  ;;  %3572 = vst [vmem:[#allocation49_spill] sm:$0xff] %v2494_v37  ;;  %vm3574_vm9 = vmand %vm3534_vm1, %vm2136_vm10  ;;  %vm3575_vm7 = vnez %v3511_v0  ;;  %1595 = vpow2.f32 %v536_v9  ;;  %vm3580_vm2 = vnez %v3521_v60  ;;  %v2542_v29 = vpop.eup %1577 }
 0x1a9   : > { %v794_v32 = vsel %vm3574_vm9, %v2444_v42, 0.0  ;;  %vm766_vm8 = vmand %vm3575_vm7, %vm2136_vm10  ;;  %v568_v42 = vmul.f32 1.442695, %v2494_v37  ;;  %1597 = vpow2.f32 %v538_v18  ;;  %v2551_v9 = vsub.f32 %v1919_v38, %v477_v3  ;;  %v2560_v60 = vpop.eup %1579 }
 0x1aa   : > { %vm2518_vm15 = vmxor %vm3576_vm4, %vm3553_vm14  ;;  %v828_v59 = vadd.f32 %v794_v32, %v793_v33  ;;  %v2554_v33 = vsub.f32 %v1925_v41, %v477_v3  ;;  %1599 = vpow2.f32 %v540_v21  ;;  %v2568_v38 = vpop.eup %1581  ;;  %v2602_v35 = vpop.permute.xlu1 %634  ;;  %vm3597_vm7 = vnez %v3561_v25 }
 0x1ab   : > { %vm3579_vm4 = vmand %vm3544_vm3, %vm2086_vm0  ;;  %3582 = vst [vmem:[#allocation50_spill] sm:$0xff] %v2551_v9  ;;  %vm3584_vm3 = vnez %v3527_v20  ;;  %1601 = vpow2.f32 %v566_v1  ;;  %v570_v41 = vmul.f32 1.442695, %v2551_v9 }
 0x1ac   : > { %v791_v62 = vsel %vm3579_vm4, %v2342_v54, 0.0  ;;  %vm777_vm9 = vmand %vm3580_vm2, %vm2086_vm0  ;;  %3583 = vst [vmem:[#allocation51_spill] sm:$0xff] %v2554_v33  ;;  %829 = vadd.xlane.f32.xlu1 %v828_v59  ;;  %v572_v20 = vmul.f32 1.442695, %v2554_v33  ;;  %vm3586_vm2 = vnez %v3537_v23  ;;  %v2576_v59 = vpop.eup %1583  ;;  %1603 = vpow2.f32 %v568_v42 }
 0x1ad   : > { %vm3581_vm1 = vmand %vm3551_vm6, %vm2136_vm10  ;;  %v809_v32 = vsel %vm777_vm9, %v2512_v36, 0.0  ;;  %vm3585_vm6 = vnez %v3533_v24  ;;  %v2600_v17 = vpop.eup %1585  ;;  %1605 = vpow2.f32 %v570_v41  ;;  %3591 = vst [vmem:[#allocation52_spill] sm:$0xff] %v2602_v35 }
 0x1ae   : > { %v792_v27 = vsel %vm3581_vm1, %v2359_v39, 0.0  ;;  %vm778_vm4 = vmand %vm3584_vm3, %vm2136_vm10  ;;  %vm3590_vm1 = vnez %v3541_v30  ;;  %v2608_v14 = vpop.eup %1587  ;;  %1607 = vpow2.f32 %v572_v20 }
 0x1af   : > { %v825_v13 = vadd.f32 %v792_v27, %v791_v62  ;;  %v810_v18 = vsel %vm778_vm4, %v2529_v40, 0.0  ;;  %vm3587_vm3 = vmand %vm2242_vm5, %vm2086_vm0  ;;  %v2610_v27 = vpop.permute.xlu0 %637 }
 0x1b0   : > { %v852_v3 = vadd.f32 %v810_v18, %v809_v32  ;;  %v807_v21 = vsel %vm3587_vm3, %v2460_v43, 0.0  ;;  %vm3588_vm4 = vmand %vm2291_vm13, %vm2136_vm10  ;;  %vm3592_vm13 = vnez %v3547_v2  ;;  %3593 = vst [vmem:[#allocation53_spill] sm:$0xff] %v2610_v27  ;;  %v2622_v32 = vpop.eup %1589  ;;  %vm3411_vm3 = vcmp.eq.s32.totalorder %v2602_v35, %v1964_v11 }
 0x1b1   : > { %826 = vadd.xlane.f32.xlu0 %v825_v13  ;;  %v808_v1 = vsel %vm3588_vm4, %v2483_v26, 0.0  ;;  %vm3589_vm9 = vmand %vm3568_vm11, %vm2086_vm0  ;;  %v798_v13 = vsel %vm766_vm8, %v2576_v59, 0.0  ;;  %vm3594_vm11 = vnez %v3556_v31  ;;  %v2640_v20 = vpop.eup %1591 }
 0x1b2   : > { %v797_v42 = vsel %vm3589_vm9, %v2568_v38, 0.0  ;;  %vm781_vm5 = vmand %vm3590_vm1, %vm2086_vm0  ;;  %853 = vadd.xlane.f32.xlu1 %v852_v3  ;;  %v849_v62 = vadd.f32 %v808_v1, %v807_v21  ;;  %v2654_v24 = vpop.eup %1593  ;;  %vm3600_vm1 = vnez %v3571_v34 }
 0x1b3   : > { %v834_v18 = vadd.f32 %v798_v13, %v797_v42  ;;  %vm3595_vm4 = vmand %vm2281_vm12, %vm2086_vm0  ;;  %v813_v28 = vsel %vm781_vm5, %v2622_v32, 0.0  ;;  %vm3598_vm12 = vnez %v3564_v61  ;;  %v2668_v3 = vpop.eup %1595 }
 0x1b4   : > { %v795_v41 = vsel %vm3595_vm4, %v2542_v29, 0.0  ;;  %vm3596_vm8 = vmand %vm3585_vm6, %vm2136_vm10  ;;  %vm3440_vm4 = vcmp.eq.s32.totalorder %v2610_v27, %v1964_v11  ;;  %vm3439_vm6 = vcmp.eq.s32.totalorder %v2610_v27, %v1966_v15  ;;  %v2676_v2 = vpop.eup %1597 }
 0x1b5   : > { %v796_v0 = vsel %vm3596_vm8, %v2560_v60, 0.0  ;;  %850 = vadd.xlane.f32.xlu0 %v849_v62  ;;  %vm3599_vm8 = vmand %vm3592_vm13, %vm2136_vm10  ;;  %vm676_vm13 = vcmp.eq.s32.totalorder %v2602_v35, %v1966_v15 }
 0x1b6   : > { %v814_v30 = vsel %vm3599_vm8, %v2640_v20, 0.0  ;;  %835 = vadd.xlane.f32.xlu1 %v834_v18  ;;  %v831_v21 = vadd.f32 %v796_v0, %v795_v41  ;;  %vm2684_vm8 = vmxor %vm3411_vm3, %vm3553_vm14  ;;  %v2700_v18 = vpop.eup %1599  ;;  %v1715_v0 = vmov 0.0  }
 0x1b7   : > { %v858_v1 = vadd.f32 %v814_v30, %v813_v28  ;;  %vm3603_vm5 = vmand %vm3586_vm2, %vm2086_vm0  ;;  %v2716_v31 = vpop.eup %1601 }
 0x1b8   : > { %v811_v62 = vsel %vm3603_vm5, %v2600_v17, 0.0  ;;  %vm3604_vm9 = vmand %vm3594_vm11, %vm2136_vm10  ;;  %v2732_v28 = vpop.eup %1603 }
 0x1b9   : > { %v812_v13 = vsel %vm3604_vm9, %v2608_v14, 0.0  ;;  %vm2706_vm3 = vmxor %vm3440_vm4, %vm3553_vm14  ;;  %832 = vadd.xlane.f32.xlu0 %v831_v21  ;;  %v2742_v9 = vpop.eup %1605 }
 0x1ba   : > { %vm3607_vm2 = vmand %vm3597_vm7, %vm2086_vm0  ;;  %859 = vadd.xlane.f32.xlu1 %v858_v1  ;;  %v855_v21 = vadd.f32 %v812_v13, %v811_v62  ;;  %v2760_v1 = vpop.eup %1607 }
 0x1bb   : > { %v801_v23 = vsel %vm3607_vm2, %v2676_v2, 0.0  ;;  %vm2722_vm11 = vmxor %vm3439_vm6, %vm3553_vm14  ;;  %vm3615_vm2 = vcmp.eq.s32.totalorder %v1931_v45, %v1964_v11 }
 0x1bc   : > { %vm3610_vm9 = vmand %vm3598_vm12, %vm2136_vm10  ;;  %v1474_v63 = vsel %vm3615_vm2, 1.0, %v1715_v0  ;;  %vm3628_vm2 = vcmp.eq.s32.totalorder %v1945_v52, %v1966_v15 }
 0x1bd   : > { %v802_v25 = vsel %vm3610_vm9, %v2700_v18, 0.0  ;;  %vm2738_vm7 = vmxor %vm676_vm13, %vm3553_vm14  ;;  %856 = vadd.xlane.f32.xlu0 %v855_v21  ;;  %vm3620_vm9 = vcmp.eq.s32.totalorder %v1935_v47, %v1966_v15 }
 0x1be   : > { %v840_v33 = vadd.f32 %v802_v25, %v801_v23  ;;  %vm3613_vm12 = vmand %vm3600_vm1, %vm2086_vm0  ;;  %v1479_v21 = vsel %vm3620_vm9, 1.0, %v1715_v0  ;;  %vm3633_vm9 = vcmp.eq.s32.totalorder %v1949_v55, %v1964_v11 }
 0x1bf   : > { %v799_v61 = vsel %vm3613_vm12, %v2654_v24, 0.0  ;;  %vm3614_vm14 = vmand %vm2518_vm15, %vm2136_vm10  ;;  %vm3622_vm12 = vcmp.eq.s32.totalorder %v1933_v46, %v1966_v15 }
 0x1c0   : > { %v800_v37 = vsel %vm3614_vm14, %v2668_v3, 0.0  ;;  %vm785_vm5 = vmand %vm2706_vm3, %vm2086_vm0  ;;  %841 = vadd.xlane.f32.xlu1 %v840_v33  ;;  %vm3623_vm14 = vcmp.eq.s32.totalorder %v1939_v49, %v1964_v11 }
 0x1c1   : > { %vm786_vm1 = vmand %vm2722_vm11, %vm2136_vm10  ;;  %v817_v34 = vsel %vm785_vm5, %v2742_v9, 0.0  ;;  %v837_v62 = vadd.f32 %v800_v37, %v799_v61  ;;  %vm3619_vm11 = vcmp.eq.s32.totalorder %v1935_v47, %v1964_v11  ;;  %vm3624_vm5 = vcmp.eq.s32.totalorder %v1939_v49, %v1966_v15 }
 0x1c2   : > { %vm783_vm15 = vmand %vm2684_vm8, %vm2086_vm0  ;;  %v818_v8 = vsel %vm786_vm1, %v2760_v1, 0.0  ;;  %vm3616_vm0 = vcmp.eq.s32.totalorder %v1931_v45, %v1966_v15  ;;  %vm3618_vm8 = vcmp.eq.s32.totalorder %v1943_v51, %v1966_v15  ;;  %v1478_v30 = vsel %vm3619_vm11, 1.0, %v1715_v0 }
 0x1c3   : > { %vm784_vm3 = vmand %vm2738_vm7, %vm2136_vm10  ;;  %v864_v13 = vadd.f32 %v818_v8, %v817_v34  ;;  %v815_v41 = vsel %vm783_vm15, %v2716_v31, 0.0  ;;  %838 = vadd.xlane.f32.xlu0 %v837_v62  ;;  %v1475_v37 = vsel %vm3616_vm0, 1.0, %v1715_v0  ;;  %vm3617_vm10 = vcmp.eq.s32.totalorder %v1943_v51, %v1964_v11 }
 0x1c4   : > { %v816_v23 = vsel %vm784_vm3, %v2732_v28, 0.0  ;;  %v1472_v4 = vsel %vm3617_vm10, 1.0, %v1715_v0  ;;  %v1473_v42 = vsel %vm3618_vm8, 1.0, %v1715_v0  ;;  %v1126_v25 = vadd.f32 %v1475_v37, %v1474_v63 }
 0x1c5   : > { %v861_v33 = vadd.f32 %v816_v23, %v815_v41  ;;  %865 = vadd.xlane.f32.xlu1 %v864_v13  ;;  %v1123_v61 = vadd.f32 %v1473_v42, %v1472_v4  ;;  %vm3621_vm7 = vcmp.eq.s32.totalorder %v1933_v46, %v1964_v11  ;;  %v1477_v8 = vsel %vm3622_vm12, 1.0, %v1715_v0 }
 0x1c6   : > { %v1476_v34 = vsel %vm3621_vm7, 1.0, %v1715_v0  ;;  %v1132_v62 = vadd.f32 %v1479_v21, %v1478_v30  ;;  %v1482_v13 = vsel %vm3623_vm14, 1.0, %v1715_v0  ;;  %v1483_v41 = vsel %vm3624_vm5, 1.0, %v1715_v0 }
 0x1c7   : > { %862 = vadd.xlane.f32.xlu0 %v861_v33  ;;  %v1129_v23 = vadd.f32 %v1477_v8, %v1476_v34  ;;  %vm3625_vm1 = vcmp.eq.s32.totalorder %v1937_v48, %v1964_v11  ;;  %vm3626_vm15 = vcmp.eq.s32.totalorder %v1937_v48, %v1966_v15  ;;  %v1138_v33 = vadd.f32 %v1483_v41, %v1482_v13 }
 0x1c8   : > { %v1480_v63 = vsel %vm3625_vm1, 1.0, %v1715_v0  ;;  %v1481_v37 = vsel %vm3626_vm15, 1.0, %v1715_v0  ;;  %vm3627_vm3 = vcmp.eq.s32.totalorder %v1945_v52, %v1964_v11  ;;  %v1487_v42 = vsel %vm3628_vm2, 1.0, %v1715_v0  ;;  %v3651_v52 = vld [vmem:[#allocation45_spill] sm:$0xff] }
 0x1c9   : > { %1127 = vadd.xlane.f32.xlu1 %v1126_v25  ;;  %v1486_v4 = vsel %vm3627_vm3, 1.0, %v1715_v0  ;;  %v1135_v25 = vadd.f32 %v1481_v37, %v1480_v63  ;;  %vm3629_vm0 = vcmp.eq.s32.totalorder %v1941_v50, %v1964_v11  ;;  %vm3630_vm10 = vcmp.eq.s32.totalorder %v1941_v50, %v1966_v15 }
 0x1ca   : > { %v1484_v30 = vsel %vm3629_vm0, 1.0, %v1715_v0  ;;  %v1485_v21 = vsel %vm3630_vm10, 1.0, %v1715_v0  ;;  %vm3631_vm8 = vcmp.eq.s32.totalorder %v1947_v53, %v1964_v11  ;;  %vm3632_vm11 = vcmp.eq.s32.totalorder %v1947_v53, %v1966_v15 }
 0x1cb   : > { %1124 = vadd.xlane.f32.xlu0 %v1123_v61  ;;  %v1144_v61 = vadd.f32 %v1487_v42, %v1486_v4  ;;  %v1490_v34 = vsel %vm3631_vm8, 1.0, %v1715_v0  ;;  %v1491_v8 = vsel %vm3632_vm11, 1.0, %v1715_v0  ;;  %v1488_v13 = vsel %vm3633_vm9, 1.0, %v1715_v0 }
 0x1cc   : > { %vm3634_vm7 = vcmp.eq.s32.totalorder %v1949_v55, %v1966_v15  ;;  %vm3635_vm12 = vcmp.eq.s32.totalorder %v1953_v57, %v1964_v11  ;;  %vm3636_vm14 = vcmp.eq.s32.totalorder %v1953_v57, %v1966_v15  ;;  %vm3637_vm5 = vcmp.eq.s32.totalorder %v1955_v58, %v1964_v11 }
 0x1cd   : > { %1133 = vadd.xlane.f32.xlu1 %v1132_v62  ;;  %v1141_v62 = vadd.f32 %v1485_v21, %v1484_v30  ;;  %v1489_v41 = vsel %vm3634_vm7, 1.0, %v1715_v0  ;;  %v1494_v63 = vsel %vm3635_vm12, 1.0, %v1715_v0  ;;  %v1495_v37 = vsel %vm3636_vm14, 1.0, %v1715_v0 }
 0x1ce   : > { %v1492_v4 = vsel %vm3637_vm5, 1.0, %v1715_v0  ;;  %vm3638_vm1 = vcmp.eq.s32.totalorder %v1955_v58, %v1966_v15  ;;  %vm3639_vm15 = vcmp.eq.s32.totalorder %v1962_v6, %v1964_v11  ;;  %vm3640_vm3 = vcmp.eq.s32.totalorder %v1962_v6, %v1966_v15 }
 0x1cf   : > { %1130 = vadd.xlane.f32.xlu0 %v1129_v23  ;;  %v1150_v23 = vadd.f32 %v1491_v8, %v1490_v34  ;;  %v1493_v42 = vsel %vm3638_vm1, 1.0, %v1715_v0  ;;  %v1498_v30 = vsel %vm3639_vm15, 1.0, %v1715_v0  ;;  %v1499_v21 = vsel %vm3640_vm3, 1.0, %v1715_v0 }
 0x1d0   : > { %vm3641_vm2 = vcmp.eq.s32.totalorder %v1968_v16, %v1964_v11  ;;  %vm3642_vm0 = vcmp.eq.s32.totalorder %v1968_v16, %v1966_v15  ;;  %vm3643_vm10 = vcmp.eq.s32.totalorder %v2602_v35, %v1964_v11  ;;  %vm3654_vm14 = vcmp.eq.s32.totalorder %v1943_v51, %v1964_v11 }
 0x1d1   : > { %1139 = vadd.xlane.f32.xlu1 %v1138_v33  ;;  %v1147_v33 = vadd.f32 %v1489_v41, %v1488_v13  ;;  %v1496_v34 = vsel %vm3641_vm2, 1.0, %v1715_v0  ;;  %v1497_v8 = vsel %vm3642_vm0, 1.0, %v1715_v0  ;;  %v1502_v13 = vsel %vm3440_vm4, 1.0, %v1715_v0 }
 0x1d2   : > { %v1503_v41 = vsel %vm3439_vm6, 1.0, %v1715_v0  ;;  %vm3655_vm15 = vcmp.eq.s32.totalorder %v1943_v51, %v1966_v15  ;;  %vm3659_vm0 = vcmp.eq.s32.totalorder %v1949_v55, %v1964_v11 }
 0x1d3   : > { %1136 = vadd.xlane.f32.xlu0 %v1135_v25  ;;  %v1156_v25 = vadd.f32 %v1495_v37, %v1494_v63  ;;  %v1500_v63 = vsel %vm3643_vm10, 1.0, %v1715_v0  ;;  %v1501_v37 = vsel %vm676_vm13, 1.0, %v1715_v0 }
 0x1d5   : > { %1145 = vadd.xlane.f32.xlu1 %v1144_v61  ;;  %v1153_v61 = vadd.f32 %v1493_v42, %v1492_v4  ;;  %v1165_v4 = vadd.f32 %v1501_v37, %v1500_v63  ;;  %v2883_v37 = vstv %s1459_s15 }
 0x1d7   : > { %1142 = vadd.xlane.f32.xlu0 %v1141_v62  ;;  %v1162_v62 = vadd.f32 %v1499_v21, %v1498_v30  ;;  %v3644_v30 = vld [vmem:[#allocation30_spill] sm:$0xff] }
 0x1d9   : > { %1151 = vadd.xlane.f32.xlu1 %v1150_v23  ;;  %v1159_v23 = vadd.f32 %v1497_v8, %v1496_v34 }
 0x1db   : > { %1148 = vadd.xlane.f32.xlu0 %v1147_v33  ;;  %v1168_v33 = vadd.f32 %v1503_v41, %v1502_v13  ;;  %v3646_v41 = vld [vmem:[#allocation35_spill] sm:$0xff] }
 0x1dd   : > { %1157 = vadd.xlane.f32.xlu1 %v1156_v25 }
 0x1df   : > { %1154 = vadd.xlane.f32.xlu0 %v1153_v61 }
 0x1e1   : > { %1163 = vadd.xlane.f32.xlu1 %v1162_v62  ;;  %v3645_v62 = vld [vmem:[#allocation8_spill] sm:$0xff] }
 0x1e2   : > { %v691_v13 = vadd.s32 64, %v3645_v62  ;;  %v689_v27 = vadd.s32 48, %v3645_v62  ;;  %v2923_v6 = vadd.s32 56, %v3645_v62 }
 0x1e3   : > { %1160 = vadd.xlane.f32.xlu0 %v1159_v23 }
 0x1e4   : > { %v2966_v51 = vadd.s32 %v2883_v37, %v689_v27 }
 0x1e5   : > { %1169 = vadd.xlane.f32.xlu1 %v1168_v33 }
 0x1e6   : > { %3656 = vst [vmem:[#allocation8_spill] sm:$0xff] %v2966_v51  ;;  %v3658_v51 = vld [vmem:[#allocation19_spill] sm:$0xff] }
 0x1e7   : > { %1166 = vadd.xlane.f32.xlu0 %v1165_v4  ;;  %v2887_v4 = vadd.s32 %v2883_v37, %v691_v13  ;;  %v688_v13 = vadd.s32 40, %v3645_v62 }
 0x222   : > { %v821_v42 = vpop.xlane.xlu1 %820 }
 0x223   : > { %v867_v25 = vadd.f32 %v2178_v10, %v821_v42  ;;  %v868_v21 = vadd.f32 %v3644_v30, %v821_v42  ;;  %v684_v10 = vadd.s32 8, %v3645_v62 }
 0x225   : > { %1609 = vlog2.f32 %v867_v25  ;;  %v2897_v25 = vadd.s32 %v2883_v37, %v684_v10 }
 0x226   : > { %1611 = vlog2.f32 %v868_v21  ;;  %v686_v21 = vadd.s32 24, %v3645_v62 }
 0x229   : > { %v848_v61 = vpop.xlane.xlu1 %847 }
 0x22a   : > { %v885_v34 = vadd.f32 %v2226_v12, %v848_v61  ;;  %v886_v8 = vadd.f32 %v2256_v5, %v848_v61  ;;  %v685_v12 = vadd.s32 16, %v3645_v62  ;;  %v693_v61 = vadd.s32 80, %v3645_v62 }
 0x22c   : > { %1613 = vlog2.f32 %v885_v34  ;;  %v687_v34 = vadd.s32 32, %v3645_v62 }
 0x22d   : > { %1615 = vlog2.f32 %v886_v8 }
 0x22e   : > { %v845_v0 = vpop.xlane.xlu0 %844 }
 0x22f   : > { %v883_v23 = vadd.f32 %v3646_v41, %v845_v0  ;;  %v884_v63 = vadd.f32 %v2297_v56, %v845_v0  ;;  %v2894_v56 = vadd.s32 %v2883_v37, %v3645_v62  ;;  %v1610_v8 = vpop.eup %1609  ;;  %v2906_v0 = vadd.s32 %v2883_v37, %v685_v12 }
 0x230   : > { %v1612_v41 = vpop.eup %1611 }
 0x231   : > { %1617 = vlog2.f32 %v883_v23  ;;  %3647 = vst [vmem:[#allocation30_spill] sm:$0xff] %v2894_v56  ;;  %v900_v23 = vmul.f32 0.6931472, %v1610_v8  ;;  %v902_v35 = vmul.f32 0.6931472, %v1612_v41  ;;  %v3653_v41 = vld [vmem:[#allocation14_spill] sm:$0xff] }
 0x232   : > { %1619 = vlog2.f32 %v884_v63  ;;  %v3649_v63 = vld [vmem:[#allocation44_spill] sm:$0xff] }
 0x233   : > { %v824_v33 = vpop.xlane.xlu0 %823 }
 0x234   : > { %v869_v5 = vadd.f32 %v2376_v7, %v824_v33  ;;  %v870_v42 = vadd.f32 %v2396_v22, %v824_v33  ;;  %v3648_v7 = vld [vmem:[#allocation17_spill] sm:$0xff]  ;;  %v692_v22 = vadd.s32 72, %v3645_v62 }
 0x235   : > { %vm1011_vm8 = vcmp.ne.s32.totalorder %v2887_v4, %v3648_v7  ;;  %vm995_vm9 = vcmp.ne.s32.totalorder %v2894_v56, %v3648_v7  ;;  %vm997_vm12 = vcmp.ne.s32.totalorder %v2897_v25, %v3648_v7 }
 0x236   : > { %1621 = vlog2.f32 %v869_v5  ;;  %v3650_v5 = vld [vmem:[#allocation21_spill] sm:$0xff]  ;;  %v1614_v16 = vpop.eup %1613  ;;  %vm1027_vm5 = vmand %vm3654_vm14, %vm995_vm9  ;;  %vm999_vm9 = vcmp.ne.s32.totalorder %v2906_v0, %v3648_v7 }
 0x237   : > { %1623 = vlog2.f32 %v870_v42  ;;  %vm1012_vm11 = vcmp.ne.s32.totalorder %v2887_v4, %v3650_v5  ;;  %v695_v42 = vadd.s32 96, %v3645_v62  ;;  %vm996_vm7 = vcmp.ne.s32.totalorder %v2894_v56, %v3650_v5  ;;  %vm1043_vm10 = vmand %vm3659_vm0, %vm1011_vm8 }
 0x238   : > { %vm998_vm1 = vcmp.ne.s32.totalorder %v2897_v25, %v3650_v5  ;;  %vm1028_vm3 = vmand %vm3655_vm15, %vm996_vm7  ;;  %v936_v56 = vmul.f32 0.6931472, %v1614_v16  ;;  %vm3660_vm7 = vcmp.eq.s32.totalorder %v1949_v55, %v1966_v15  ;;  %vm1000_vm8 = vcmp.ne.s32.totalorder %v2906_v0, %v3650_v5 }
 0x239   : > { %v830_v30 = vpop.xlane.xlu1 %829  ;;  %vm1044_vm14 = vmand %vm3660_vm7, %vm1012_vm11  ;;  %vm3667_vm7 = vcmp.eq.s32.totalorder %v1947_v53, %v1964_v11 }
 0x23a   : > { %v873_v10 = vadd.f32 %v3649_v63, %v830_v30  ;;  %v874_v8 = vadd.f32 %v3651_v52, %v830_v30  ;;  %v3652_v63 = vld [vmem:[#allocation13_spill] sm:$0xff]  ;;  %v2932_v52 = vadd.s32 %v2883_v37, %v686_v21  ;;  %v1616_v30 = vpop.eup %1615  ;;  %v2949_v21 = vadd.s32 %v2883_v37, %v688_v13 }
 0x23b   : > { %v963_v50 = vsub.f32 %v3652_v63, %v900_v23 }
 0x23c   : > { %vm1001_vm11 = vcmp.ne.s32.totalorder %v2932_v52, %v3648_v7  ;;  %vm1002_vm0 = vcmp.ne.s32.totalorder %v2932_v52, %v3650_v5 }
 0x23e   : > { %v827_v33 = vpop.xlane.xlu0 %826 }
 0x23f   : > { %v871_v19 = vadd.f32 %v2342_v54, %v827_v33  ;;  %v872_v12 = vadd.f32 %v2359_v39, %v827_v33  ;;  %v854_v44 = vpop.xlane.xlu1 %853  ;;  %v964_v54 = vsub.f32 %v3653_v41, %v902_v35  ;;  %v2929_v39 = vadd.s32 %v2883_v37, %v692_v22  ;;  %v1618_v22 = vpop.eup %1617 }
 0x240   : > { %v2946_v35 = vadd.s32 %v2883_v37, %v687_v34  ;;  %v1187_v33 = vsel %vm1027_vm5, %v963_v50, 0.0  ;;  %v1620_v34 = vpop.eup %1619  ;;  %v932_v63 = vmul.f32 0.6931472, %v1618_v22  ;;  %vm3664_vm5 = vcmp.eq.s32.totalorder %v1931_v45, %v1964_v11 }
 0x241   : > { %1625 = vlog2.f32 %v871_v19  ;;  %v2943_v19 = vadd.s32 %v2883_v37, %v693_v61  ;;  %v2959_v61 = vadd.s32 %v2883_v37, %v695_v42  ;;  %v934_v49 = vmul.f32 0.6931472, %v1620_v34  ;;  %v1622_v50 = vpop.eup %1621  ;;  %vm1029_vm15 = vmand %vm3664_vm5, %vm997_vm12 }
 0x242   : > { %1627 = vlog2.f32 %v873_v10  ;;  %v851_v23 = vpop.xlane.xlu0 %850  ;;  %vm1013_vm2 = vcmp.ne.s32.totalorder %v2929_v39, %v3648_v7  ;;  %v890_v42 = vadd.f32 %v2529_v40, %v854_v44  ;;  %v3661_v40 = vld [vmem:[#allocation24_spill] sm:$0xff]  ;;  %vm3668_vm5 = vcmp.eq.s32.totalorder %v1947_v53, %v1966_v15 }
 0x243   : > { %1629 = vlog2.f32 %v872_v12  ;;  %v887_v10 = vadd.f32 %v2460_v43, %v851_v23  ;;  %v888_v13 = vadd.f32 %v2483_v26, %v851_v23  ;;  %v836_v41 = vpop.xlane.xlu1 %835  ;;  %v1188_v12 = vsel %vm1028_vm3, %v964_v54, 0.0  ;;  %v1624_v26 = vpop.eup %1623 }
 0x244   : > { %1631 = vlog2.f32 %v874_v8  ;;  %v889_v43 = vadd.f32 %v2512_v36, %v854_v44  ;;  %v1219_v22 = vadd.f32 %v1188_v12, %v1187_v33  ;;  %v3657_v8 = vld [vmem:[#allocation18_spill] sm:$0xff]  ;;  %v938_v23 = vmul.f32 0.6931472, %v1616_v30  ;;  %v3662_v33 = vld [vmem:[#allocation25_spill] sm:$0xff] }
 0x245   : > { %v979_v57 = vsub.f32 %v3657_v8, %v932_v63  ;;  %v904_v54 = vmul.f32 0.6931472, %v1622_v50  ;;  %1633 = vlog2.f32 %v887_v10  ;;  %v877_v36 = vadd.f32 %v2568_v38, %v836_v41 }
 0x246   : > { %v833_v48 = vpop.xlane.xlu0 %832  ;;  %v906_v34 = vmul.f32 0.6931472, %v1624_v26  ;;  %1635 = vlog2.f32 %v888_v13  ;;  %v878_v58 = vadd.f32 %v2576_v59, %v836_v41  ;;  %1220 = vadd.xlane.f32.xlu0 %v1219_v22  ;;  %v980_v16 = vsub.f32 %v3658_v51, %v934_v49  ;;  %v3663_v41 = vld [vmem:[#allocation15_spill] sm:$0xff] }
 0x247   : > { %v860_v27 = vpop.xlane.xlu1 %859  ;;  %1637 = vlog2.f32 %v889_v43  ;;  %v875_v44 = vadd.f32 %v2542_v29, %v833_v48  ;;  %v1203_v49 = vsel %vm1043_vm10, %v979_v57, 0.0  ;;  %v965_v38 = vsub.f32 %v3661_v40, %v904_v54 }
 0x248   : > { %1639 = vlog2.f32 %v890_v42  ;;  %v876_v59 = vadd.f32 %v2560_v60, %v833_v48  ;;  %v1204_v10 = vsel %vm1044_vm14, %v980_v16, 0.0  ;;  %v966_v63 = vsub.f32 %v3662_v33, %v906_v34  ;;  %v3665_v60 = vld [vmem:[#allocation16_spill] sm:$0xff] }
 0x249   : > { %1641 = vlog2.f32 %v877_v36  ;;  %v893_v13 = vadd.f32 %v2622_v32, %v860_v27  ;;  %v981_v55 = vsub.f32 %v3663_v41, %v936_v56  ;;  %v694_v57 = vadd.s32 88, %v3645_v62 }
 0x24a   : > { %v857_v30 = vpop.xlane.xlu0 %856  ;;  %1643 = vlog2.f32 %v878_v58  ;;  %v1243_v48 = vadd.f32 %v1204_v10, %v1203_v49  ;;  %v982_v43 = vsub.f32 %v3665_v60, %v938_v23  ;;  %vm1014_vm3 = vcmp.ne.s32.totalorder %v2929_v39, %v3650_v5 }
 0x24b   : > { %v1626_v29 = vpop.eup %1625  ;;  %1645 = vlog2.f32 %v875_v44  ;;  %v891_v58 = vadd.f32 %v2600_v17, %v857_v30  ;;  %vm3666_vm10 = vcmp.eq.s32.totalorder %v1931_v45, %v1966_v15  ;;  %v1189_v51 = vsel %vm1029_vm15, %v965_v38, 0.0  ;;  %vm1046_vm15 = vmand %vm3668_vm5, %vm1014_vm3 }
 0x24c   : > { %v1628_v12 = vpop.eup %1627  ;;  %vm1030_vm12 = vmand %vm3666_vm10, %vm998_vm1  ;;  %v3018_v50 = vadd.s32 %v2883_v37, %v2923_v6  ;;  %v908_v22 = vmul.f32 0.6931472, %v1626_v29  ;;  %1647 = vlog2.f32 %v876_v59  ;;  %v892_v8 = vadd.f32 %v2608_v14, %v857_v30  ;;  %1244 = vadd.xlane.f32.xlu0 %v1243_v48  ;;  %v3669_v59 = vld [vmem:[#allocation22_spill] sm:$0xff] }
 0x24d   : > { %v1630_v32 = vpop.eup %1629  ;;  %v842_v56 = vpop.xlane.xlu1 %841  ;;  %v1190_v26 = vsel %vm1030_vm12, %v966_v63, 0.0  ;;  %vm1045_vm1 = vmand %vm3667_vm7, %vm1013_vm2  ;;  %vm1015_vm14 = vcmp.ne.s32.totalorder %v2943_v19, %v3648_v7  ;;  %v894_v45 = vadd.f32 %v2640_v20, %v860_v27  ;;  %1649 = vlog2.f32 %v893_v13  ;;  %v3671_v63 = vld [vmem:[#allocation23_spill] sm:$0xff] }
 0x24e   : > { %v1632_v42 = vpop.eup %1631  ;;  %v1205_v6 = vsel %vm1045_vm1, %v981_v55, 0.0  ;;  %v3037_v14 = vadd.s32 %v2883_v37, %v694_v57  ;;  %v910_v23 = vmul.f32 0.6931472, %v1630_v32  ;;  %v881_v54 = vadd.f32 %v2676_v2, %v842_v56 }
 0x24f   : > { %v1222_v36 = vadd.f32 %v1190_v26, %v1189_v51  ;;  %v1206_v34 = vsel %vm1046_vm15, %v982_v43, 0.0  ;;  %vm1016_vm2 = vcmp.ne.s32.totalorder %v2943_v19, %v3650_v5  ;;  %v1634_v20 = vpop.eup %1633  ;;  %v912_v27 = vmul.f32 0.6931472, %v1628_v12  ;;  %v3673_v12 = vld [vmem:[#allocation26_spill] sm:$0xff]  ;;  %v3677_v26 = vld [vmem:[#allocation28_spill] sm:$0xff] }
 0x250   : > { %v839_v17 = vpop.xlane.xlu0 %838  ;;  %v914_v16 = vmul.f32 0.6931472, %v1632_v42  ;;  %1651 = vlog2.f32 %v891_v58  ;;  %v1636_v53 = vpop.eup %1635  ;;  %v1246_v38 = vadd.f32 %v1206_v34, %v1205_v6  ;;  %v967_v2 = vsub.f32 %v3669_v59, %v908_v22  ;;  %v3674_v58 = vld [vmem:[#allocation27_spill] sm:$0xff]  ;;  %v3683_v59 = vld [vmem:[#allocation32_spill] sm:$0xff] }
 0x251   : > { %v879_v44 = vadd.f32 %v2654_v24, %v839_v17  ;;  %1653 = vlog2.f32 %v892_v8  ;;  %v880_v49 = vadd.f32 %v2668_v3, %v839_v17  ;;  %1223 = vadd.xlane.f32.xlu1 %v1222_v36  ;;  %v1638_v30 = vpop.eup %1637  ;;  %v882_v10 = vadd.f32 %v2700_v18, %v842_v56  ;;  %v3680_v36 = vld [vmem:[#allocation29_spill] sm:$0xff] }
 0x252   : > { %1655 = vlog2.f32 %v894_v45  ;;  %vm3670_vm3 = vcmp.eq.s32.totalorder %v1933_v46, %v1964_v11  ;;  %vm1017_vm12 = vcmp.ne.s32.totalorder %v3037_v14, %v3648_v7  ;;  %v696_v24 = vadd.s32 104, %v3645_v62  ;;  %v1640_v3 = vpop.eup %1639  ;;  %v866_v55 = vpop.xlane.xlu1 %865 }
 0x253   : > { %vm1031_vm10 = vmand %vm3670_vm3, %vm999_vm9  ;;  %v940_v33 = vmul.f32 0.6931472, %v1634_v20  ;;  %1657 = vlog2.f32 %v881_v54  ;;  %v968_v29 = vsub.f32 %v3671_v63, %v910_v23  ;;  %vm1003_vm7 = vcmp.ne.s32.totalorder %v2946_v35, %v3648_v7  ;;  %v1642_v18 = vpop.eup %1641  ;;  %v3678_v54 = vld [vmem:[#allocation10_spill] sm:$0xff] }
 0x254   : > { %v863_v40 = vpop.xlane.xlu0 %862  ;;  %v1191_v13 = vsel %vm1031_vm10, %v967_v2, 0.0  ;;  %v942_v41 = vmul.f32 0.6931472, %v1636_v53  ;;  %1659 = vlog2.f32 %v879_v44  ;;  %vm3672_vm9 = vcmp.eq.s32.totalorder %v1933_v46, %v1966_v15  ;;  %v1644_v60 = vpop.eup %1643 }
 0x255   : > { %v895_v57 = vadd.f32 %v2716_v31, %v863_v40  ;;  %vm1032_vm1 = vmand %vm3672_vm9, %vm1000_vm8  ;;  %v969_v48 = vsub.f32 %v3673_v12, %v912_v27  ;;  %vm1004_vm5 = vcmp.ne.s32.totalorder %v2946_v35, %v3650_v5  ;;  %1661 = vlog2.f32 %v880_v49  ;;  %1247 = vadd.xlane.f32.xlu1 %v1246_v38  ;;  %v1646_v46 = vpop.eup %1645 }
 0x256   : > { %v896_v43 = vadd.f32 %v2732_v28, %v863_v40  ;;  %v1192_v32 = vsel %vm1032_vm1, %v968_v29, 0.0  ;;  %v970_v31 = vsub.f32 %v3674_v58, %v914_v16  ;;  %vm3675_vm15 = vcmp.eq.s32.totalorder %v1935_v47, %v1964_v11  ;;  %v1648_v28 = vpop.eup %1647  ;;  %v3682_v16 = vld [vmem:[#allocation31_spill] sm:$0xff] }
 0x257   : > { %vm1033_vm8 = vmand %vm3675_vm15, %vm1001_vm11  ;;  %vm1005_vm3 = vcmp.ne.s32.totalorder %v2949_v21, %v3648_v7  ;;  %v944_v56 = vmul.f32 0.6931472, %v1638_v30  ;;  %v946_v51 = vmul.f32 0.6931472, %v1640_v3  ;;  %1663 = vlog2.f32 %v882_v10  ;;  %v1650_v6 = vpop.eup %1649  ;;  %v3684_v30 = vld [vmem:[#allocation9_spill] sm:$0xff]  ;;  %v3686_v10 = vld [vmem:[#allocation8_spill] sm:$0xff] }
 0x258   : > { %v1225_v42 = vadd.f32 %v1192_v32, %v1191_v13  ;;  %vm3676_vm10 = vcmp.eq.s32.totalorder %v1935_v47, %v1966_v15  ;;  %vm1006_vm1 = vcmp.ne.s32.totalorder %v2949_v21, %v3650_v5  ;;  %v897_v22 = vadd.f32 %v2742_v9, %v866_v55  ;;  %v3690_v32 = vld [vmem:[#allocation4_spill] sm:$0xff] }
 0x259   : > { %vm1034_vm9 = vmand %vm3676_vm10, %vm1002_vm0  ;;  %v1193_v8 = vsel %vm1033_vm8, %v969_v48, 0.0  ;;  %v983_v45 = vsub.f32 %v3677_v26, %v940_v33  ;;  %vm1019_vm11 = vcmp.ne.s32.totalorder %v2959_v61, %v3648_v7  ;;  %v898_v23 = vadd.f32 %v2760_v1, %v866_v55 }
 0x25a   : > { %v1194_v17 = vsel %vm1034_vm9, %v970_v31, 0.0  ;;  %1665 = vlog2.f32 %v895_v57  ;;  %1226 = vadd.xlane.f32.xlu0 %v1225_v42  ;;  %vm3679_vm0 = vcmp.eq.s32.totalorder %v3678_v54, %v1964_v11  ;;  %vm1018_vm8 = vcmp.ne.s32.totalorder %v3037_v14, %v3650_v5  ;;  %v1652_v27 = vpop.eup %1651 }
 0x25b   : > { %v1228_v47 = vadd.f32 %v1194_v17, %v1193_v8  ;;  %vm1047_vm15 = vmand %vm3679_vm0, %vm1015_vm14  ;;  %v916_v9 = vmul.f32 0.6931472, %v1646_v46  ;;  %1667 = vlog2.f32 %v896_v43  ;;  %v984_v34 = vsub.f32 %v3680_v36, %v942_v41  ;;  %v1654_v49 = vpop.eup %1653  ;;  %v3688_v41 = vld [vmem:[#allocation33_spill] sm:$0xff] }
 0x25c   : > { %v1207_v20 = vsel %vm1047_vm15, %v983_v45, 0.0  ;;  %v918_v1 = vmul.f32 0.6931472, %v1648_v28  ;;  %vm3681_vm10 = vcmp.eq.s32.totalorder %v3678_v54, %v1966_v15  ;;  %v985_v44 = vsub.f32 %v3682_v16, %v944_v56  ;;  %v1656_v3 = vpop.eup %1655  ;;  %v3694_v17 = vld [vmem:[#allocation37_spill] sm:$0xff]  ;;  %v3700_v16 = vld [vmem:[#allocation12_spill] sm:$0xff] }
 0x25d   : > { %1229 = vadd.xlane.f32.xlu1 %v1228_v47  ;;  %vm1048_vm9 = vmand %vm3681_vm10, %vm1016_vm2  ;;  %vm1020_vm14 = vcmp.ne.s32.totalorder %v2959_v61, %v3650_v5  ;;  %v3110_v53 = vadd.s32 %v2883_v37, %v696_v24  ;;  %v920_v40 = vmul.f32 0.6931472, %v1642_v18  ;;  %1669 = vlog2.f32 %v897_v22  ;;  %v1658_v29 = vpop.eup %1657  ;;  %v3693_v22 = vld [vmem:[#allocation36_spill] sm:$0xff]  ;;  %v3695_v45 = vld [vmem:[#allocation5_spill] sm:$0xff] }
 0x25e   : > { %v1208_v38 = vsel %vm1048_vm9, %v984_v34, 0.0  ;;  %v986_v2 = vsub.f32 %v3683_v59, %v946_v51  ;;  %vm3685_vm2 = vcmp.eq.s32.totalorder %v3684_v30, %v1964_v11  ;;  %vm1007_vm15 = vcmp.ne.s32.totalorder %v3686_v10, %v3648_v7  ;;  %v1660_v57 = vpop.eup %1659 }
 0x25f   : > { %vm1049_vm0 = vmand %vm3685_vm2, %vm1017_vm12  ;;  %v922_v33 = vmul.f32 0.6931472, %v1644_v60  ;;  %1671 = vlog2.f32 %v898_v23  ;;  %v1249_v24 = vadd.f32 %v1208_v38, %v1207_v20  ;;  %vm3687_vm10 = vcmp.eq.s32.totalorder %v3684_v30, %v1966_v15  ;;  %v3689_v60 = vld [vmem:[#allocation34_spill] sm:$0xff]  ;;  %v1662_v58 = vpop.eup %1661 }
 0x260   : > { %vm1050_vm9 = vmand %vm3687_vm10, %vm1018_vm8  ;;  %v1209_v63 = vsel %vm1049_vm0, %v985_v44, 0.0  ;;  %vm1008_vm6 = vcmp.ne.s32.totalorder %v3686_v10, %v3650_v5  ;;  %v948_v13 = vmul.f32 0.6931472, %v1652_v27  ;;  %v971_v55 = vsub.f32 %v3688_v41, %v916_v9  ;;  %v3699_v27 = vld [vmem:[#allocation39_spill] sm:$0xff]  ;;  %v3706_v41 = vld [vmem:[#allocation41_spill] sm:$0xff] }
 0x261   : > { %v1210_v18 = vsel %vm1050_vm9, %v986_v2, 0.0  ;;  %vm1009_vm12 = vcmp.ne.s32.totalorder %v3018_v50, %v3648_v7  ;;  %v950_v12 = vmul.f32 0.6931472, %v1654_v49  ;;  %1250 = vadd.xlane.f32.xlu0 %v1249_v24  ;;  %v972_v43 = vsub.f32 %v3689_v60, %v918_v1  ;;  %v1664_v51 = vpop.eup %1663  ;;  %v3704_v24 = vld [vmem:[#allocation11_spill] sm:$0xff] }
 0x262   : > { %v1252_v48 = vadd.f32 %v1210_v18, %v1209_v63  ;;  %vm3691_vm8 = vcmp.eq.s32.totalorder %v3690_v32, %v1964_v11  ;;  %vm1021_vm0 = vcmp.ne.s32.totalorder %v3110_v53, %v3648_v7  ;;  %vm3692_vm10 = vcmp.eq.s32.totalorder %v3690_v32, %v1966_v15 }
 0x263   : > { %vm1035_vm2 = vmand %vm3691_vm8, %vm1003_vm7  ;;  %vm1022_vm4 = vcmp.ne.s32.totalorder %v3110_v53, %v3650_v5  ;;  %v697_v46 = vadd.s32 112, %v3645_v62  ;;  %v698_v56 = vadd.s32 120, %v3645_v62  ;;  %v952_v42 = vmul.f32 0.6931472, %v1650_v6  ;;  %v3698_v62 = vld [vmem:[#allocation38_spill] sm:$0xff] }
 0x264   : > { %vm1036_vm9 = vmand %vm3692_vm10, %vm1004_vm5  ;;  %v1195_v31 = vsel %vm1035_vm2, %v971_v55, 0.0  ;;  %1253 = vadd.xlane.f32.xlu1 %v1252_v48  ;;  %v973_v8 = vsub.f32 %v3693_v22, %v920_v40  ;;  %v974_v26 = vsub.f32 %v3694_v17, %v922_v33  ;;  %vm3696_vm7 = vcmp.eq.s32.totalorder %v3695_v45, %v1964_v11  ;;  %v1666_v9 = vpop.eup %1665 }
 0x265   : > { %v1196_v28 = vsel %vm1036_vm9, %v972_v43, 0.0  ;;  %vm1037_vm5 = vmand %vm3696_vm7, %vm1005_vm3  ;;  %v954_v23 = vmul.f32 0.6931472, %v1656_v3  ;;  %v924_v47 = vmul.f32 0.6931472, %v1660_v57  ;;  %vm3697_vm8 = vcmp.eq.s32.totalorder %v3695_v45, %v1966_v15  ;;  %v1668_v44 = vpop.eup %1667  ;;  %v3703_v3 = vld [vmem:[#allocation40_spill] sm:$0xff] }
 0x266   : > { %v1231_v54 = vadd.f32 %v1196_v28, %v1195_v31  ;;  %vm1038_vm2 = vmand %vm3697_vm8, %vm1006_vm1  ;;  %v987_v6 = vsub.f32 %v3698_v62, %v948_v13  ;;  %v926_v36 = vmul.f32 0.6931472, %v1662_v58  ;;  %v1197_v34 = vsel %vm1037_vm5, %v973_v8, 0.0  ;;  %v3709_v43 = vld [vmem:[#allocation43_spill] sm:$0xff]  ;;  %v3710_v58 = vld [vmem:[#allocation6_spill] sm:$0xff] }
 0x267   : > { %v1198_v20 = vsel %vm1038_vm2, %v974_v26, 0.0  ;;  %v988_v1 = vsub.f32 %v3699_v27, %v950_v12  ;;  %vm3701_vm3 = vcmp.eq.s32.totalorder %v3700_v16, %v1964_v11  ;;  %vm3702_vm1 = vcmp.eq.s32.totalorder %v3700_v16, %v1966_v15  ;;  %v1670_v63 = vpop.eup %1669  ;;  %v3714_v8 = vld [vmem:[#allocation7_spill] sm:$0xff]  ;;  %v3722_v16 = vld [vmem:[#allocation50_spill] sm:$0xff] }
 0x268   : > { %vm1051_vm10 = vmand %vm3701_vm3, %vm1019_vm11  ;;  %1232 = vadd.xlane.f32.xlu0 %v1231_v54  ;;  %v1234_v49 = vadd.f32 %v1198_v20, %v1197_v34  ;;  %vm1010_vm7 = vcmp.ne.s32.totalorder %v3018_v50, %v3650_v5  ;;  %v3182_v38 = vadd.s32 %v2883_v37, %v697_v46  ;;  %v928_v59 = vmul.f32 0.6931472, %v1658_v29  ;;  %v3708_v29 = vld [vmem:[#allocation42_spill] sm:$0xff]  ;;  %v3716_v45 = vld [vmem:[#allocation47_spill] sm:$0xff] }
 0x269   : > { %vm1052_vm9 = vmand %vm3702_vm1, %vm1020_vm14  ;;  %v1211_v40 = vsel %vm1051_vm10, %v987_v6, 0.0  ;;  %v930_v2 = vmul.f32 0.6931472, %v1664_v51  ;;  %v989_v33 = vsub.f32 %v3703_v3, %v952_v42  ;;  %vm3705_vm11 = vcmp.eq.s32.totalorder %v3704_v24, %v1964_v11  ;;  %v1672_v12 = vpop.eup %1671  ;;  %v3719_v6 = vld [vmem:[#allocation49_spill] sm:$0xff]  ;;  %v1125_v3 = vpop.xlane.xlu0 %1124 }
 0x26a   : > { %v1212_v30 = vsel %vm1052_vm9, %v988_v1, 0.0  ;;  %vm1053_vm5 = vmand %vm3705_vm11, %vm1021_vm0  ;;  %v956_v13 = vmul.f32 0.6931472, %v1666_v9  ;;  %1235 = vadd.xlane.f32.xlu1 %v1234_v49  ;;  %v990_v55 = vsub.f32 %v3706_v41, %v954_v23  ;;  %vm3707_vm14 = vcmp.eq.s32.totalorder %v3704_v24, %v1966_v15  ;;  %v1128_v24 = vpop.xlane.xlu1 %1127 }
 0x26b   : > { %v1255_v18 = vadd.f32 %v1212_v30, %v1211_v40  ;;  %vm1054_vm8 = vmand %vm3707_vm14, %vm1022_vm4  ;;  %v975_v57 = vsub.f32 %v3708_v29, %v924_v47  ;;  %v958_v48 = vmul.f32 0.6931472, %v1668_v44  ;;  %v1213_v60 = vsel %vm1053_vm5, %v989_v33, 0.0  ;;  %v3718_v47 = vld [vmem:[#allocation48_spill] sm:$0xff]  ;;  %v3723_v40 = vld [vmem:[#allocation51_spill] sm:$0xff] }
 0x26c   : > { %v976_v32 = vsub.f32 %v3709_v43, %v926_v36  ;;  %vm3711_vm0 = vcmp.eq.s32.totalorder %v3710_v58, %v1964_v11  ;;  %v3207_v31 = vadd.s32 %v2883_v37, %v698_v56  ;;  %v1214_v46 = vsel %vm1054_vm8, %v990_v55, 0.0  ;;  %v3713_v56 = vld [vmem:[#allocation46_spill] sm:$0xff]  ;;  %v3720_v36 = vld [vmem:[#allocation52_spill] sm:$0xff] }
 0x26d   : > { %vm1039_vm2 = vmand %vm3711_vm0, %vm1007_vm15  ;;  %1256 = vadd.xlane.f32.xlu0 %v1255_v18  ;;  %vm3712_vm4 = vcmp.eq.s32.totalorder %v3710_v58, %v1966_v15  ;;  %vm1023_vm10 = vcmp.ne.s32.totalorder %v3182_v38, %v3648_v7  ;;  %vm1024_vm1 = vcmp.ne.s32.totalorder %v3182_v38, %v3650_v5  ;;  %v960_v42 = vmul.f32 0.6931472, %v1670_v63  ;;  %v1131_v33 = vpop.xlane.xlu0 %1130 }
 0x26e   : > { %vm1040_vm3 = vmand %vm3712_vm4, %vm1008_vm6  ;;  %v1199_v51 = vsel %vm1039_vm2, %v975_v57, 0.0  ;;  %v1258_v28 = vadd.f32 %v1214_v46, %v1213_v60  ;;  %v977_v22 = vsub.f32 %v3713_v56, %v928_v59  ;;  %vm3715_vm15 = vcmp.eq.s32.totalorder %v3714_v8, %v1964_v11  ;;  %v3724_v59 = vld [vmem:[#allocation53_spill] sm:$0xff] }
 0x26f   : > { %v1200_v37 = vsel %vm1040_vm3, %v976_v32, 0.0  ;;  %vm1041_vm9 = vmand %vm3715_vm15, %vm1009_vm12  ;;  %v962_v17 = vmul.f32 0.6931472, %v1672_v12  ;;  %v978_v23 = vsub.f32 %v3716_v45, %v930_v2  ;;  %vm3717_vm6 = vcmp.eq.s32.totalorder %v3714_v8, %v1966_v15  ;;  %v3727_v45 = vld [vmem:[#allocation20_spill] sm:$0xff] }
 0x270   : > { %v1237_v26 = vadd.f32 %v1200_v37, %v1199_v51  ;;  %vm1042_vm11 = vmand %vm3717_vm6, %vm1010_vm7  ;;  %v991_v54 = vsub.f32 %v3718_v47, %v956_v13  ;;  %1259 = vadd.xlane.f32.xlu1 %v1258_v28  ;;  %v1201_v62 = vsel %vm1041_vm9, %v977_v22, 0.0  ;;  %v992_v9 = vsub.f32 %v3719_v6, %v958_v48  ;;  %v1134_v13 = vpop.xlane.xlu1 %1133 }
 0x271   : > { %vm3721_vm12 = vcmp.eq.s32.totalorder %v3720_v36, %v1964_v11  ;;  %vm1025_vm14 = vcmp.ne.s32.totalorder %v3207_v31, %v3648_v7  ;;  %v1202_v34 = vsel %vm1042_vm11, %v978_v23, 0.0  ;;  %vm1056_vm7 = vmand %vm676_vm13, %vm1024_vm1  ;;  %vm1026_vm8 = vcmp.ne.s32.totalorder %v3207_v31, %v3650_v5  ;;  %v1137_v63 = vpop.xlane.xlu0 %1136  ;;  %v3728_v23 = vld [vmem:[#allocation30_spill] sm:$0xff] }
 0x272   : > { %vm1055_vm5 = vmand %vm3721_vm12, %vm1023_vm10  ;;  %1238 = vadd.xlane.f32.xlu0 %v1237_v26  ;;  %v1240_v27 = vadd.f32 %v1202_v34, %v1201_v62  ;;  %v1216_v1 = vsel %vm1056_vm7, %v992_v9, 0.0  ;;  %v993_v44 = vsub.f32 %v3722_v16, %v960_v42  ;;  %v994_v7 = vsub.f32 %v3723_v40, %v962_v17 }
 0x273   : > { %v1215_v20 = vsel %vm1055_vm5, %v991_v54, 0.0  ;;  %vm3725_vm0 = vcmp.eq.s32.totalorder %v3724_v59, %v1964_v11  ;;  %vm3726_vm4 = vcmp.eq.s32.totalorder %v3724_v59, %v1966_v15  ;;  %v1504_v55 = vadd.f32 -1.0, %v1125_v3 }
 0x274   : > { %v1261_v49 = vadd.f32 %v1216_v1, %v1215_v20  ;;  %vm1057_vm2 = vmand %vm3725_vm0, %vm1025_vm14  ;;  %1241 = vadd.xlane.f32.xlu1 %v1240_v27  ;;  %v1140_v41 = vpop.xlane.xlu1 %1139  ;;  %v1505_v43 = vadd.f32 -1.0, %v1128_v24  ;;  %v1506_v28 = vadd.f32 -1.0, %v1131_v33  ;;  %v1507_v17 = vadd.f32 -1.0, %v1134_v13 }
 0x275   : > { %vm1058_vm13 = vmand %vm3726_vm4, %vm1026_vm8  ;;  %v1217_v2 = vsel %vm1057_vm2, %v993_v44, 0.0  ;;  %v3259_v18 = vpop.xlane.xlu0 %1142  ;;  %v1267_v15 = vmax.f32 %v1504_v55, 1.0  ;;  %vm1331_vm3 = vcmp.lt.s32.totalorder %v3728_v23, %v3727_v45  ;;  %vm1363_vm10 = vcmask 7168  }
 0x276   : > { %1262 = vadd.xlane.f32.xlu0 %v1261_v49  ;;  %v1218_v30 = vsel %vm1058_vm13, %v994_v7, 0.0  ;;  %v1268_v46 = vmax.f32 %v1505_v43, 1.0  ;;  %v1269_v47 = vmax.f32 %v1506_v28, 1.0  ;;  %v1270_v62 = vmax.f32 %v1507_v17, 1.0 }
 0x277   : > { %v1264_v5 = vadd.f32 %v1218_v30, %v1217_v2  ;;  %1673 = vrcp.f32 %v1267_v15  ;;  %vm1339_vm1 = vcmp.lt.s32.totalorder %v2887_v4, %v3727_v45  ;;  %v1508_v40 = vadd.f32 -1.0, %v1137_v63 }
 0x278   : > { %v3261_v29 = vpop.xlane.xlu1 %1145  ;;  %vm1332_vm15 = vcmp.lt.s32.totalorder %v2897_v25, %v3727_v45  ;;  %vm1340_vm9 = vcmp.lt.s32.totalorder %v2929_v39, %v3727_v45  ;;  %vm1333_vm6 = vcmp.lt.s32.totalorder %v2906_v0, %v3727_v45  ;;  %vm1334_vm11 = vcmp.lt.s32.totalorder %v2932_v52, %v3727_v45 }
 0x279   : > { %1265 = vadd.xlane.f32.xlu1 %v1264_v5  ;;  %v1149_v11 = vpop.xlane.xlu0 %1148  ;;  %v1509_v5 = vadd.f32 -1.0, %v1140_v41  ;;  %v1271_v4 = vmax.f32 %v1508_v40, 1.0  ;;  %vm1341_vm12 = vcmp.lt.s32.totalorder %v2943_v19, %v3727_v45  ;;  %vm1342_vm5 = vcmp.lt.s32.totalorder %v3037_v14, %v3727_v45 }
 0x27a   : > { %v1512_v48 = vadd.f32 -1.0, %v1149_v11  ;;  %vm1335_vm14 = vcmp.lt.s32.totalorder %v2946_v35, %v3727_v45  ;;  %vm1336_vm7 = vcmp.lt.s32.totalorder %v2949_v21, %v3727_v45  ;;  %vm1343_vm8 = vcmp.lt.s32.totalorder %v2959_v61, %v3727_v45 }
 0x27b   : > { %v1272_v55 = vmax.f32 %v1509_v5, 1.0  ;;  %vm1344_vm0 = vcmp.lt.s32.totalorder %v3110_v53, %v3727_v45  ;;  %vm1337_vm2 = vcmp.lt.s32.totalorder %v3686_v10, %v3727_v45  ;;  %vm1338_vm4 = vcmp.lt.s32.totalorder %v3018_v50, %v3727_v45 }
 0x27c   : > { %v1152_v12 = vpop.xlane.xlu1 %1151  ;;  %v1275_v32 = vmax.f32 %v1512_v48, 1.0  ;;  %vm1345_vm13 = vcmp.lt.s32.totalorder %v3182_v38, %v3727_v45 }
 0x27d   : > { %v1155_v57 = vpop.xlane.xlu0 %1154  ;;  %v1513_v51 = vadd.f32 -1.0, %v1152_v12 }
 0x27e   : > { %1675 = vrcp.f32 %v1275_v32  ;;  %v1514_v6 = vadd.f32 -1.0, %v1155_v57  ;;  %v1510_v57 = vadd.f32 -1.0, %v3259_v18  ;;  %v1511_v18 = vadd.f32 -1.0, %v3261_v29 }
 0x27f   : > { %1677 = vrcp.f32 %v1268_v46  ;;  %v1276_v56 = vmax.f32 %v1513_v51, 1.0 }
 0x280   : > { %v1158_v58 = vpop.xlane.xlu1 %1157  ;;  %v1277_v16 = vmax.f32 %v1514_v6, 1.0  ;;  %v1273_v51 = vmax.f32 %v1510_v57, 1.0 }
 0x281   : > { %v1161_v60 = vpop.xlane.xlu0 %1160  ;;  %v1674_v37 = vpop.eup %1673  ;;  %1679 = vrcp.f32 %v1276_v56  ;;  %v1515_v27 = vadd.f32 -1.0, %v1158_v58 }
 0x282   : > { %1681 = vrcp.f32 %v1269_v47  ;;  %v1516_v24 = vadd.f32 -1.0, %v1161_v60  ;;  %v1274_v47 = vmax.f32 %v1511_v18, 1.0 }
 0x283   : > { %1683 = vrcp.f32 %v1270_v62  ;;  %v1278_v59 = vmax.f32 %v1515_v27, 1.0 }
 0x284   : > { %v1164_v22 = vpop.xlane.xlu1 %1163  ;;  %1685 = vrcp.f32 %v1277_v16  ;;  %v1279_v48 = vmax.f32 %v1516_v24, 1.0 }
 0x285   : > { %v3263_v42 = vpop.xlane.xlu0 %1166  ;;  %1687 = vrcp.f32 %v1278_v59  ;;  %v1517_v25 = vadd.f32 -1.0, %v1164_v22 }
 0x286   : > { %1689 = vrcp.f32 %v1271_v4 }
 0x287   : > { %1691 = vrcp.f32 %v1272_v55  ;;  %v1280_v28 = vmax.f32 %v1517_v25, 1.0 }
 0x288   : > { %v1676_v36 = vpop.eup %1675  ;;  %v1170_v34 = vpop.xlane.xlu1 %1169  ;;  %1693 = vrcp.f32 %v1279_v48 }
 0x289   : > { %v1678_v49 = vpop.eup %1677  ;;  %1695 = vrcp.f32 %v1280_v28  ;;  %v1519_v29 = vadd.f32 -1.0, %v1170_v34 }
 0x28a   : > { %1697 = vrcp.f32 %v1273_v51 }
 0x28b   : > { %v1680_v33 = vpop.eup %1679  ;;  %1699 = vrcp.f32 %v1274_v47  ;;  %v1282_v34 = vmax.f32 %v1519_v29, 1.0 }
 0x28c   : > { %v1682_v41 = vpop.eup %1681 }
 0x28d   : > { %v1684_v43 = vpop.eup %1683 }
 0x28e   : > { %v1686_v0 = vpop.eup %1685 }
 0x28f   : > { %v1688_v23 = vpop.eup %1687 }
 0x290   : > { %v1690_v6 = vpop.eup %1689 }
 0x291   : > { %v1692_v19 = vpop.eup %1691 }
 0x2d3   : > { %v1221_v8 = vpop.xlane.xlu0 %1220 }
 0x2d4   : > { %v1284_v26 = vmul.f32 %v1674_v37, %v1221_v8  ;;  %v1518_v37 = vadd.f32 -1.0, %v3263_v42 }
 0x2d6   : > { %v1315_v54 = vmul.f32 -1.0, %v1284_v26  ;;  %v1281_v42 = vmax.f32 %v1518_v37, 1.0 }
 0x2d8   : > { %v1347_v9 = vsel %vm1331_vm3, %v1315_v54, 0.0  ;;  %1701 = vrcp.f32 %v1281_v42  ;;  %vm1346_vm3 = vcmp.lt.s32.totalorder %v3207_v31, %v3727_v45 }
 0x2d9   : > { %1364 = vst.msk [vmem:[%s3271_s18] sm:$0xff] %vm1363_vm10, %v1347_v9  ;;  %v1245_v20 = vpop.xlane.xlu0 %1244  ;;  %1703 = vrcp.f32 %v1282_v34 }
 0x2da   : > { %v1300_v1 = vmul.f32 %v1676_v36, %v1245_v20 }
 0x2dc   : > { %v1323_v44 = vmul.f32 -1.0, %v1300_v1 }
 0x2de   : > { %v1224_v7 = vpop.xlane.xlu1 %1223  ;;  %v1355_v2 = vsel %vm1339_vm1, %v1323_v44, 0.0 }
 0x2df   : > { %v1286_v30 = vmul.f32 %v1678_v49, %v1224_v7  ;;  %1372 = vst.msk [vmem:[%s3271_s18 + $0x40] sm:$0xff] %vm1363_vm10, %v1355_v2  ;;  %v1694_v49 = vpop.eup %1693 }
 0x2e0   : > { %v1696_v35 = vpop.eup %1695 }
 0x2e1   : > { %v1316_v3 = vmul.f32 -1.0, %v1286_v30 }
 0x2e2   : > { %v1248_v13 = vpop.xlane.xlu1 %1247 }
 0x2e3   : > { %v1348_v11 = vsel %vm1332_vm15, %v1316_v3, 0.0  ;;  %v1302_v63 = vmul.f32 %v1680_v33, %v1248_v13  ;;  %v1698_v33 = vpop.eup %1697 }
 0x2e4   : > { %1365 = vst.msk [vmem:[%s3271_s18 + $0x8] sm:$0xff] %vm1363_vm10, %v1348_v11  ;;  %v1700_v61 = vpop.eup %1699 }
 0x2e5   : > { %v1324_v15 = vmul.f32 -1.0, %v1302_v63 }
 0x2e7   : > { %v1227_v12 = vpop.xlane.xlu0 %1226  ;;  %v1356_v32 = vsel %vm1340_vm9, %v1324_v15, 0.0 }
 0x2e8   : > { %v1288_v60 = vmul.f32 %v1682_v41, %v1227_v12  ;;  %1373 = vst.msk [vmem:[%s3271_s18 + $0x48] sm:$0xff] %vm1363_vm10, %v1356_v32  ;;  %v1702_v41 = vpop.eup %1701 }
 0x2e9   : > { %v1704_v48 = vpop.eup %1703 }
 0x2ea   : > { %v1230_v58 = vpop.xlane.xlu1 %1229  ;;  %v1317_v39 = vmul.f32 -1.0, %v1288_v60 }
 0x2eb   : > { %v1290_v46 = vmul.f32 %v1684_v43, %v1230_v58 }
 0x2ec   : > { %v1349_v56 = vsel %vm1333_vm6, %v1317_v39, 0.0 }
 0x2ed   : > { %v1318_v22 = vmul.f32 -1.0, %v1290_v46  ;;  %1366 = vst.msk [vmem:[%s3271_s18 + $0x10] sm:$0xff] %vm1363_vm10, %v1349_v56 }
 0x2ee   : > { %v1251_v8 = vpop.xlane.xlu0 %1250 }
 0x2ef   : > { %v1350_v17 = vsel %vm1334_vm11, %v1318_v22, 0.0  ;;  %v1304_v26 = vmul.f32 %v1686_v0, %v1251_v8 }
 0x2f0   : > { %1367 = vst.msk [vmem:[%s3271_s18 + $0x18] sm:$0xff] %vm1363_vm10, %v1350_v17 }
 0x2f1   : > { %v1254_v52 = vpop.xlane.xlu1 %1253  ;;  %v1325_v54 = vmul.f32 -1.0, %v1304_v26 }
 0x2f2   : > { %v1306_v62 = vmul.f32 %v1688_v23, %v1254_v52 }
 0x2f3   : > { %v1357_v9 = vsel %vm1341_vm12, %v1325_v54, 0.0 }
 0x2f4   : > { %v1326_v36 = vmul.f32 -1.0, %v1306_v62  ;;  %1374 = vst.msk [vmem:[%s3271_s18 + $0x50] sm:$0xff] %vm1363_vm10, %v1357_v9 }
 0x2f5   : > { %v1233_v20 = vpop.xlane.xlu0 %1232 }
 0x2f6   : > { %v1292_v27 = vmul.f32 %v1690_v6, %v1233_v20  ;;  %v1358_v1 = vsel %vm1342_vm5, %v1326_v36, 0.0 }
 0x2f7   : > { %v1236_v16 = vpop.xlane.xlu1 %1235  ;;  %1375 = vst.msk [vmem:[%s3271_s18 + $0x58] sm:$0xff] %vm1363_vm10, %v1358_v1 }
 0x2f8   : > { %v1319_v14 = vmul.f32 -1.0, %v1292_v27  ;;  %v1294_v44 = vmul.f32 %v1692_v19, %v1236_v16 }
 0x2fa   : > { %v1257_v40 = vpop.xlane.xlu0 %1256  ;;  %v1351_v7 = vsel %vm1335_vm14, %v1319_v14, 0.0  ;;  %v1320_v59 = vmul.f32 -1.0, %v1294_v44 }
 0x2fb   : > { %v1308_v2 = vmul.f32 %v1694_v49, %v1257_v40  ;;  %1368 = vst.msk [vmem:[%s3271_s18 + $0x20] sm:$0xff] %vm1363_vm10, %v1351_v7 }
 0x2fc   : > { %v1352_v30 = vsel %vm1336_vm7, %v1320_v59, 0.0 }
 0x2fd   : > { %v1327_v5 = vmul.f32 -1.0, %v1308_v2  ;;  %v1260_v3 = vpop.xlane.xlu1 %1259  ;;  %1369 = vst.msk [vmem:[%s3271_s18 + $0x28] sm:$0xff] %vm1363_vm10, %v1352_v30 }
 0x2fe   : > { %v1310_v21 = vmul.f32 %v1696_v35, %v1260_v3 }
 0x2ff   : > { %v1239_v4 = vpop.xlane.xlu0 %1238  ;;  %v1359_v24 = vsel %vm1343_vm8, %v1327_v5, 0.0 }
 0x300   : > { %v1296_v13 = vmul.f32 %v1698_v33, %v1239_v4  ;;  %1376 = vst.msk [vmem:[%s3271_s18 + $0x60] sm:$0xff] %vm1363_vm10, %v1359_v24  ;;  %v1328_v11 = vmul.f32 -1.0, %v1310_v21 }
 0x301   : > { %v1242_v55 = vpop.xlane.xlu1 %1241 }
 0x302   : > { %v1321_v63 = vmul.f32 -1.0, %v1296_v13  ;;  %v1360_v57 = vsel %vm1344_vm0, %v1328_v11, 0.0  ;;  %v1298_v25 = vmul.f32 %v1700_v61, %v1242_v55 }
 0x303   : > { %v1263_v15 = vpop.xlane.xlu0 %1262  ;;  %1377 = vst.msk [vmem:[%s3271_s18 + $0x68] sm:$0xff] %vm1363_vm10, %v1360_v57 }
 0x304   : > { %v1353_v53 = vsel %vm1337_vm2, %v1321_v63, 0.0  ;;  %v1312_v12 = vmul.f32 %v1702_v41, %v1263_v15  ;;  %v1322_v10 = vmul.f32 -1.0, %v1298_v25 }
 0x305   : > { %1370 = vst.msk [vmem:[%s3271_s18 + $0x30] sm:$0xff] %vm1363_vm10, %v1353_v53 }
 0x306   : > { %v1329_v60 = vmul.f32 -1.0, %v1312_v12  ;;  %v1266_v43 = vpop.xlane.xlu1 %1265  ;;  %v1354_v32 = vsel %vm1338_vm4, %v1322_v10, 0.0 }
 0x307   : > { %v1314_v58 = vmul.f32 %v1704_v48, %v1266_v43  ;;  %1371 = vst.msk [vmem:[%s3271_s18 + $0x38] sm:$0xff] %vm1363_vm10, %v1354_v32 }
 0x308   : > { %v1361_v39 = vsel %vm1345_vm13, %v1329_v60, 0.0 }
 0x309   : > { %1378 = vst.msk [vmem:[%s3271_s18 + $0x70] sm:$0xff] %vm1363_vm10, %v1361_v39  ;;  %v1330_v50 = vmul.f32 -1.0, %v1314_v58 }
 0x30b   : > { %v1362_v46 = vsel %vm1346_vm3, %v1330_v50, 0.0 }
 0x30c   : > { %1379 = vst.msk [vmem:[%s3271_s18 + $0x78] sm:$0xff] %vm1363_vm10, %v1362_v46 }
 0x30d PF: > { %s16_s20 = sadd.s32 1, %s1711_s20  }
 0x30e   : > { %p13_p4 = scmp.ge.s32.totalorder %s16_s20, 4  }
 0x310   :  { %15 = sbr.rel (!%p13_p4) target bundleno = 2 (0x2), region = 69 }

</bundles_post_ra>
